<compile_context>
chip_gen: v7x
topology: tpu7x:2x2x1
jax: 0.10.0
libtpu: 0.0.40
codegen_flags: <defaults>
</compile_context>

<pallas_src>
import functools

import jax
import jax.numpy as jnp
from jax.experimental import pallas as pl
from jax.experimental.pallas import tpu as pltpu  # noqa: F401  (TPU backend)

_MATMUL_DTYPE = jnp.bfloat16  # MXU operand dtype; accumulation stays float32.


# ----------------------------- LSTM cell step -----------------------------

def _lstm_step(x, h, c, wih_t, whh_t, b):
    """One PyTorch-convention LSTM cell step (gate order i, f, g, o).

    MXU operands are cast to the weight dtype (bf16); gate math and the
    hidden/cell state stay float32.
    """
    H = c.shape[-1]
    gates = (jnp.dot(x.astype(wih_t.dtype), wih_t,
                     preferred_element_type=jnp.float32)
             + jnp.dot(h.astype(whh_t.dtype), whh_t,
                       preferred_element_type=jnp.float32)
             + b)
    i = jax.nn.sigmoid(gates[:, 0 * H:1 * H])
    f = jax.nn.sigmoid(gates[:, 1 * H:2 * H])
    g = jnp.tanh(gates[:, 2 * H:3 * H])
    o = jax.nn.sigmoid(gates[:, 3 * H:4 * H])
    c_new = f * c + i * g
    h_new = o * jnp.tanh(c_new)
    return h_new, c_new


# ------------------------- fused encode+generate kernel -------------------------

def _autoencoder_kernel(emb_ref, mask_ref, embtab_ref, wih_ref, whh_ref, b_ref,
                        wout_ref, bout_ref, sos_ref, out_ref, idx_ref):
    B, T, _ = emb_ref.shape
    H = whh_ref.shape[0]
    V = embtab_ref.shape[0]

    # Weights loaded once; everything is VMEM-resident for the whole kernel.
    wih = wih_ref[...]           # (E, 4H) bf16
    whh = whh_ref[...]           # (H, 4H) bf16
    b = b_ref[...]               # (1, 4H) f32 (b_ih + b_hh)

    # ------------------------------- encode -------------------------------
    h = jnp.zeros((B, H), jnp.float32)
    c = jnp.zeros((B, H), jnp.float32)
    m = jnp.full((B, H), -jnp.inf, jnp.float32)
    # Static Python unroll: T is small and the recurrence is sequential anyway.
    for t in range(T):
        x = emb_ref[:, t, :]                      # (B, E)
        h_new, c_new = _lstm_step(x, h, c, wih, whh, b)
        valid = mask_ref[:, t:t + 1] > 0.0        # (B, 1) bool
        h = jnp.where(valid, h_new, h)
        c = jnp.where(valid, c_new, c)
        # pad_packed zero-pads invalid steps before torch.max over time.
        m = jnp.maximum(m, jnp.where(valid, h_new, 0.0))
    h_t = m                                       # encoder output (B, H)

    # ------------------- generate (greedy, teacher forcing 0.0) -------------------
    out_ref[...] = jnp.zeros_like(out_ref)        # outputs[:, 0, :] stays zero
    idx_ref[...] = jnp.zeros_like(idx_ref)        # argmax_indices[:, 0] stays zero

    wout = wout_ref[...]                          # (H, V) bf16
    bout = bout_ref[...]                          # (1, V) f32
    embtab = embtab_ref[...]                      # (V, E) bf16
    iota_v = jax.lax.broadcasted_iota(jnp.int32, (B, V), 1)  # hoisted out of the loop

    h = h_t
    c = jnp.zeros((B, H), jnp.float32)
    e = sos_ref[...].astype(jnp.float32)          # (B, E) <sos> embedding
    for t in range(1, T):
        h, c = _lstm_step(e, h, c, wih, whh, b)
        logits = (jnp.dot(h.astype(wout.dtype), wout,
                          preferred_element_type=jnp.float32)
                  + bout)                         # (B, V) f32, lane-dense
        out_ref[:, t, :] = logits

        # argmax over vocab (first max index, like torch .max(1)[1])
        row_max = jnp.max(logits, axis=-1, keepdims=True)
        amax = jnp.min(jnp.where(logits == row_max, iota_v, V), axis=-1)  # (B,) int32
        idx_ref[:, t:t + 1] = amax.astype(jnp.float32)[:, None]

        # greedy feedback: embedding lookup of argmax via one-hot matmul
        onehot = (iota_v == amax[:, None]).astype(jnp.float32).astype(embtab.dtype)
        e = jnp.dot(onehot, embtab, preferred_element_type=jnp.float32)


# ------------------------------ AutoEncoder glue ------------------------------

@functools.partial(jax.jit, static_argnames=("sos",))
def auto_encoder_forward(params, tokens, text_length, sos):
    """AutoEncoder.forward: returns (o, i) = (logits (B,T,V) f32, argmax ids (B,T) f32)."""
    emb_table_f32 = params["emb"]
    emb_table = emb_table_f32.astype(_MATMUL_DTYPE)
    wih_t = params["wih_t"].astype(_MATMUL_DTYPE)
    whh_t = params["whh_t"].astype(_MATMUL_DTYPE)
    wout_t = params["wout_t"].astype(_MATMUL_DTYPE)
    b = params["b"].astype(jnp.float32)
    bout = params["bout"].astype(jnp.float32)

    B, T = tokens.shape
    V, E = emb_table.shape

    # Encoder input: embedding gather stays in XLA (wrapper glue), batch-major.
    emb = emb_table_f32[tokens]                                   # (B, T, E) f32
    # Validity mask (pack_padded semantics). Assumes max(text_length) == T,
    # matching the reference where max_length = max(text_length).
    mask = (jnp.arange(T, dtype=jnp.int32)[None, :]
            < text_length.astype(jnp.int32)[:, None]).astype(jnp.float32)  # (B, T)
    sos_emb = jnp.broadcast_to(emb_table[sos][None, :], (B, E))   # (B, E) bf16

    # No grid / no BlockSpecs: every operand is mapped whole into VMEM and the
    # kernel runs once (all sequence recurrence is unrolled inside the body).
    o, i = pl.pallas_call(
        _autoencoder_kernel,
        out_shape=(jax.ShapeDtypeStruct((B, T, V), jnp.float32),
                   jax.ShapeDtypeStruct((B, T), jnp.float32)),
    )(emb, mask, emb_table, wih_t, whh_t, b, wout_t, bout, sos_emb)
    return o, i


# ------------------------------------ main ------------------------------------

if __name__ == "__main__":
    B, T, E, H, V = 8, 8, 32, 32, 128
    SOS, EOS = 1, 2

    key = jax.random.PRNGKey(0)
    ks = jax.random.split(key, 8)
    k = 1.0 / jnp.sqrt(jnp.float32(H))

    # nn.Embedding(V, E, padding_idx=0): N(0,1), row 0 zeroed
    emb_table = jax.random.normal(ks[0], (V, E), jnp.float32).at[0].set(0.0)
    # nn.LSTM(E, H): U(-1/sqrt(H), 1/sqrt(H)); stored transposed for x @ W
    wih_t = jax.random.uniform(ks[1], (E, 4 * H), jnp.float32, -k, k)
    whh_t = jax.random.uniform(ks[2], (H, 4 * H), jnp.float32, -k, k)
    b_ih = jax.random.uniform(ks[3], (1, 4 * H), jnp.float32, -k, k)
    b_hh = jax.random.uniform(ks[4], (1, 4 * H), jnp.float32, -k, k)
    # nn.Linear(H, V)
    wout_t = jax.random.uniform(ks[5], (H, V), jnp.float32, -k, k)
    bout = jax.random.uniform(ks[6], (1, V), jnp.float32, -k, k)

    params = dict(emb=emb_table, wih_t=wih_t, whh_t=whh_t, b=b_ih + b_hh,
                  wout_t=wout_t, bout=bout)

    tokens = jax.random.randint(ks[7], (B, T), 1, V, dtype=jnp.int32)
    text_length = jnp.array([8, 6, 8, 5, 7, 8, 4, 8], dtype=jnp.int32)  # max == T

    o, i = auto_encoder_forward(params, tokens, text_length, SOS)
    o = jax.block_until_ready(o)
    i = jax.block_until_ready(i)

    assert o.shape == (B, T, V) and o.dtype == jnp.float32
    assert i.shape == (B, T) and i.dtype == jnp.float32
    assert bool(jnp.all(jnp.isfinite(o)))
    assert bool(jnp.all(o[:, 0, :] == 0.0)) and bool(jnp.all(i[:, 0] == 0.0))
    print("KERNEL_OK")
</pallas_src>

<mosaic_0001>
module attributes {stable_mosaic.version = 11 : i64} {
  func.func @_autoencoder_kernel(%arg0: memref<8x8x32xf32, #tpu.memory_space<vmem>>, %arg1: memref<8x8xf32, #tpu.memory_space<vmem>>, %arg2: memref<128x32xbf16, #tpu.memory_space<vmem>>, %arg3: memref<32x128xbf16, #tpu.memory_space<vmem>>, %arg4: memref<32x128xbf16, #tpu.memory_space<vmem>>, %arg5: memref<1x128xf32, #tpu.memory_space<vmem>>, %arg6: memref<32x128xbf16, #tpu.memory_space<vmem>>, %arg7: memref<1x128xf32, #tpu.memory_space<vmem>>, %arg8: memref<8x32xbf16, #tpu.memory_space<vmem>>, %arg9: memref<8x8x128xf32, #tpu.memory_space<vmem>>, %arg10: memref<8x8xf32, #tpu.memory_space<vmem>>) attributes {dimension_semantics = [], scalar_prefetch = 0 : i64, scratch_operands = 0 : i64, tpu.core_type = #tpu.core_type<tc>} {
    %c0 = arith.constant 0 : index
    %c0_0 = arith.constant 0 : index
    %0 = vector.load %arg3[%c0, %c0_0] : memref<32x128xbf16, #tpu.memory_space<vmem>>, vector<32x128xbf16>
    %c0_1 = arith.constant 0 : index
    %c0_2 = arith.constant 0 : index
    %1 = vector.load %arg4[%c0_1, %c0_2] : memref<32x128xbf16, #tpu.memory_space<vmem>>, vector<32x128xbf16>
    %c0_3 = arith.constant 0 : index
    %c0_4 = arith.constant 0 : index
    %2 = vector.load %arg5[%c0_3, %c0_4] : memref<1x128xf32, #tpu.memory_space<vmem>>, vector<1x128xf32>
    %cst = arith.constant 0.000000e+00 : f32
    %3 = vector.broadcast %cst : f32 to vector<8x32xf32>
    %cst_5 = arith.constant 0.000000e+00 : f32
    %4 = vector.broadcast %cst_5 : f32 to vector<8x32xf32>
    %cst_6 = arith.constant 0xFF800000 : f32
    %5 = vector.broadcast %cst_6 : f32 to vector<8x32xf32>
    %c0_7 = arith.constant 0 : index
    %c0_8 = arith.constant 0 : index
    %c0_9 = arith.constant 0 : index
    %6 = vector.load %arg0[%c0_7, %c0_8, %c0_9] : memref<8x8x32xf32, #tpu.memory_space<vmem>>, vector<8x1x32xf32>
    %7 = vector.shape_cast %6 : vector<8x1x32xf32> to vector<8x32xf32>
    %8 = arith.truncf %7 : vector<8x32xf32> to vector<8x32xbf16>
    %cst_10 = arith.constant dense<0.000000e+00> : vector<8x128xf32>
    %9 = tpu.matmul %8, %0, %cst_10 {dimension_numbers = #tpu.dot_dimension_numbers<[1], [0], [0], [1], [0, 0, 1, 1], [], []>} : vector<8x32xbf16>, vector<32x128xbf16>, vector<8x128xf32> -> vector<8x128xf32>
    %10 = arith.truncf %3 : vector<8x32xf32> to vector<8x32xbf16>
    %cst_11 = arith.constant dense<0.000000e+00> : vector<8x128xf32>
    %11 = tpu.matmul %10, %1, %cst_11 {dimension_numbers = #tpu.dot_dimension_numbers<[1], [0], [0], [1], [0, 0, 1, 1], [], []>} : vector<8x32xbf16>, vector<32x128xbf16>, vector<8x128xf32> -> vector<8x128xf32>
    %12 = arith.addf %9, %11 : vector<8x128xf32>
    %13 = vector.broadcast %2 : vector<1x128xf32> to vector<8x128xf32>
    %14 = arith.addf %12, %13 : vector<8x128xf32>
    %15 = vector.extract_strided_slice %14 {offsets = [0, 0], sizes = [8, 32], strides = [1, 1]} : vector<8x128xf32> to vector<8x32xf32>
    %16 = arith.negf %15 : vector<8x32xf32>
    %17 = math.exp %16 : vector<8x32xf32>
    %cst_12 = arith.constant 1.000000e+00 : f32
    %18 = vector.broadcast %cst_12 : f32 to vector<8x32xf32>
    %19 = arith.addf %18, %17 : vector<8x32xf32>
    %20 = arith.divf %18, %19 : vector<8x32xf32>
    %21 = vector.extract_strided_slice %14 {offsets = [0, 32], sizes = [8, 32], strides = [1, 1]} : vector<8x128xf32> to vector<8x32xf32>
    %22 = arith.negf %21 : vector<8x32xf32>
    %23 = math.exp %22 : vector<8x32xf32>
    %cst_13 = arith.constant 1.000000e+00 : f32
    %24 = vector.broadcast %cst_13 : f32 to vector<8x32xf32>
    %25 = arith.addf %24, %23 : vector<8x32xf32>
    %26 = arith.divf %24, %25 : vector<8x32xf32>
    %27 = vector.extract_strided_slice %14 {offsets = [0, 64], sizes = [8, 32], strides = [1, 1]} : vector<8x128xf32> to vector<8x32xf32>
    %28 = math.tanh %27 : vector<8x32xf32>
    %29 = vector.extract_strided_slice %14 {offsets = [0, 96], sizes = [8, 32], strides = [1, 1]} : vector<8x128xf32> to vector<8x32xf32>
    %30 = arith.negf %29 : vector<8x32xf32>
    %31 = math.exp %30 : vector<8x32xf32>
    %cst_14 = arith.constant 1.000000e+00 : f32
    %32 = vector.broadcast %cst_14 : f32 to vector<8x32xf32>
    %33 = arith.addf %32, %31 : vector<8x32xf32>
    %34 = arith.divf %32, %33 : vector<8x32xf32>
    %35 = arith.mulf %26, %4 : vector<8x32xf32>
    %36 = arith.mulf %20, %28 : vector<8x32xf32>
    %37 = arith.addf %35, %36 : vector<8x32xf32>
    %38 = math.tanh %37 : vector<8x32xf32>
    %39 = arith.mulf %34, %38 : vector<8x32xf32>
    %c0_15 = arith.constant 0 : index
    %c0_16 = arith.constant 0 : index
    %40 = vector.load %arg1[%c0_15, %c0_16] : memref<8x8xf32, #tpu.memory_space<vmem>>, vector<8x1xf32>
    %cst_17 = arith.constant 0.000000e+00 : f32
    %41 = vector.broadcast %cst_17 : f32 to vector<8x1xf32>
    %42 = arith.cmpf ogt, %40, %41 : vector<8x1xf32>
    %43 = vector.shape_cast %42 : vector<8x1xi1> to vector<8x1xi1>
    %44 = vector.broadcast %43 : vector<8x1xi1> to vector<8x32xi1>
    %45 = arith.select %44, %39, %3 : vector<8x32xi1>, vector<8x32xf32>
    %46 = vector.shape_cast %42 : vector<8x1xi1> to vector<8x1xi1>
    %47 = vector.broadcast %46 : vector<8x1xi1> to vector<8x32xi1>
    %48 = arith.select %47, %37, %4 : vector<8x32xi1>, vector<8x32xf32>
    %cst_18 = arith.constant 0.000000e+00 : f32
    %49 = vector.shape_cast %42 : vector<8x1xi1> to vector<8x1xi1>
    %50 = vector.broadcast %49 : vector<8x1xi1> to vector<8x32xi1>
    %51 = vector.broadcast %cst_18 : f32 to vector<8x32xf32>
    %52 = arith.select %50, %39, %51 : vector<8x32xi1>, vector<8x32xf32>
    %53 = arith.maximumf %5, %52 : vector<8x32xf32>
    %c0_19 = arith.constant 0 : index
    %c1 = arith.constant 1 : index
    %c0_20 = arith.constant 0 : index
    %54 = vector.load %arg0[%c0_19, %c1, %c0_20] : memref<8x8x32xf32, #tpu.memory_space<vmem>>, vector<8x1x32xf32>
    %55 = vector.shape_cast %54 : vector<8x1x32xf32> to vector<8x32xf32>
    %56 = arith.truncf %55 : vector<8x32xf32> to vector<8x32xbf16>
    %cst_21 = arith.constant dense<0.000000e+00> : vector<8x128xf32>
    %57 = tpu.matmul %56, %0, %cst_21 {dimension_numbers = #tpu.dot_dimension_numbers<[1], [0], [0], [1], [0, 0, 1, 1], [], []>} : vector<8x32xbf16>, vector<32x128xbf16>, vector<8x128xf32> -> vector<8x128xf32>
    %58 = arith.truncf %45 : vector<8x32xf32> to vector<8x32xbf16>
    %cst_22 = arith.constant dense<0.000000e+00> : vector<8x128xf32>
    %59 = tpu.matmul %58, %1, %cst_22 {dimension_numbers = #tpu.dot_dimension_numbers<[1], [0], [0], [1], [0, 0, 1, 1], [], []>} : vector<8x32xbf16>, vector<32x128xbf16>, vector<8x128xf32> -> vector<8x128xf32>
    %60 = arith.addf %57, %59 : vector<8x128xf32>
    %61 = vector.broadcast %2 : vector<1x128xf32> to vector<8x128xf32>
    %62 = arith.addf %60, %61 : vector<8x128xf32>
    %63 = vector.extract_strided_slice %62 {offsets = [0, 0], sizes = [8, 32], strides = [1, 1]} : vector<8x128xf32> to vector<8x32xf32>
    %64 = arith.negf %63 : vector<8x32xf32>
    %65 = math.exp %64 : vector<8x32xf32>
    %cst_23 = arith.constant 1.000000e+00 : f32
    %66 = vector.broadcast %cst_23 : f32 to vector<8x32xf32>
    %67 = arith.addf %66, %65 : vector<8x32xf32>
    %68 = arith.divf %66, %67 : vector<8x32xf32>
    %69 = vector.extract_strided_slice %62 {offsets = [0, 32], sizes = [8, 32], strides = [1, 1]} : vector<8x128xf32> to vector<8x32xf32>
    %70 = arith.negf %69 : vector<8x32xf32>
    %71 = math.exp %70 : vector<8x32xf32>
    %cst_24 = arith.constant 1.000000e+00 : f32
    %72 = vector.broadcast %cst_24 : f32 to vector<8x32xf32>
    %73 = arith.addf %72, %71 : vector<8x32xf32>
    %74 = arith.divf %72, %73 : vector<8x32xf32>
    %75 = vector.extract_strided_slice %62 {offsets = [0, 64], sizes = [8, 32], strides = [1, 1]} : vector<8x128xf32> to vector<8x32xf32>
    %76 = math.tanh %75 : vector<8x32xf32>
    %77 = vector.extract_strided_slice %62 {offsets = [0, 96], sizes = [8, 32], strides = [1, 1]} : vector<8x128xf32> to vector<8x32xf32>
    %78 = arith.negf %77 : vector<8x32xf32>
    %79 = math.exp %78 : vector<8x32xf32>
    %cst_25 = arith.constant 1.000000e+00 : f32
    %80 = vector.broadcast %cst_25 : f32 to vector<8x32xf32>
    %81 = arith.addf %80, %79 : vector<8x32xf32>
    %82 = arith.divf %80, %81 : vector<8x32xf32>
    %83 = arith.mulf %74, %48 : vector<8x32xf32>
    %84 = arith.mulf %68, %76 : vector<8x32xf32>
    %85 = arith.addf %83, %84 : vector<8x32xf32>
    %86 = math.tanh %85 : vector<8x32xf32>
    %87 = arith.mulf %82, %86 : vector<8x32xf32>
    %c0_26 = arith.constant 0 : index
    %c1_27 = arith.constant 1 : index
    %88 = vector.load %arg1[%c0_26, %c1_27] : memref<8x8xf32, #tpu.memory_space<vmem>>, vector<8x1xf32>
    %cst_28 = arith.constant 0.000000e+00 : f32
    %89 = vector.broadcast %cst_28 : f32 to vector<8x1xf32>
    %90 = arith.cmpf ogt, %88, %89 : vector<8x1xf32>
    %91 = vector.shape_cast %90 : vector<8x1xi1> to vector<8x1xi1>
    %92 = vector.broadcast %91 : vector<8x1xi1> to vector<8x32xi1>
    %93 = arith.select %92, %87, %45 : vector<8x32xi1>, vector<8x32xf32>
    %94 = vector.shape_cast %90 : vector<8x1xi1> to vector<8x1xi1>
    %95 = vector.broadcast %94 : vector<8x1xi1> to vector<8x32xi1>
    %96 = arith.select %95, %85, %48 : vector<8x32xi1>, vector<8x32xf32>
    %cst_29 = arith.constant 0.000000e+00 : f32
    %97 = vector.shape_cast %90 : vector<8x1xi1> to vector<8x1xi1>
    %98 = vector.broadcast %97 : vector<8x1xi1> to vector<8x32xi1>
    %99 = vector.broadcast %cst_29 : f32 to vector<8x32xf32>
    %100 = arith.select %98, %87, %99 : vector<8x32xi1>, vector<8x32xf32>
    %101 = arith.maximumf %53, %100 : vector<8x32xf32>
    %c0_30 = arith.constant 0 : index
    %c2 = arith.constant 2 : index
    %c0_31 = arith.constant 0 : index
    %102 = vector.load %arg0[%c0_30, %c2, %c0_31] : memref<8x8x32xf32, #tpu.memory_space<vmem>>, vector<8x1x32xf32>
    %103 = vector.shape_cast %102 : vector<8x1x32xf32> to vector<8x32xf32>
    %104 = arith.truncf %103 : vector<8x32xf32> to vector<8x32xbf16>
    %cst_32 = arith.constant dense<0.000000e+00> : vector<8x128xf32>
    %105 = tpu.matmul %104, %0, %cst_32 {dimension_numbers = #tpu.dot_dimension_numbers<[1], [0], [0], [1], [0, 0, 1, 1], [], []>} : vector<8x32xbf16>, vector<32x128xbf16>, vector<8x128xf32> -> vector<8x128xf32>
    %106 = arith.truncf %93 : vector<8x32xf32> to vector<8x32xbf16>
    %cst_33 = arith.constant dense<0.000000e+00> : vector<8x128xf32>
    %107 = tpu.matmul %106, %1, %cst_33 {dimension_numbers = #tpu.dot_dimension_numbers<[1], [0], [0], [1], [0, 0, 1, 1], [], []>} : vector<8x32xbf16>, vector<32x128xbf16>, vector<8x128xf32> -> vector<8x128xf32>
    %108 = arith.addf %105, %107 : vector<8x128xf32>
    %109 = vector.broadcast %2 : vector<1x128xf32> to vector<8x128xf32>
    %110 = arith.addf %108, %109 : vector<8x128xf32>
    %111 = vector.extract_strided_slice %110 {offsets = [0, 0], sizes = [8, 32], strides = [1, 1]} : vector<8x128xf32> to vector<8x32xf32>
    %112 = arith.negf %111 : vector<8x32xf32>
    %113 = math.exp %112 : vector<8x32xf32>
    %cst_34 = arith.constant 1.000000e+00 : f32
    %114 = vector.broadcast %cst_34 : f32 to vector<8x32xf32>
    %115 = arith.addf %114, %113 : vector<8x32xf32>
    %116 = arith.divf %114, %115 : vector<8x32xf32>
    %117 = vector.extract_strided_slice %110 {offsets = [0, 32], sizes = [8, 32], strides = [1, 1]} : vector<8x128xf32> to vector<8x32xf32>
    %118 = arith.negf %117 : vector<8x32xf32>
    %119 = math.exp %118 : vector<8x32xf32>
    %cst_35 = arith.constant 1.000000e+00 : f32
    %120 = vector.broadcast %cst_35 : f32 to vector<8x32xf32>
    %121 = arith.addf %120, %119 : vector<8x32xf32>
    %122 = arith.divf %120, %121 : vector<8x32xf32>
    %123 = vector.extract_strided_slice %110 {offsets = [0, 64], sizes = [8, 32], strides = [1, 1]} : vector<8x128xf32> to vector<8x32xf32>
    %124 = math.tanh %123 : vector<8x32xf32>
    %125 = vector.extract_strided_slice %110 {offsets = [0, 96], sizes = [8, 32], strides = [1, 1]} : vector<8x128xf32> to vector<8x32xf32>
    %126 = arith.negf %125 : vector<8x32xf32>
    %127 = math.exp %126 : vector<8x32xf32>
    %cst_36 = arith.constant 1.000000e+00 : f32
    %128 = vector.broadcast %cst_36 : f32 to vector<8x32xf32>
    %129 = arith.addf %128, %127 : vector<8x32xf32>
    %130 = arith.divf %128, %129 : vector<8x32xf32>
    %131 = arith.mulf %122, %96 : vector<8x32xf32>
    %132 = arith.mulf %116, %124 : vector<8x32xf32>
    %133 = arith.addf %131, %132 : vector<8x32xf32>
    %134 = math.tanh %133 : vector<8x32xf32>
    %135 = arith.mulf %130, %134 : vector<8x32xf32>
    %c0_37 = arith.constant 0 : index
    %c2_38 = arith.constant 2 : index
    %136 = vector.load %arg1[%c0_37, %c2_38] : memref<8x8xf32, #tpu.memory_space<vmem>>, vector<8x1xf32>
    %cst_39 = arith.constant 0.000000e+00 : f32
    %137 = vector.broadcast %cst_39 : f32 to vector<8x1xf32>
    %138 = arith.cmpf ogt, %136, %137 : vector<8x1xf32>
    %139 = vector.shape_cast %138 : vector<8x1xi1> to vector<8x1xi1>
    %140 = vector.broadcast %139 : vector<8x1xi1> to vector<8x32xi1>
    %141 = arith.select %140, %135, %93 : vector<8x32xi1>, vector<8x32xf32>
    %142 = vector.shape_cast %138 : vector<8x1xi1> to vector<8x1xi1>
    %143 = vector.broadcast %142 : vector<8x1xi1> to vector<8x32xi1>
    %144 = arith.select %143, %133, %96 : vector<8x32xi1>, vector<8x32xf32>
    %cst_40 = arith.constant 0.000000e+00 : f32
    %145 = vector.shape_cast %138 : vector<8x1xi1> to vector<8x1xi1>
    %146 = vector.broadcast %145 : vector<8x1xi1> to vector<8x32xi1>
    %147 = vector.broadcast %cst_40 : f32 to vector<8x32xf32>
    %148 = arith.select %146, %135, %147 : vector<8x32xi1>, vector<8x32xf32>
    %149 = arith.maximumf %101, %148 : vector<8x32xf32>
    %c0_41 = arith.constant 0 : index
    %c3 = arith.constant 3 : index
    %c0_42 = arith.constant 0 : index
    %150 = vector.load %arg0[%c0_41, %c3, %c0_42] : memref<8x8x32xf32, #tpu.memory_space<vmem>>, vector<8x1x32xf32>
    %151 = vector.shape_cast %150 : vector<8x1x32xf32> to vector<8x32xf32>
    %152 = arith.truncf %151 : vector<8x32xf32> to vector<8x32xbf16>
    %cst_43 = arith.constant dense<0.000000e+00> : vector<8x128xf32>
    %153 = tpu.matmul %152, %0, %cst_43 {dimension_numbers = #tpu.dot_dimension_numbers<[1], [0], [0], [1], [0, 0, 1, 1], [], []>} : vector<8x32xbf16>, vector<32x128xbf16>, vector<8x128xf32> -> vector<8x128xf32>
    %154 = arith.truncf %141 : vector<8x32xf32> to vector<8x32xbf16>
    %cst_44 = arith.constant dense<0.000000e+00> : vector<8x128xf32>
    %155 = tpu.matmul %154, %1, %cst_44 {dimension_numbers = #tpu.dot_dimension_numbers<[1], [0], [0], [1], [0, 0, 1, 1], [], []>} : vector<8x32xbf16>, vector<32x128xbf16>, vector<8x128xf32> -> vector<8x128xf32>
    %156 = arith.addf %153, %155 : vector<8x128xf32>
    %157 = vector.broadcast %2 : vector<1x128xf32> to vector<8x128xf32>
    %158 = arith.addf %156, %157 : vector<8x128xf32>
    %159 = vector.extract_strided_slice %158 {offsets = [0, 0], sizes = [8, 32], strides = [1, 1]} : vector<8x128xf32> to vector<8x32xf32>
    %160 = arith.negf %159 : vector<8x32xf32>
    %161 = math.exp %160 : vector<8x32xf32>
    %cst_45 = arith.constant 1.000000e+00 : f32
    %162 = vector.broadcast %cst_45 : f32 to vector<8x32xf32>
    %163 = arith.addf %162, %161 : vector<8x32xf32>
    %164 = arith.divf %162, %163 : vector<8x32xf32>
    %165 = vector.extract_strided_slice %158 {offsets = [0, 32], sizes = [8, 32], strides = [1, 1]} : vector<8x128xf32> to vector<8x32xf32>
    %166 = arith.negf %165 : vector<8x32xf32>
    %167 = math.exp %166 : vector<8x32xf32>
    %cst_46 = arith.constant 1.000000e+00 : f32
    %168 = vector.broadcast %cst_46 : f32 to vector<8x32xf32>
    %169 = arith.addf %168, %167 : vector<8x32xf32>
    %170 = arith.divf %168, %169 : vector<8x32xf32>
    %171 = vector.extract_strided_slice %158 {offsets = [0, 64], sizes = [8, 32], strides = [1, 1]} : vector<8x128xf32> to vector<8x32xf32>
    %172 = math.tanh %171 : vector<8x32xf32>
    %173 = vector.extract_strided_slice %158 {offsets = [0, 96], sizes = [8, 32], strides = [1, 1]} : vector<8x128xf32> to vector<8x32xf32>
    %174 = arith.negf %173 : vector<8x32xf32>
    %175 = math.exp %174 : vector<8x32xf32>
    %cst_47 = arith.constant 1.000000e+00 : f32
    %176 = vector.broadcast %cst_47 : f32 to vector<8x32xf32>
    %177 = arith.addf %176, %175 : vector<8x32xf32>
    %178 = arith.divf %176, %177 : vector<8x32xf32>
    %179 = arith.mulf %170, %144 : vector<8x32xf32>
    %180 = arith.mulf %164, %172 : vector<8x32xf32>
    %181 = arith.addf %179, %180 : vector<8x32xf32>
    %182 = math.tanh %181 : vector<8x32xf32>
    %183 = arith.mulf %178, %182 : vector<8x32xf32>
    %c0_48 = arith.constant 0 : index
    %c3_49 = arith.constant 3 : index
    %184 = vector.load %arg1[%c0_48, %c3_49] : memref<8x8xf32, #tpu.memory_space<vmem>>, vector<8x1xf32>
    %cst_50 = arith.constant 0.000000e+00 : f32
    %185 = vector.broadcast %cst_50 : f32 to vector<8x1xf32>
    %186 = arith.cmpf ogt, %184, %185 : vector<8x1xf32>
    %187 = vector.shape_cast %186 : vector<8x1xi1> to vector<8x1xi1>
    %188 = vector.broadcast %187 : vector<8x1xi1> to vector<8x32xi1>
    %189 = arith.select %188, %183, %141 : vector<8x32xi1>, vector<8x32xf32>
    %190 = vector.shape_cast %186 : vector<8x1xi1> to vector<8x1xi1>
    %191 = vector.broadcast %190 : vector<8x1xi1> to vector<8x32xi1>
    %192 = arith.select %191, %181, %144 : vector<8x32xi1>, vector<8x32xf32>
    %cst_51 = arith.constant 0.000000e+00 : f32
    %193 = vector.shape_cast %186 : vector<8x1xi1> to vector<8x1xi1>
    %194 = vector.broadcast %193 : vector<8x1xi1> to vector<8x32xi1>
    %195 = vector.broadcast %cst_51 : f32 to vector<8x32xf32>
    %196 = arith.select %194, %183, %195 : vector<8x32xi1>, vector<8x32xf32>
    %197 = arith.maximumf %149, %196 : vector<8x32xf32>
    %c0_52 = arith.constant 0 : index
    %c4 = arith.constant 4 : index
    %c0_53 = arith.constant 0 : index
    %198 = vector.load %arg0[%c0_52, %c4, %c0_53] : memref<8x8x32xf32, #tpu.memory_space<vmem>>, vector<8x1x32xf32>
    %199 = vector.shape_cast %198 : vector<8x1x32xf32> to vector<8x32xf32>
    %200 = arith.truncf %199 : vector<8x32xf32> to vector<8x32xbf16>
    %cst_54 = arith.constant dense<0.000000e+00> : vector<8x128xf32>
    %201 = tpu.matmul %200, %0, %cst_54 {dimension_numbers = #tpu.dot_dimension_numbers<[1], [0], [0], [1], [0, 0, 1, 1], [], []>} : vector<8x32xbf16>, vector<32x128xbf16>, vector<8x128xf32> -> vector<8x128xf32>
    %202 = arith.truncf %189 : vector<8x32xf32> to vector<8x32xbf16>
    %cst_55 = arith.constant dense<0.000000e+00> : vector<8x128xf32>
    %203 = tpu.matmul %202, %1, %cst_55 {dimension_numbers = #tpu.dot_dimension_numbers<[1], [0], [0], [1], [0, 0, 1, 1], [], []>} : vector<8x32xbf16>, vector<32x128xbf16>, vector<8x128xf32> -> vector<8x128xf32>
    %204 = arith.addf %201, %203 : vector<8x128xf32>
    %205 = vector.broadcast %2 : vector<1x128xf32> to vector<8x128xf32>
    %206 = arith.addf %204, %205 : vector<8x128xf32>
    %207 = vector.extract_strided_slice %206 {offsets = [0, 0], sizes = [8, 32], strides = [1, 1]} : vector<8x128xf32> to vector<8x32xf32>
    %208 = arith.negf %207 : vector<8x32xf32>
    %209 = math.exp %208 : vector<8x32xf32>
    %cst_56 = arith.constant 1.000000e+00 : f32
    %210 = vector.broadcast %cst_56 : f32 to vector<8x32xf32>
    %211 = arith.addf %210, %209 : vector<8x32xf32>
    %212 = arith.divf %210, %211 : vector<8x32xf32>
    %213 = vector.extract_strided_slice %206 {offsets = [0, 32], sizes = [8, 32], strides = [1, 1]} : vector<8x128xf32> to vector<8x32xf32>
    %214 = arith.negf %213 : vector<8x32xf32>
    %215 = math.exp %214 : vector<8x32xf32>
    %cst_57 = arith.constant 1.000000e+00 : f32
    %216 = vector.broadcast %cst_57 : f32 to vector<8x32xf32>
    %217 = arith.addf %216, %215 : vector<8x32xf32>
    %218 = arith.divf %216, %217 : vector<8x32xf32>
    %219 = vector.extract_strided_slice %206 {offsets = [0, 64], sizes = [8, 32], strides = [1, 1]} : vector<8x128xf32> to vector<8x32xf32>
    %220 = math.tanh %219 : vector<8x32xf32>
    %221 = vector.extract_strided_slice %206 {offsets = [0, 96], sizes = [8, 32], strides = [1, 1]} : vector<8x128xf32> to vector<8x32xf32>
    %222 = arith.negf %221 : vector<8x32xf32>
    %223 = math.exp %222 : vector<8x32xf32>
    %cst_58 = arith.constant 1.000000e+00 : f32
    %224 = vector.broadcast %cst_58 : f32 to vector<8x32xf32>
    %225 = arith.addf %224, %223 : vector<8x32xf32>
    %226 = arith.divf %224, %225 : vector<8x32xf32>
    %227 = arith.mulf %218, %192 : vector<8x32xf32>
    %228 = arith.mulf %212, %220 : vector<8x32xf32>
    %229 = arith.addf %227, %228 : vector<8x32xf32>
    %230 = math.tanh %229 : vector<8x32xf32>
    %231 = arith.mulf %226, %230 : vector<8x32xf32>
    %c0_59 = arith.constant 0 : index
    %c4_60 = arith.constant 4 : index
    %232 = vector.load %arg1[%c0_59, %c4_60] : memref<8x8xf32, #tpu.memory_space<vmem>>, vector<8x1xf32>
    %cst_61 = arith.constant 0.000000e+00 : f32
    %233 = vector.broadcast %cst_61 : f32 to vector<8x1xf32>
    %234 = arith.cmpf ogt, %232, %233 : vector<8x1xf32>
    %235 = vector.shape_cast %234 : vector<8x1xi1> to vector<8x1xi1>
    %236 = vector.broadcast %235 : vector<8x1xi1> to vector<8x32xi1>
    %237 = arith.select %236, %231, %189 : vector<8x32xi1>, vector<8x32xf32>
    %238 = vector.shape_cast %234 : vector<8x1xi1> to vector<8x1xi1>
    %239 = vector.broadcast %238 : vector<8x1xi1> to vector<8x32xi1>
    %240 = arith.select %239, %229, %192 : vector<8x32xi1>, vector<8x32xf32>
    %cst_62 = arith.constant 0.000000e+00 : f32
    %241 = vector.shape_cast %234 : vector<8x1xi1> to vector<8x1xi1>
    %242 = vector.broadcast %241 : vector<8x1xi1> to vector<8x32xi1>
    %243 = vector.broadcast %cst_62 : f32 to vector<8x32xf32>
    %244 = arith.select %242, %231, %243 : vector<8x32xi1>, vector<8x32xf32>
    %245 = arith.maximumf %197, %244 : vector<8x32xf32>
    %c0_63 = arith.constant 0 : index
    %c5 = arith.constant 5 : index
    %c0_64 = arith.constant 0 : index
    %246 = vector.load %arg0[%c0_63, %c5, %c0_64] : memref<8x8x32xf32, #tpu.memory_space<vmem>>, vector<8x1x32xf32>
    %247 = vector.shape_cast %246 : vector<8x1x32xf32> to vector<8x32xf32>
    %248 = arith.truncf %247 : vector<8x32xf32> to vector<8x32xbf16>
    %cst_65 = arith.constant dense<0.000000e+00> : vector<8x128xf32>
    %249 = tpu.matmul %248, %0, %cst_65 {dimension_numbers = #tpu.dot_dimension_numbers<[1], [0], [0], [1], [0, 0, 1, 1], [], []>} : vector<8x32xbf16>, vector<32x128xbf16>, vector<8x128xf32> -> vector<8x128xf32>
    %250 = arith.truncf %237 : vector<8x32xf32> to vector<8x32xbf16>
    %cst_66 = arith.constant dense<0.000000e+00> : vector<8x128xf32>
    %251 = tpu.matmul %250, %1, %cst_66 {dimension_numbers = #tpu.dot_dimension_numbers<[1], [0], [0], [1], [0, 0, 1, 1], [], []>} : vector<8x32xbf16>, vector<32x128xbf16>, vector<8x128xf32> -> vector<8x128xf32>
    %252 = arith.addf %249, %251 : vector<8x128xf32>
    %253 = vector.broadcast %2 : vector<1x128xf32> to vector<8x128xf32>
    %254 = arith.addf %252, %253 : vector<8x128xf32>
    %255 = vector.extract_strided_slice %254 {offsets = [0, 0], sizes = [8, 32], strides = [1, 1]} : vector<8x128xf32> to vector<8x32xf32>
    %256 = arith.negf %255 : vector<8x32xf32>
    %257 = math.exp %256 : vector<8x32xf32>
    %cst_67 = arith.constant 1.000000e+00 : f32
    %258 = vector.broadcast %cst_67 : f32 to vector<8x32xf32>
    %259 = arith.addf %258, %257 : vector<8x32xf32>
    %260 = arith.divf %258, %259 : vector<8x32xf32>
    %261 = vector.extract_strided_slice %254 {offsets = [0, 32], sizes = [8, 32], strides = [1, 1]} : vector<8x128xf32> to vector<8x32xf32>
    %262 = arith.negf %261 : vector<8x32xf32>
    %263 = math.exp %262 : vector<8x32xf32>
    %cst_68 = arith.constant 1.000000e+00 : f32
    %264 = vector.broadcast %cst_68 : f32 to vector<8x32xf32>
    %265 = arith.addf %264, %263 : vector<8x32xf32>
    %266 = arith.divf %264, %265 : vector<8x32xf32>
    %267 = vector.extract_strided_slice %254 {offsets = [0, 64], sizes = [8, 32], strides = [1, 1]} : vector<8x128xf32> to vector<8x32xf32>
    %268 = math.tanh %267 : vector<8x32xf32>
    %269 = vector.extract_strided_slice %254 {offsets = [0, 96], sizes = [8, 32], strides = [1, 1]} : vector<8x128xf32> to vector<8x32xf32>
    %270 = arith.negf %269 : vector<8x32xf32>
    %271 = math.exp %270 : vector<8x32xf32>
    %cst_69 = arith.constant 1.000000e+00 : f32
    %272 = vector.broadcast %cst_69 : f32 to vector<8x32xf32>
    %273 = arith.addf %272, %271 : vector<8x32xf32>
    %274 = arith.divf %272, %273 : vector<8x32xf32>
    %275 = arith.mulf %266, %240 : vector<8x32xf32>
    %276 = arith.mulf %260, %268 : vector<8x32xf32>
    %277 = arith.addf %275, %276 : vector<8x32xf32>
    %278 = math.tanh %277 : vector<8x32xf32>
    %279 = arith.mulf %274, %278 : vector<8x32xf32>
    %c0_70 = arith.constant 0 : index
    %c5_71 = arith.constant 5 : index
    %280 = vector.load %arg1[%c0_70, %c5_71] : memref<8x8xf32, #tpu.memory_space<vmem>>, vector<8x1xf32>
    %cst_72 = arith.constant 0.000000e+00 : f32
    %281 = vector.broadcast %cst_72 : f32 to vector<8x1xf32>
    %282 = arith.cmpf ogt, %280, %281 : vector<8x1xf32>
    %283 = vector.shape_cast %282 : vector<8x1xi1> to vector<8x1xi1>
    %284 = vector.broadcast %283 : vector<8x1xi1> to vector<8x32xi1>
    %285 = arith.select %284, %279, %237 : vector<8x32xi1>, vector<8x32xf32>
    %286 = vector.shape_cast %282 : vector<8x1xi1> to vector<8x1xi1>
    %287 = vector.broadcast %286 : vector<8x1xi1> to vector<8x32xi1>
    %288 = arith.select %287, %277, %240 : vector<8x32xi1>, vector<8x32xf32>
    %cst_73 = arith.constant 0.000000e+00 : f32
    %289 = vector.shape_cast %282 : vector<8x1xi1> to vector<8x1xi1>
    %290 = vector.broadcast %289 : vector<8x1xi1> to vector<8x32xi1>
    %291 = vector.broadcast %cst_73 : f32 to vector<8x32xf32>
    %292 = arith.select %290, %279, %291 : vector<8x32xi1>, vector<8x32xf32>
    %293 = arith.maximumf %245, %292 : vector<8x32xf32>
    %c0_74 = arith.constant 0 : index
    %c6 = arith.constant 6 : index
    %c0_75 = arith.constant 0 : index
    %294 = vector.load %arg0[%c0_74, %c6, %c0_75] : memref<8x8x32xf32, #tpu.memory_space<vmem>>, vector<8x1x32xf32>
    %295 = vector.shape_cast %294 : vector<8x1x32xf32> to vector<8x32xf32>
    %296 = arith.truncf %295 : vector<8x32xf32> to vector<8x32xbf16>
    %cst_76 = arith.constant dense<0.000000e+00> : vector<8x128xf32>
    %297 = tpu.matmul %296, %0, %cst_76 {dimension_numbers = #tpu.dot_dimension_numbers<[1], [0], [0], [1], [0, 0, 1, 1], [], []>} : vector<8x32xbf16>, vector<32x128xbf16>, vector<8x128xf32> -> vector<8x128xf32>
    %298 = arith.truncf %285 : vector<8x32xf32> to vector<8x32xbf16>
    %cst_77 = arith.constant dense<0.000000e+00> : vector<8x128xf32>
    %299 = tpu.matmul %298, %1, %cst_77 {dimension_numbers = #tpu.dot_dimension_numbers<[1], [0], [0], [1], [0, 0, 1, 1], [], []>} : vector<8x32xbf16>, vector<32x128xbf16>, vector<8x128xf32> -> vector<8x128xf32>
    %300 = arith.addf %297, %299 : vector<8x128xf32>
    %301 = vector.broadcast %2 : vector<1x128xf32> to vector<8x128xf32>
    %302 = arith.addf %300, %301 : vector<8x128xf32>
    %303 = vector.extract_strided_slice %302 {offsets = [0, 0], sizes = [8, 32], strides = [1, 1]} : vector<8x128xf32> to vector<8x32xf32>
    %304 = arith.negf %303 : vector<8x32xf32>
    %305 = math.exp %304 : vector<8x32xf32>
    %cst_78 = arith.constant 1.000000e+00 : f32
    %306 = vector.broadcast %cst_78 : f32 to vector<8x32xf32>
    %307 = arith.addf %306, %305 : vector<8x32xf32>
    %308 = arith.divf %306, %307 : vector<8x32xf32>
    %309 = vector.extract_strided_slice %302 {offsets = [0, 32], sizes = [8, 32], strides = [1, 1]} : vector<8x128xf32> to vector<8x32xf32>
    %310 = arith.negf %309 : vector<8x32xf32>
    %311 = math.exp %310 : vector<8x32xf32>
    %cst_79 = arith.constant 1.000000e+00 : f32
    %312 = vector.broadcast %cst_79 : f32 to vector<8x32xf32>
    %313 = arith.addf %312, %311 : vector<8x32xf32>
    %314 = arith.divf %312, %313 : vector<8x32xf32>
    %315 = vector.extract_strided_slice %302 {offsets = [0, 64], sizes = [8, 32], strides = [1, 1]} : vector<8x128xf32> to vector<8x32xf32>
    %316 = math.tanh %315 : vector<8x32xf32>
    %317 = vector.extract_strided_slice %302 {offsets = [0, 96], sizes = [8, 32], strides = [1, 1]} : vector<8x128xf32> to vector<8x32xf32>
    %318 = arith.negf %317 : vector<8x32xf32>
    %319 = math.exp %318 : vector<8x32xf32>
    %cst_80 = arith.constant 1.000000e+00 : f32
    %320 = vector.broadcast %cst_80 : f32 to vector<8x32xf32>
    %321 = arith.addf %320, %319 : vector<8x32xf32>
    %322 = arith.divf %320, %321 : vector<8x32xf32>
    %323 = arith.mulf %314, %288 : vector<8x32xf32>
    %324 = arith.mulf %308, %316 : vector<8x32xf32>
    %325 = arith.addf %323, %324 : vector<8x32xf32>
    %326 = math.tanh %325 : vector<8x32xf32>
    %327 = arith.mulf %322, %326 : vector<8x32xf32>
    %c0_81 = arith.constant 0 : index
    %c6_82 = arith.constant 6 : index
    %328 = vector.load %arg1[%c0_81, %c6_82] : memref<8x8xf32, #tpu.memory_space<vmem>>, vector<8x1xf32>
    %cst_83 = arith.constant 0.000000e+00 : f32
    %329 = vector.broadcast %cst_83 : f32 to vector<8x1xf32>
    %330 = arith.cmpf ogt, %328, %329 : vector<8x1xf32>
    %331 = vector.shape_cast %330 : vector<8x1xi1> to vector<8x1xi1>
    %332 = vector.broadcast %331 : vector<8x1xi1> to vector<8x32xi1>
    %333 = arith.select %332, %327, %285 : vector<8x32xi1>, vector<8x32xf32>
    %334 = vector.shape_cast %330 : vector<8x1xi1> to vector<8x1xi1>
    %335 = vector.broadcast %334 : vector<8x1xi1> to vector<8x32xi1>
    %336 = arith.select %335, %325, %288 : vector<8x32xi1>, vector<8x32xf32>
    %cst_84 = arith.constant 0.000000e+00 : f32
    %337 = vector.shape_cast %330 : vector<8x1xi1> to vector<8x1xi1>
    %338 = vector.broadcast %337 : vector<8x1xi1> to vector<8x32xi1>
    %339 = vector.broadcast %cst_84 : f32 to vector<8x32xf32>
    %340 = arith.select %338, %327, %339 : vector<8x32xi1>, vector<8x32xf32>
    %341 = arith.maximumf %293, %340 : vector<8x32xf32>
    %c0_85 = arith.constant 0 : index
    %c7 = arith.constant 7 : index
    %c0_86 = arith.constant 0 : index
    %342 = vector.load %arg0[%c0_85, %c7, %c0_86] : memref<8x8x32xf32, #tpu.memory_space<vmem>>, vector<8x1x32xf32>
    %343 = vector.shape_cast %342 : vector<8x1x32xf32> to vector<8x32xf32>
    %344 = arith.truncf %343 : vector<8x32xf32> to vector<8x32xbf16>
    %cst_87 = arith.constant dense<0.000000e+00> : vector<8x128xf32>
    %345 = tpu.matmul %344, %0, %cst_87 {dimension_numbers = #tpu.dot_dimension_numbers<[1], [0], [0], [1], [0, 0, 1, 1], [], []>} : vector<8x32xbf16>, vector<32x128xbf16>, vector<8x128xf32> -> vector<8x128xf32>
    %346 = arith.truncf %333 : vector<8x32xf32> to vector<8x32xbf16>
    %cst_88 = arith.constant dense<0.000000e+00> : vector<8x128xf32>
    %347 = tpu.matmul %346, %1, %cst_88 {dimension_numbers = #tpu.dot_dimension_numbers<[1], [0], [0], [1], [0, 0, 1, 1], [], []>} : vector<8x32xbf16>, vector<32x128xbf16>, vector<8x128xf32> -> vector<8x128xf32>
    %348 = arith.addf %345, %347 : vector<8x128xf32>
    %349 = vector.broadcast %2 : vector<1x128xf32> to vector<8x128xf32>
    %350 = arith.addf %348, %349 : vector<8x128xf32>
    %351 = vector.extract_strided_slice %350 {offsets = [0, 0], sizes = [8, 32], strides = [1, 1]} : vector<8x128xf32> to vector<8x32xf32>
    %352 = arith.negf %351 : vector<8x32xf32>
    %353 = math.exp %352 : vector<8x32xf32>
    %cst_89 = arith.constant 1.000000e+00 : f32
    %354 = vector.broadcast %cst_89 : f32 to vector<8x32xf32>
    %355 = arith.addf %354, %353 : vector<8x32xf32>
    %356 = arith.divf %354, %355 : vector<8x32xf32>
    %357 = vector.extract_strided_slice %350 {offsets = [0, 32], sizes = [8, 32], strides = [1, 1]} : vector<8x128xf32> to vector<8x32xf32>
    %358 = arith.negf %357 : vector<8x32xf32>
    %359 = math.exp %358 : vector<8x32xf32>
    %cst_90 = arith.constant 1.000000e+00 : f32
    %360 = vector.broadcast %cst_90 : f32 to vector<8x32xf32>
    %361 = arith.addf %360, %359 : vector<8x32xf32>
    %362 = arith.divf %360, %361 : vector<8x32xf32>
    %363 = vector.extract_strided_slice %350 {offsets = [0, 64], sizes = [8, 32], strides = [1, 1]} : vector<8x128xf32> to vector<8x32xf32>
    %364 = math.tanh %363 : vector<8x32xf32>
    %365 = vector.extract_strided_slice %350 {offsets = [0, 96], sizes = [8, 32], strides = [1, 1]} : vector<8x128xf32> to vector<8x32xf32>
    %366 = arith.negf %365 : vector<8x32xf32>
    %367 = math.exp %366 : vector<8x32xf32>
    %cst_91 = arith.constant 1.000000e+00 : f32
    %368 = vector.broadcast %cst_91 : f32 to vector<8x32xf32>
    %369 = arith.addf %368, %367 : vector<8x32xf32>
    %370 = arith.divf %368, %369 : vector<8x32xf32>
    %371 = arith.mulf %362, %336 : vector<8x32xf32>
    %372 = arith.mulf %356, %364 : vector<8x32xf32>
    %373 = arith.addf %371, %372 : vector<8x32xf32>
    %374 = math.tanh %373 : vector<8x32xf32>
    %375 = arith.mulf %370, %374 : vector<8x32xf32>
    %c0_92 = arith.constant 0 : index
    %c7_93 = arith.constant 7 : index
    %376 = vector.load %arg1[%c0_92, %c7_93] : memref<8x8xf32, #tpu.memory_space<vmem>>, vector<8x1xf32>
    %cst_94 = arith.constant 0.000000e+00 : f32
    %377 = vector.broadcast %cst_94 : f32 to vector<8x1xf32>
    %378 = arith.cmpf ogt, %376, %377 : vector<8x1xf32>
    %cst_95 = arith.constant 0.000000e+00 : f32
    %379 = vector.shape_cast %378 : vector<8x1xi1> to vector<8x1xi1>
    %380 = vector.broadcast %379 : vector<8x1xi1> to vector<8x32xi1>
    %381 = vector.broadcast %cst_95 : f32 to vector<8x32xf32>
    %382 = arith.select %380, %375, %381 : vector<8x32xi1>, vector<8x32xf32>
    %383 = arith.maximumf %341, %382 : vector<8x32xf32>
    %cst_96 = arith.constant 0.000000e+00 : f32
    %384 = vector.broadcast %cst_96 : f32 to vector<8x8x128xf32>
    %c0_97 = arith.constant 0 : index
    %c0_98 = arith.constant 0 : index
    %c0_99 = arith.constant 0 : index
    %385 = vector.load %arg9[%c0_97, %c0_98, %c0_99] : memref<8x8x128xf32, #tpu.memory_space<vmem>>, vector<8x8x128xf32>
    tpu.vector_store %arg9[%c0_97, %c0_98, %c0_99], %384 {strides = array<i32>} : memref<8x8x128xf32, #tpu.memory_space<vmem>>, vector<8x8x128xf32>,
    %cst_100 = arith.constant 0.000000e+00 : f32
    %386 = vector.broadcast %cst_100 : f32 to vector<8x8xf32>
    %c0_101 = arith.constant 0 : index
    %c0_102 = arith.constant 0 : index
    %387 = vector.load %arg10[%c0_101, %c0_102] : memref<8x8xf32, #tpu.memory_space<vmem>>, vector<8x8xf32>
    tpu.vector_store %arg10[%c0_101, %c0_102], %386 {strides = array<i32>} : memref<8x8xf32, #tpu.memory_space<vmem>>, vector<8x8xf32>,
    %c0_103 = arith.constant 0 : index
    %c0_104 = arith.constant 0 : index
    %388 = vector.load %arg6[%c0_103, %c0_104] : memref<32x128xbf16, #tpu.memory_space<vmem>>, vector<32x128xbf16>
    %c0_105 = arith.constant 0 : index
    %c0_106 = arith.constant 0 : index
    %389 = vector.load %arg7[%c0_105, %c0_106] : memref<1x128xf32, #tpu.memory_space<vmem>>, vector<1x128xf32>
    %c0_107 = arith.constant 0 : index
    %c0_108 = arith.constant 0 : index
    %390 = vector.load %arg2[%c0_107, %c0_108] : memref<128x32xbf16, #tpu.memory_space<vmem>>, vector<128x32xbf16>
    %391 = tpu.iota {dimensions = array<i32: 1>} : vector<8x128xi32>
    %cst_109 = arith.constant 0.000000e+00 : f32
    %392 = vector.broadcast %cst_109 : f32 to vector<8x32xf32>
    %c0_110 = arith.constant 0 : index
    %c0_111 = arith.constant 0 : index
    %393 = vector.load %arg8[%c0_110, %c0_111] : memref<8x32xbf16, #tpu.memory_space<vmem>>, vector<8x32xbf16>
    %394 = arith.extf %393 : vector<8x32xbf16> to vector<8x32xf32>
    %395 = arith.truncf %394 : vector<8x32xf32> to vector<8x32xbf16>
    %cst_112 = arith.constant dense<0.000000e+00> : vector<8x128xf32>
    %396 = tpu.matmul %395, %0, %cst_112 {dimension_numbers = #tpu.dot_dimension_numbers<[1], [0], [0], [1], [0, 0, 1, 1], [], []>} : vector<8x32xbf16>, vector<32x128xbf16>, vector<8x128xf32> -> vector<8x128xf32>
    %397 = arith.truncf %383 : vector<8x32xf32> to vector<8x32xbf16>
    %cst_113 = arith.constant dense<0.000000e+00> : vector<8x128xf32>
    %398 = tpu.matmul %397, %1, %cst_113 {dimension_numbers = #tpu.dot_dimension_numbers<[1], [0], [0], [1], [0, 0, 1, 1], [], []>} : vector<8x32xbf16>, vector<32x128xbf16>, vector<8x128xf32> -> vector<8x128xf32>
    %399 = arith.addf %396, %398 : vector<8x128xf32>
    %400 = vector.broadcast %2 : vector<1x128xf32> to vector<8x128xf32>
    %401 = arith.addf %399, %400 : vector<8x128xf32>
    %402 = vector.extract_strided_slice %401 {offsets = [0, 0], sizes = [8, 32], strides = [1, 1]} : vector<8x128xf32> to vector<8x32xf32>
    %403 = arith.negf %402 : vector<8x32xf32>
    %404 = math.exp %403 : vector<8x32xf32>
    %cst_114 = arith.constant 1.000000e+00 : f32
    %405 = vector.broadcast %cst_114 : f32 to vector<8x32xf32>
    %406 = arith.addf %405, %404 : vector<8x32xf32>
    %407 = arith.divf %405, %406 : vector<8x32xf32>
    %408 = vector.extract_strided_slice %401 {offsets = [0, 32], sizes = [8, 32], strides = [1, 1]} : vector<8x128xf32> to vector<8x32xf32>
    %409 = arith.negf %408 : vector<8x32xf32>
    %410 = math.exp %409 : vector<8x32xf32>
    %cst_115 = arith.constant 1.000000e+00 : f32
    %411 = vector.broadcast %cst_115 : f32 to vector<8x32xf32>
    %412 = arith.addf %411, %410 : vector<8x32xf32>
    %413 = arith.divf %411, %412 : vector<8x32xf32>
    %414 = vector.extract_strided_slice %401 {offsets = [0, 64], sizes = [8, 32], strides = [1, 1]} : vector<8x128xf32> to vector<8x32xf32>
    %415 = math.tanh %414 : vector<8x32xf32>
    %416 = vector.extract_strided_slice %401 {offsets = [0, 96], sizes = [8, 32], strides = [1, 1]} : vector<8x128xf32> to vector<8x32xf32>
    %417 = arith.negf %416 : vector<8x32xf32>
    %418 = math.exp %417 : vector<8x32xf32>
    %cst_116 = arith.constant 1.000000e+00 : f32
    %419 = vector.broadcast %cst_116 : f32 to vector<8x32xf32>
    %420 = arith.addf %419, %418 : vector<8x32xf32>
    %421 = arith.divf %419, %420 : vector<8x32xf32>
    %422 = arith.mulf %413, %392 : vector<8x32xf32>
    %423 = arith.mulf %407, %415 : vector<8x32xf32>
    %424 = arith.addf %422, %423 : vector<8x32xf32>
    %425 = math.tanh %424 : vector<8x32xf32>
    %426 = arith.mulf %421, %425 : vector<8x32xf32>
    %427 = arith.truncf %426 : vector<8x32xf32> to vector<8x32xbf16>
    %cst_117 = arith.constant dense<0.000000e+00> : vector<8x128xf32>
    %428 = tpu.matmul %427, %388, %cst_117 {dimension_numbers = #tpu.dot_dimension_numbers<[1], [0], [0], [1], [0, 0, 1, 1], [], []>} : vector<8x32xbf16>, vector<32x128xbf16>, vector<8x128xf32> -> vector<8x128xf32>
    %429 = vector.broadcast %389 : vector<1x128xf32> to vector<8x128xf32>
    %430 = arith.addf %428, %429 : vector<8x128xf32>
    %c0_118 = arith.constant 0 : index
    %c1_119 = arith.constant 1 : index
    %c0_120 = arith.constant 0 : index
    %431 = vector.load %arg9[%c0_118, %c1_119, %c0_120] : memref<8x8x128xf32, #tpu.memory_space<vmem>>, vector<8x1x128xf32>
    %432 = vector.shape_cast %431 : vector<8x1x128xf32> to vector<8x128xf32>
    %433 = vector.shape_cast %430 : vector<8x128xf32> to vector<8x1x128xf32>
    tpu.vector_store %arg9[%c0_118, %c1_119, %c0_120], %433 {strides = array<i32>} : memref<8x8x128xf32, #tpu.memory_space<vmem>>, vector<8x1x128xf32>,
    %cst_121 = arith.constant dense<0xFF800000> : vector<8xf32>
    %434 = vector.multi_reduction <maximumf>, %430, %cst_121 [1] : vector<8x128xf32> to vector<8xf32>
    %435 = vector.shape_cast %434 : vector<8xf32> to vector<8x1xf32>
    %436 = vector.broadcast %435 : vector<8x1xf32> to vector<8x128xf32>
    %437 = arith.cmpf oeq, %430, %436 : vector<8x128xf32>
    %c128_i32 = arith.constant 128 : i32
    %438 = vector.broadcast %c128_i32 : i32 to vector<8x128xi32>
    %439 = arith.select %437, %391, %438 : vector<8x128xi1>, vector<8x128xi32>
    %cst_122 = arith.constant dense<2147483647> : vector<8xi32>
    %440 = vector.multi_reduction <minsi>, %439, %cst_122 [1] : vector<8x128xi32> to vector<8xi32>
    %441 = arith.sitofp %440 : vector<8xi32> to vector<8xf32>
    %442 = vector.shape_cast %441 : vector<8xf32> to vector<8x1xf32>
    %c0_123 = arith.constant 0 : index
    %c1_124 = arith.constant 1 : index
    %443 = vector.load %arg10[%c0_123, %c1_124] : memref<8x8xf32, #tpu.memory_space<vmem>>, vector<8x1xf32>
    tpu.vector_store %arg10[%c0_123, %c1_124], %442 {strides = array<i32>} : memref<8x8xf32, #tpu.memory_space<vmem>>, vector<8x1xf32>,
    %444 = vector.shape_cast %440 : vector<8xi32> to vector<8x1xi32>
    %445 = vector.broadcast %444 : vector<8x1xi32> to vector<8x128xi32>
    %446 = arith.cmpi eq, %391, %445 : vector<8x128xi32>
    %447 = arith.extui %446 : vector<8x128xi1> to vector<8x128xi32>
    %448 = arith.sitofp %447 : vector<8x128xi32> to vector<8x128xf32>
    %449 = arith.truncf %448 : vector<8x128xf32> to vector<8x128xbf16>
    %cst_125 = arith.constant dense<0.000000e+00> : vector<8x32xf32>
    %450 = tpu.matmul %449, %390, %cst_125 {dimension_numbers = #tpu.dot_dimension_numbers<[1], [0], [0], [1], [0, 0, 1, 1], [], []>} : vector<8x128xbf16>, vector<128x32xbf16>, vector<8x32xf32> -> vector<8x32xf32>
    %451 = arith.truncf %450 : vector<8x32xf32> to vector<8x32xbf16>
    %cst_126 = arith.constant dense<0.000000e+00> : vector<8x128xf32>
    %452 = tpu.matmul %451, %0, %cst_126 {dimension_numbers = #tpu.dot_dimension_numbers<[1], [0], [0], [1], [0, 0, 1, 1], [], []>} : vector<8x32xbf16>, vector<32x128xbf16>, vector<8x128xf32> -> vector<8x128xf32>
    %453 = arith.truncf %426 : vector<8x32xf32> to vector<8x32xbf16>
    %cst_127 = arith.constant dense<0.000000e+00> : vector<8x128xf32>
    %454 = tpu.matmul %453, %1, %cst_127 {dimension_numbers = #tpu.dot_dimension_numbers<[1], [0], [0], [1], [0, 0, 1, 1], [], []>} : vector<8x32xbf16>, vector<32x128xbf16>, vector<8x128xf32> -> vector<8x128xf32>
    %455 = arith.addf %452, %454 : vector<8x128xf32>
    %456 = vector.broadcast %2 : vector<1x128xf32> to vector<8x128xf32>
    %457 = arith.addf %455, %456 : vector<8x128xf32>
    %458 = vector.extract_strided_slice %457 {offsets = [0, 0], sizes = [8, 32], strides = [1, 1]} : vector<8x128xf32> to vector<8x32xf32>
    %459 = arith.negf %458 : vector<8x32xf32>
    %460 = math.exp %459 : vector<8x32xf32>
    %cst_128 = arith.constant 1.000000e+00 : f32
    %461 = vector.broadcast %cst_128 : f32 to vector<8x32xf32>
    %462 = arith.addf %461, %460 : vector<8x32xf32>
    %463 = arith.divf %461, %462 : vector<8x32xf32>
    %464 = vector.extract_strided_slice %457 {offsets = [0, 32], sizes = [8, 32], strides = [1, 1]} : vector<8x128xf32> to vector<8x32xf32>
    %465 = arith.negf %464 : vector<8x32xf32>
    %466 = math.exp %465 : vector<8x32xf32>
    %cst_129 = arith.constant 1.000000e+00 : f32
    %467 = vector.broadcast %cst_129 : f32 to vector<8x32xf32>
    %468 = arith.addf %467, %466 : vector<8x32xf32>
    %469 = arith.divf %467, %468 : vector<8x32xf32>
    %470 = vector.extract_strided_slice %457 {offsets = [0, 64], sizes = [8, 32], strides = [1, 1]} : vector<8x128xf32> to vector<8x32xf32>
    %471 = math.tanh %470 : vector<8x32xf32>
    %472 = vector.extract_strided_slice %457 {offsets = [0, 96], sizes = [8, 32], strides = [1, 1]} : vector<8x128xf32> to vector<8x32xf32>
    %473 = arith.negf %472 : vector<8x32xf32>
    %474 = math.exp %473 : vector<8x32xf32>
    %cst_130 = arith.constant 1.000000e+00 : f32
    %475 = vector.broadcast %cst_130 : f32 to vector<8x32xf32>
    %476 = arith.addf %475, %474 : vector<8x32xf32>
    %477 = arith.divf %475, %476 : vector<8x32xf32>
    %478 = arith.mulf %469, %424 : vector<8x32xf32>
    %479 = arith.mulf %463, %471 : vector<8x32xf32>
    %480 = arith.addf %478, %479 : vector<8x32xf32>
    %481 = math.tanh %480 : vector<8x32xf32>
    %482 = arith.mulf %477, %481 : vector<8x32xf32>
    %483 = arith.truncf %482 : vector<8x32xf32> to vector<8x32xbf16>
    %cst_131 = arith.constant dense<0.000000e+00> : vector<8x128xf32>
    %484 = tpu.matmul %483, %388, %cst_131 {dimension_numbers = #tpu.dot_dimension_numbers<[1], [0], [0], [1], [0, 0, 1, 1], [], []>} : vector<8x32xbf16>, vector<32x128xbf16>, vector<8x128xf32> -> vector<8x128xf32>
    %485 = vector.broadcast %389 : vector<1x128xf32> to vector<8x128xf32>
    %486 = arith.addf %484, %485 : vector<8x128xf32>
    %c0_132 = arith.constant 0 : index
    %c2_133 = arith.constant 2 : index
    %c0_134 = arith.constant 0 : index
    %487 = vector.load %arg9[%c0_132, %c2_133, %c0_134] : memref<8x8x128xf32, #tpu.memory_space<vmem>>, vector<8x1x128xf32>
    %488 = vector.shape_cast %487 : vector<8x1x128xf32> to vector<8x128xf32>
    %489 = vector.shape_cast %486 : vector<8x128xf32> to vector<8x1x128xf32>
    tpu.vector_store %arg9[%c0_132, %c2_133, %c0_134], %489 {strides = array<i32>} : memref<8x8x128xf32, #tpu.memory_space<vmem>>, vector<8x1x128xf32>,
    %cst_135 = arith.constant dense<0xFF800000> : vector<8xf32>
    %490 = vector.multi_reduction <maximumf>, %486, %cst_135 [1] : vector<8x128xf32> to vector<8xf32>
    %491 = vector.shape_cast %490 : vector<8xf32> to vector<8x1xf32>
    %492 = vector.broadcast %491 : vector<8x1xf32> to vector<8x128xf32>
    %493 = arith.cmpf oeq, %486, %492 : vector<8x128xf32>
    %c128_i32_136 = arith.constant 128 : i32
    %494 = vector.broadcast %c128_i32_136 : i32 to vector<8x128xi32>
    %495 = arith.select %493, %391, %494 : vector<8x128xi1>, vector<8x128xi32>
    %cst_137 = arith.constant dense<2147483647> : vector<8xi32>
    %496 = vector.multi_reduction <minsi>, %495, %cst_137 [1] : vector<8x128xi32> to vector<8xi32>
    %497 = arith.sitofp %496 : vector<8xi32> to vector<8xf32>
    %498 = vector.shape_cast %497 : vector<8xf32> to vector<8x1xf32>
    %c0_138 = arith.constant 0 : index
    %c2_139 = arith.constant 2 : index
    %499 = vector.load %arg10[%c0_138, %c2_139] : memref<8x8xf32, #tpu.memory_space<vmem>>, vector<8x1xf32>
    tpu.vector_store %arg10[%c0_138, %c2_139], %498 {strides = array<i32>} : memref<8x8xf32, #tpu.memory_space<vmem>>, vector<8x1xf32>,
    %500 = vector.shape_cast %496 : vector<8xi32> to vector<8x1xi32>
    %501 = vector.broadcast %500 : vector<8x1xi32> to vector<8x128xi32>
    %502 = arith.cmpi eq, %391, %501 : vector<8x128xi32>
    %503 = arith.extui %502 : vector<8x128xi1> to vector<8x128xi32>
    %504 = arith.sitofp %503 : vector<8x128xi32> to vector<8x128xf32>
    %505 = arith.truncf %504 : vector<8x128xf32> to vector<8x128xbf16>
    %cst_140 = arith.constant dense<0.000000e+00> : vector<8x32xf32>
    %506 = tpu.matmul %505, %390, %cst_140 {dimension_numbers = #tpu.dot_dimension_numbers<[1], [0], [0], [1], [0, 0, 1, 1], [], []>} : vector<8x128xbf16>, vector<128x32xbf16>, vector<8x32xf32> -> vector<8x32xf32>
    %507 = arith.truncf %506 : vector<8x32xf32> to vector<8x32xbf16>
    %cst_141 = arith.constant dense<0.000000e+00> : vector<8x128xf32>
    %508 = tpu.matmul %507, %0, %cst_141 {dimension_numbers = #tpu.dot_dimension_numbers<[1], [0], [0], [1], [0, 0, 1, 1], [], []>} : vector<8x32xbf16>, vector<32x128xbf16>, vector<8x128xf32> -> vector<8x128xf32>
    %509 = arith.truncf %482 : vector<8x32xf32> to vector<8x32xbf16>
    %cst_142 = arith.constant dense<0.000000e+00> : vector<8x128xf32>
    %510 = tpu.matmul %509, %1, %cst_142 {dimension_numbers = #tpu.dot_dimension_numbers<[1], [0], [0], [1], [0, 0, 1, 1], [], []>} : vector<8x32xbf16>, vector<32x128xbf16>, vector<8x128xf32> -> vector<8x128xf32>
    %511 = arith.addf %508, %510 : vector<8x128xf32>
    %512 = vector.broadcast %2 : vector<1x128xf32> to vector<8x128xf32>
    %513 = arith.addf %511, %512 : vector<8x128xf32>
    %514 = vector.extract_strided_slice %513 {offsets = [0, 0], sizes = [8, 32], strides = [1, 1]} : vector<8x128xf32> to vector<8x32xf32>
    %515 = arith.negf %514 : vector<8x32xf32>
    %516 = math.exp %515 : vector<8x32xf32>
    %cst_143 = arith.constant 1.000000e+00 : f32
    %517 = vector.broadcast %cst_143 : f32 to vector<8x32xf32>
    %518 = arith.addf %517, %516 : vector<8x32xf32>
    %519 = arith.divf %517, %518 : vector<8x32xf32>
    %520 = vector.extract_strided_slice %513 {offsets = [0, 32], sizes = [8, 32], strides = [1, 1]} : vector<8x128xf32> to vector<8x32xf32>
    %521 = arith.negf %520 : vector<8x32xf32>
    %522 = math.exp %521 : vector<8x32xf32>
    %cst_144 = arith.constant 1.000000e+00 : f32
    %523 = vector.broadcast %cst_144 : f32 to vector<8x32xf32>
    %524 = arith.addf %523, %522 : vector<8x32xf32>
    %525 = arith.divf %523, %524 : vector<8x32xf32>
    %526 = vector.extract_strided_slice %513 {offsets = [0, 64], sizes = [8, 32], strides = [1, 1]} : vector<8x128xf32> to vector<8x32xf32>
    %527 = math.tanh %526 : vector<8x32xf32>
    %528 = vector.extract_strided_slice %513 {offsets = [0, 96], sizes = [8, 32], strides = [1, 1]} : vector<8x128xf32> to vector<8x32xf32>
    %529 = arith.negf %528 : vector<8x32xf32>
    %530 = math.exp %529 : vector<8x32xf32>
    %cst_145 = arith.constant 1.000000e+00 : f32
    %531 = vector.broadcast %cst_145 : f32 to vector<8x32xf32>
    %532 = arith.addf %531, %530 : vector<8x32xf32>
    %533 = arith.divf %531, %532 : vector<8x32xf32>
    %534 = arith.mulf %525, %480 : vector<8x32xf32>
    %535 = arith.mulf %519, %527 : vector<8x32xf32>
    %536 = arith.addf %534, %535 : vector<8x32xf32>
    %537 = math.tanh %536 : vector<8x32xf32>
    %538 = arith.mulf %533, %537 : vector<8x32xf32>
    %539 = arith.truncf %538 : vector<8x32xf32> to vector<8x32xbf16>
    %cst_146 = arith.constant dense<0.000000e+00> : vector<8x128xf32>
    %540 = tpu.matmul %539, %388, %cst_146 {dimension_numbers = #tpu.dot_dimension_numbers<[1], [0], [0], [1], [0, 0, 1, 1], [], []>} : vector<8x32xbf16>, vector<32x128xbf16>, vector<8x128xf32> -> vector<8x128xf32>
    %541 = vector.broadcast %389 : vector<1x128xf32> to vector<8x128xf32>
    %542 = arith.addf %540, %541 : vector<8x128xf32>
    %c0_147 = arith.constant 0 : index
    %c3_148 = arith.constant 3 : index
    %c0_149 = arith.constant 0 : index
    %543 = vector.load %arg9[%c0_147, %c3_148, %c0_149] : memref<8x8x128xf32, #tpu.memory_space<vmem>>, vector<8x1x128xf32>
    %544 = vector.shape_cast %543 : vector<8x1x128xf32> to vector<8x128xf32>
    %545 = vector.shape_cast %542 : vector<8x128xf32> to vector<8x1x128xf32>
    tpu.vector_store %arg9[%c0_147, %c3_148, %c0_149], %545 {strides = array<i32>} : memref<8x8x128xf32, #tpu.memory_space<vmem>>, vector<8x1x128xf32>,
    %cst_150 = arith.constant dense<0xFF800000> : vector<8xf32>
    %546 = vector.multi_reduction <maximumf>, %542, %cst_150 [1] : vector<8x128xf32> to vector<8xf32>
    %547 = vector.shape_cast %546 : vector<8xf32> to vector<8x1xf32>
    %548 = vector.broadcast %547 : vector<8x1xf32> to vector<8x128xf32>
    %549 = arith.cmpf oeq, %542, %548 : vector<8x128xf32>
    %c128_i32_151 = arith.constant 128 : i32
    %550 = vector.broadcast %c128_i32_151 : i32 to vector<8x128xi32>
    %551 = arith.select %549, %391, %550 : vector<8x128xi1>, vector<8x128xi32>
    %cst_152 = arith.constant dense<2147483647> : vector<8xi32>
    %552 = vector.multi_reduction <minsi>, %551, %cst_152 [1] : vector<8x128xi32> to vector<8xi32>
    %553 = arith.sitofp %552 : vector<8xi32> to vector<8xf32>
    %554 = vector.shape_cast %553 : vector<8xf32> to vector<8x1xf32>
    %c0_153 = arith.constant 0 : index
    %c3_154 = arith.constant 3 : index
    %555 = vector.load %arg10[%c0_153, %c3_154] : memref<8x8xf32, #tpu.memory_space<vmem>>, vector<8x1xf32>
    tpu.vector_store %arg10[%c0_153, %c3_154], %554 {strides = array<i32>} : memref<8x8xf32, #tpu.memory_space<vmem>>, vector<8x1xf32>,
    %556 = vector.shape_cast %552 : vector<8xi32> to vector<8x1xi32>
    %557 = vector.broadcast %556 : vector<8x1xi32> to vector<8x128xi32>
    %558 = arith.cmpi eq, %391, %557 : vector<8x128xi32>
    %559 = arith.extui %558 : vector<8x128xi1> to vector<8x128xi32>
    %560 = arith.sitofp %559 : vector<8x128xi32> to vector<8x128xf32>
    %561 = arith.truncf %560 : vector<8x128xf32> to vector<8x128xbf16>
    %cst_155 = arith.constant dense<0.000000e+00> : vector<8x32xf32>
    %562 = tpu.matmul %561, %390, %cst_155 {dimension_numbers = #tpu.dot_dimension_numbers<[1], [0], [0], [1], [0, 0, 1, 1], [], []>} : vector<8x128xbf16>, vector<128x32xbf16>, vector<8x32xf32> -> vector<8x32xf32>
    %563 = arith.truncf %562 : vector<8x32xf32> to vector<8x32xbf16>
    %cst_156 = arith.constant dense<0.000000e+00> : vector<8x128xf32>
    %564 = tpu.matmul %563, %0, %cst_156 {dimension_numbers = #tpu.dot_dimension_numbers<[1], [0], [0], [1], [0, 0, 1, 1], [], []>} : vector<8x32xbf16>, vector<32x128xbf16>, vector<8x128xf32> -> vector<8x128xf32>
    %565 = arith.truncf %538 : vector<8x32xf32> to vector<8x32xbf16>
    %cst_157 = arith.constant dense<0.000000e+00> : vector<8x128xf32>
    %566 = tpu.matmul %565, %1, %cst_157 {dimension_numbers = #tpu.dot_dimension_numbers<[1], [0], [0], [1], [0, 0, 1, 1], [], []>} : vector<8x32xbf16>, vector<32x128xbf16>, vector<8x128xf32> -> vector<8x128xf32>
    %567 = arith.addf %564, %566 : vector<8x128xf32>
    %568 = vector.broadcast %2 : vector<1x128xf32> to vector<8x128xf32>
    %569 = arith.addf %567, %568 : vector<8x128xf32>
    %570 = vector.extract_strided_slice %569 {offsets = [0, 0], sizes = [8, 32], strides = [1, 1]} : vector<8x128xf32> to vector<8x32xf32>
    %571 = arith.negf %570 : vector<8x32xf32>
    %572 = math.exp %571 : vector<8x32xf32>
    %cst_158 = arith.constant 1.000000e+00 : f32
    %573 = vector.broadcast %cst_158 : f32 to vector<8x32xf32>
    %574 = arith.addf %573, %572 : vector<8x32xf32>
    %575 = arith.divf %573, %574 : vector<8x32xf32>
    %576 = vector.extract_strided_slice %569 {offsets = [0, 32], sizes = [8, 32], strides = [1, 1]} : vector<8x128xf32> to vector<8x32xf32>
    %577 = arith.negf %576 : vector<8x32xf32>
    %578 = math.exp %577 : vector<8x32xf32>
    %cst_159 = arith.constant 1.000000e+00 : f32
    %579 = vector.broadcast %cst_159 : f32 to vector<8x32xf32>
    %580 = arith.addf %579, %578 : vector<8x32xf32>
    %581 = arith.divf %579, %580 : vector<8x32xf32>
    %582 = vector.extract_strided_slice %569 {offsets = [0, 64], sizes = [8, 32], strides = [1, 1]} : vector<8x128xf32> to vector<8x32xf32>
    %583 = math.tanh %582 : vector<8x32xf32>
    %584 = vector.extract_strided_slice %569 {offsets = [0, 96], sizes = [8, 32], strides = [1, 1]} : vector<8x128xf32> to vector<8x32xf32>
    %585 = arith.negf %584 : vector<8x32xf32>
    %586 = math.exp %585 : vector<8x32xf32>
    %cst_160 = arith.constant 1.000000e+00 : f32
    %587 = vector.broadcast %cst_160 : f32 to vector<8x32xf32>
    %588 = arith.addf %587, %586 : vector<8x32xf32>
    %589 = arith.divf %587, %588 : vector<8x32xf32>
    %590 = arith.mulf %581, %536 : vector<8x32xf32>
    %591 = arith.mulf %575, %583 : vector<8x32xf32>
    %592 = arith.addf %590, %591 : vector<8x32xf32>
    %593 = math.tanh %592 : vector<8x32xf32>
    %594 = arith.mulf %589, %593 : vector<8x32xf32>
    %595 = arith.truncf %594 : vector<8x32xf32> to vector<8x32xbf16>
    %cst_161 = arith.constant dense<0.000000e+00> : vector<8x128xf32>
    %596 = tpu.matmul %595, %388, %cst_161 {dimension_numbers = #tpu.dot_dimension_numbers<[1], [0], [0], [1], [0, 0, 1, 1], [], []>} : vector<8x32xbf16>, vector<32x128xbf16>, vector<8x128xf32> -> vector<8x128xf32>
    %597 = vector.broadcast %389 : vector<1x128xf32> to vector<8x128xf32>
    %598 = arith.addf %596, %597 : vector<8x128xf32>
    %c0_162 = arith.constant 0 : index
    %c4_163 = arith.constant 4 : index
    %c0_164 = arith.constant 0 : index
    %599 = vector.load %arg9[%c0_162, %c4_163, %c0_164] : memref<8x8x128xf32, #tpu.memory_space<vmem>>, vector<8x1x128xf32>
    %600 = vector.shape_cast %599 : vector<8x1x128xf32> to vector<8x128xf32>
    %601 = vector.shape_cast %598 : vector<8x128xf32> to vector<8x1x128xf32>
    tpu.vector_store %arg9[%c0_162, %c4_163, %c0_164], %601 {strides = array<i32>} : memref<8x8x128xf32, #tpu.memory_space<vmem>>, vector<8x1x128xf32>,
    %cst_165 = arith.constant dense<0xFF800000> : vector<8xf32>
    %602 = vector.multi_reduction <maximumf>, %598, %cst_165 [1] : vector<8x128xf32> to vector<8xf32>
    %603 = vector.shape_cast %602 : vector<8xf32> to vector<8x1xf32>
    %604 = vector.broadcast %603 : vector<8x1xf32> to vector<8x128xf32>
    %605 = arith.cmpf oeq, %598, %604 : vector<8x128xf32>
    %c128_i32_166 = arith.constant 128 : i32
    %606 = vector.broadcast %c128_i32_166 : i32 to vector<8x128xi32>
    %607 = arith.select %605, %391, %606 : vector<8x128xi1>, vector<8x128xi32>
    %cst_167 = arith.constant dense<2147483647> : vector<8xi32>
    %608 = vector.multi_reduction <minsi>, %607, %cst_167 [1] : vector<8x128xi32> to vector<8xi32>
    %609 = arith.sitofp %608 : vector<8xi32> to vector<8xf32>
    %610 = vector.shape_cast %609 : vector<8xf32> to vector<8x1xf32>
    %c0_168 = arith.constant 0 : index
    %c4_169 = arith.constant 4 : index
    %611 = vector.load %arg10[%c0_168, %c4_169] : memref<8x8xf32, #tpu.memory_space<vmem>>, vector<8x1xf32>
    tpu.vector_store %arg10[%c0_168, %c4_169], %610 {strides = array<i32>} : memref<8x8xf32, #tpu.memory_space<vmem>>, vector<8x1xf32>,
    %612 = vector.shape_cast %608 : vector<8xi32> to vector<8x1xi32>
    %613 = vector.broadcast %612 : vector<8x1xi32> to vector<8x128xi32>
    %614 = arith.cmpi eq, %391, %613 : vector<8x128xi32>
    %615 = arith.extui %614 : vector<8x128xi1> to vector<8x128xi32>
    %616 = arith.sitofp %615 : vector<8x128xi32> to vector<8x128xf32>
    %617 = arith.truncf %616 : vector<8x128xf32> to vector<8x128xbf16>
    %cst_170 = arith.constant dense<0.000000e+00> : vector<8x32xf32>
    %618 = tpu.matmul %617, %390, %cst_170 {dimension_numbers = #tpu.dot_dimension_numbers<[1], [0], [0], [1], [0, 0, 1, 1], [], []>} : vector<8x128xbf16>, vector<128x32xbf16>, vector<8x32xf32> -> vector<8x32xf32>
    %619 = arith.truncf %618 : vector<8x32xf32> to vector<8x32xbf16>
    %cst_171 = arith.constant dense<0.000000e+00> : vector<8x128xf32>
    %620 = tpu.matmul %619, %0, %cst_171 {dimension_numbers = #tpu.dot_dimension_numbers<[1], [0], [0], [1], [0, 0, 1, 1], [], []>} : vector<8x32xbf16>, vector<32x128xbf16>, vector<8x128xf32> -> vector<8x128xf32>
    %621 = arith.truncf %594 : vector<8x32xf32> to vector<8x32xbf16>
    %cst_172 = arith.constant dense<0.000000e+00> : vector<8x128xf32>
    %622 = tpu.matmul %621, %1, %cst_172 {dimension_numbers = #tpu.dot_dimension_numbers<[1], [0], [0], [1], [0, 0, 1, 1], [], []>} : vector<8x32xbf16>, vector<32x128xbf16>, vector<8x128xf32> -> vector<8x128xf32>
    %623 = arith.addf %620, %622 : vector<8x128xf32>
    %624 = vector.broadcast %2 : vector<1x128xf32> to vector<8x128xf32>
    %625 = arith.addf %623, %624 : vector<8x128xf32>
    %626 = vector.extract_strided_slice %625 {offsets = [0, 0], sizes = [8, 32], strides = [1, 1]} : vector<8x128xf32> to vector<8x32xf32>
    %627 = arith.negf %626 : vector<8x32xf32>
    %628 = math.exp %627 : vector<8x32xf32>
    %cst_173 = arith.constant 1.000000e+00 : f32
    %629 = vector.broadcast %cst_173 : f32 to vector<8x32xf32>
    %630 = arith.addf %629, %628 : vector<8x32xf32>
    %631 = arith.divf %629, %630 : vector<8x32xf32>
    %632 = vector.extract_strided_slice %625 {offsets = [0, 32], sizes = [8, 32], strides = [1, 1]} : vector<8x128xf32> to vector<8x32xf32>
    %633 = arith.negf %632 : vector<8x32xf32>
    %634 = math.exp %633 : vector<8x32xf32>
    %cst_174 = arith.constant 1.000000e+00 : f32
    %635 = vector.broadcast %cst_174 : f32 to vector<8x32xf32>
    %636 = arith.addf %635, %634 : vector<8x32xf32>
    %637 = arith.divf %635, %636 : vector<8x32xf32>
    %638 = vector.extract_strided_slice %625 {offsets = [0, 64], sizes = [8, 32], strides = [1, 1]} : vector<8x128xf32> to vector<8x32xf32>
    %639 = math.tanh %638 : vector<8x32xf32>
    %640 = vector.extract_strided_slice %625 {offsets = [0, 96], sizes = [8, 32], strides = [1, 1]} : vector<8x128xf32> to vector<8x32xf32>
    %641 = arith.negf %640 : vector<8x32xf32>
    %642 = math.exp %641 : vector<8x32xf32>
    %cst_175 = arith.constant 1.000000e+00 : f32
    %643 = vector.broadcast %cst_175 : f32 to vector<8x32xf32>
    %644 = arith.addf %643, %642 : vector<8x32xf32>
    %645 = arith.divf %643, %644 : vector<8x32xf32>
    %646 = arith.mulf %637, %592 : vector<8x32xf32>
    %647 = arith.mulf %631, %639 : vector<8x32xf32>
    %648 = arith.addf %646, %647 : vector<8x32xf32>
    %649 = math.tanh %648 : vector<8x32xf32>
    %650 = arith.mulf %645, %649 : vector<8x32xf32>
    %651 = arith.truncf %650 : vector<8x32xf32> to vector<8x32xbf16>
    %cst_176 = arith.constant dense<0.000000e+00> : vector<8x128xf32>
    %652 = tpu.matmul %651, %388, %cst_176 {dimension_numbers = #tpu.dot_dimension_numbers<[1], [0], [0], [1], [0, 0, 1, 1], [], []>} : vector<8x32xbf16>, vector<32x128xbf16>, vector<8x128xf32> -> vector<8x128xf32>
    %653 = vector.broadcast %389 : vector<1x128xf32> to vector<8x128xf32>
    %654 = arith.addf %652, %653 : vector<8x128xf32>
    %c0_177 = arith.constant 0 : index
    %c5_178 = arith.constant 5 : index
    %c0_179 = arith.constant 0 : index
    %655 = vector.load %arg9[%c0_177, %c5_178, %c0_179] : memref<8x8x128xf32, #tpu.memory_space<vmem>>, vector<8x1x128xf32>
    %656 = vector.shape_cast %655 : vector<8x1x128xf32> to vector<8x128xf32>
    %657 = vector.shape_cast %654 : vector<8x128xf32> to vector<8x1x128xf32>
    tpu.vector_store %arg9[%c0_177, %c5_178, %c0_179], %657 {strides = array<i32>} : memref<8x8x128xf32, #tpu.memory_space<vmem>>, vector<8x1x128xf32>,
    %cst_180 = arith.constant dense<0xFF800000> : vector<8xf32>
    %658 = vector.multi_reduction <maximumf>, %654, %cst_180 [1] : vector<8x128xf32> to vector<8xf32>
    %659 = vector.shape_cast %658 : vector<8xf32> to vector<8x1xf32>
    %660 = vector.broadcast %659 : vector<8x1xf32> to vector<8x128xf32>
    %661 = arith.cmpf oeq, %654, %660 : vector<8x128xf32>
    %c128_i32_181 = arith.constant 128 : i32
    %662 = vector.broadcast %c128_i32_181 : i32 to vector<8x128xi32>
    %663 = arith.select %661, %391, %662 : vector<8x128xi1>, vector<8x128xi32>
    %cst_182 = arith.constant dense<2147483647> : vector<8xi32>
    %664 = vector.multi_reduction <minsi>, %663, %cst_182 [1] : vector<8x128xi32> to vector<8xi32>
    %665 = arith.sitofp %664 : vector<8xi32> to vector<8xf32>
    %666 = vector.shape_cast %665 : vector<8xf32> to vector<8x1xf32>
    %c0_183 = arith.constant 0 : index
    %c5_184 = arith.constant 5 : index
    %667 = vector.load %arg10[%c0_183, %c5_184] : memref<8x8xf32, #tpu.memory_space<vmem>>, vector<8x1xf32>
    tpu.vector_store %arg10[%c0_183, %c5_184], %666 {strides = array<i32>} : memref<8x8xf32, #tpu.memory_space<vmem>>, vector<8x1xf32>,
    %668 = vector.shape_cast %664 : vector<8xi32> to vector<8x1xi32>
    %669 = vector.broadcast %668 : vector<8x1xi32> to vector<8x128xi32>
    %670 = arith.cmpi eq, %391, %669 : vector<8x128xi32>
    %671 = arith.extui %670 : vector<8x128xi1> to vector<8x128xi32>
    %672 = arith.sitofp %671 : vector<8x128xi32> to vector<8x128xf32>
    %673 = arith.truncf %672 : vector<8x128xf32> to vector<8x128xbf16>
    %cst_185 = arith.constant dense<0.000000e+00> : vector<8x32xf32>
    %674 = tpu.matmul %673, %390, %cst_185 {dimension_numbers = #tpu.dot_dimension_numbers<[1], [0], [0], [1], [0, 0, 1, 1], [], []>} : vector<8x128xbf16>, vector<128x32xbf16>, vector<8x32xf32> -> vector<8x32xf32>
    %675 = arith.truncf %674 : vector<8x32xf32> to vector<8x32xbf16>
    %cst_186 = arith.constant dense<0.000000e+00> : vector<8x128xf32>
    %676 = tpu.matmul %675, %0, %cst_186 {dimension_numbers = #tpu.dot_dimension_numbers<[1], [0], [0], [1], [0, 0, 1, 1], [], []>} : vector<8x32xbf16>, vector<32x128xbf16>, vector<8x128xf32> -> vector<8x128xf32>
    %677 = arith.truncf %650 : vector<8x32xf32> to vector<8x32xbf16>
    %cst_187 = arith.constant dense<0.000000e+00> : vector<8x128xf32>
    %678 = tpu.matmul %677, %1, %cst_187 {dimension_numbers = #tpu.dot_dimension_numbers<[1], [0], [0], [1], [0, 0, 1, 1], [], []>} : vector<8x32xbf16>, vector<32x128xbf16>, vector<8x128xf32> -> vector<8x128xf32>
    %679 = arith.addf %676, %678 : vector<8x128xf32>
    %680 = vector.broadcast %2 : vector<1x128xf32> to vector<8x128xf32>
    %681 = arith.addf %679, %680 : vector<8x128xf32>
    %682 = vector.extract_strided_slice %681 {offsets = [0, 0], sizes = [8, 32], strides = [1, 1]} : vector<8x128xf32> to vector<8x32xf32>
    %683 = arith.negf %682 : vector<8x32xf32>
    %684 = math.exp %683 : vector<8x32xf32>
    %cst_188 = arith.constant 1.000000e+00 : f32
    %685 = vector.broadcast %cst_188 : f32 to vector<8x32xf32>
    %686 = arith.addf %685, %684 : vector<8x32xf32>
    %687 = arith.divf %685, %686 : vector<8x32xf32>
    %688 = vector.extract_strided_slice %681 {offsets = [0, 32], sizes = [8, 32], strides = [1, 1]} : vector<8x128xf32> to vector<8x32xf32>
    %689 = arith.negf %688 : vector<8x32xf32>
    %690 = math.exp %689 : vector<8x32xf32>
    %cst_189 = arith.constant 1.000000e+00 : f32
    %691 = vector.broadcast %cst_189 : f32 to vector<8x32xf32>
    %692 = arith.addf %691, %690 : vector<8x32xf32>
    %693 = arith.divf %691, %692 : vector<8x32xf32>
    %694 = vector.extract_strided_slice %681 {offsets = [0, 64], sizes = [8, 32], strides = [1, 1]} : vector<8x128xf32> to vector<8x32xf32>
    %695 = math.tanh %694 : vector<8x32xf32>
    %696 = vector.extract_strided_slice %681 {offsets = [0, 96], sizes = [8, 32], strides = [1, 1]} : vector<8x128xf32> to vector<8x32xf32>
    %697 = arith.negf %696 : vector<8x32xf32>
    %698 = math.exp %697 : vector<8x32xf32>
    %cst_190 = arith.constant 1.000000e+00 : f32
    %699 = vector.broadcast %cst_190 : f32 to vector<8x32xf32>
    %700 = arith.addf %699, %698 : vector<8x32xf32>
    %701 = arith.divf %699, %700 : vector<8x32xf32>
    %702 = arith.mulf %693, %648 : vector<8x32xf32>
    %703 = arith.mulf %687, %695 : vector<8x32xf32>
    %704 = arith.addf %702, %703 : vector<8x32xf32>
    %705 = math.tanh %704 : vector<8x32xf32>
    %706 = arith.mulf %701, %705 : vector<8x32xf32>
    %707 = arith.truncf %706 : vector<8x32xf32> to vector<8x32xbf16>
    %cst_191 = arith.constant dense<0.000000e+00> : vector<8x128xf32>
    %708 = tpu.matmul %707, %388, %cst_191 {dimension_numbers = #tpu.dot_dimension_numbers<[1], [0], [0], [1], [0, 0, 1, 1], [], []>} : vector<8x32xbf16>, vector<32x128xbf16>, vector<8x128xf32> -> vector<8x128xf32>
    %709 = vector.broadcast %389 : vector<1x128xf32> to vector<8x128xf32>
    %710 = arith.addf %708, %709 : vector<8x128xf32>
    %c0_192 = arith.constant 0 : index
    %c6_193 = arith.constant 6 : index
    %c0_194 = arith.constant 0 : index
    %711 = vector.load %arg9[%c0_192, %c6_193, %c0_194] : memref<8x8x128xf32, #tpu.memory_space<vmem>>, vector<8x1x128xf32>
    %712 = vector.shape_cast %711 : vector<8x1x128xf32> to vector<8x128xf32>
    %713 = vector.shape_cast %710 : vector<8x128xf32> to vector<8x1x128xf32>
    tpu.vector_store %arg9[%c0_192, %c6_193, %c0_194], %713 {strides = array<i32>} : memref<8x8x128xf32, #tpu.memory_space<vmem>>, vector<8x1x128xf32>,
    %cst_195 = arith.constant dense<0xFF800000> : vector<8xf32>
    %714 = vector.multi_reduction <maximumf>, %710, %cst_195 [1] : vector<8x128xf32> to vector<8xf32>
    %715 = vector.shape_cast %714 : vector<8xf32> to vector<8x1xf32>
    %716 = vector.broadcast %715 : vector<8x1xf32> to vector<8x128xf32>
    %717 = arith.cmpf oeq, %710, %716 : vector<8x128xf32>
    %c128_i32_196 = arith.constant 128 : i32
    %718 = vector.broadcast %c128_i32_196 : i32 to vector<8x128xi32>
    %719 = arith.select %717, %391, %718 : vector<8x128xi1>, vector<8x128xi32>
    %cst_197 = arith.constant dense<2147483647> : vector<8xi32>
    %720 = vector.multi_reduction <minsi>, %719, %cst_197 [1] : vector<8x128xi32> to vector<8xi32>
    %721 = arith.sitofp %720 : vector<8xi32> to vector<8xf32>
    %722 = vector.shape_cast %721 : vector<8xf32> to vector<8x1xf32>
    %c0_198 = arith.constant 0 : index
    %c6_199 = arith.constant 6 : index
    %723 = vector.load %arg10[%c0_198, %c6_199] : memref<8x8xf32, #tpu.memory_space<vmem>>, vector<8x1xf32>
    tpu.vector_store %arg10[%c0_198, %c6_199], %722 {strides = array<i32>} : memref<8x8xf32, #tpu.memory_space<vmem>>, vector<8x1xf32>,
    %724 = vector.shape_cast %720 : vector<8xi32> to vector<8x1xi32>
    %725 = vector.broadcast %724 : vector<8x1xi32> to vector<8x128xi32>
    %726 = arith.cmpi eq, %391, %725 : vector<8x128xi32>
    %727 = arith.extui %726 : vector<8x128xi1> to vector<8x128xi32>
    %728 = arith.sitofp %727 : vector<8x128xi32> to vector<8x128xf32>
    %729 = arith.truncf %728 : vector<8x128xf32> to vector<8x128xbf16>
    %cst_200 = arith.constant dense<0.000000e+00> : vector<8x32xf32>
    %730 = tpu.matmul %729, %390, %cst_200 {dimension_numbers = #tpu.dot_dimension_numbers<[1], [0], [0], [1], [0, 0, 1, 1], [], []>} : vector<8x128xbf16>, vector<128x32xbf16>, vector<8x32xf32> -> vector<8x32xf32>
    %731 = arith.truncf %730 : vector<8x32xf32> to vector<8x32xbf16>
    %cst_201 = arith.constant dense<0.000000e+00> : vector<8x128xf32>
    %732 = tpu.matmul %731, %0, %cst_201 {dimension_numbers = #tpu.dot_dimension_numbers<[1], [0], [0], [1], [0, 0, 1, 1], [], []>} : vector<8x32xbf16>, vector<32x128xbf16>, vector<8x128xf32> -> vector<8x128xf32>
    %733 = arith.truncf %706 : vector<8x32xf32> to vector<8x32xbf16>
    %cst_202 = arith.constant dense<0.000000e+00> : vector<8x128xf32>
    %734 = tpu.matmul %733, %1, %cst_202 {dimension_numbers = #tpu.dot_dimension_numbers<[1], [0], [0], [1], [0, 0, 1, 1], [], []>} : vector<8x32xbf16>, vector<32x128xbf16>, vector<8x128xf32> -> vector<8x128xf32>
    %735 = arith.addf %732, %734 : vector<8x128xf32>
    %736 = vector.broadcast %2 : vector<1x128xf32> to vector<8x128xf32>
    %737 = arith.addf %735, %736 : vector<8x128xf32>
    %738 = vector.extract_strided_slice %737 {offsets = [0, 0], sizes = [8, 32], strides = [1, 1]} : vector<8x128xf32> to vector<8x32xf32>
    %739 = arith.negf %738 : vector<8x32xf32>
    %740 = math.exp %739 : vector<8x32xf32>
    %cst_203 = arith.constant 1.000000e+00 : f32
    %741 = vector.broadcast %cst_203 : f32 to vector<8x32xf32>
    %742 = arith.addf %741, %740 : vector<8x32xf32>
    %743 = arith.divf %741, %742 : vector<8x32xf32>
    %744 = vector.extract_strided_slice %737 {offsets = [0, 32], sizes = [8, 32], strides = [1, 1]} : vector<8x128xf32> to vector<8x32xf32>
    %745 = arith.negf %744 : vector<8x32xf32>
    %746 = math.exp %745 : vector<8x32xf32>
    %cst_204 = arith.constant 1.000000e+00 : f32
    %747 = vector.broadcast %cst_204 : f32 to vector<8x32xf32>
    %748 = arith.addf %747, %746 : vector<8x32xf32>
    %749 = arith.divf %747, %748 : vector<8x32xf32>
    %750 = vector.extract_strided_slice %737 {offsets = [0, 64], sizes = [8, 32], strides = [1, 1]} : vector<8x128xf32> to vector<8x32xf32>
    %751 = math.tanh %750 : vector<8x32xf32>
    %752 = vector.extract_strided_slice %737 {offsets = [0, 96], sizes = [8, 32], strides = [1, 1]} : vector<8x128xf32> to vector<8x32xf32>
    %753 = arith.negf %752 : vector<8x32xf32>
    %754 = math.exp %753 : vector<8x32xf32>
    %cst_205 = arith.constant 1.000000e+00 : f32
    %755 = vector.broadcast %cst_205 : f32 to vector<8x32xf32>
    %756 = arith.addf %755, %754 : vector<8x32xf32>
    %757 = arith.divf %755, %756 : vector<8x32xf32>
    %758 = arith.mulf %749, %704 : vector<8x32xf32>
    %759 = arith.mulf %743, %751 : vector<8x32xf32>
    %760 = arith.addf %758, %759 : vector<8x32xf32>
    %761 = math.tanh %760 : vector<8x32xf32>
    %762 = arith.mulf %757, %761 : vector<8x32xf32>
    %763 = arith.truncf %762 : vector<8x32xf32> to vector<8x32xbf16>
    %cst_206 = arith.constant dense<0.000000e+00> : vector<8x128xf32>
    %764 = tpu.matmul %763, %388, %cst_206 {dimension_numbers = #tpu.dot_dimension_numbers<[1], [0], [0], [1], [0, 0, 1, 1], [], []>} : vector<8x32xbf16>, vector<32x128xbf16>, vector<8x128xf32> -> vector<8x128xf32>
    %765 = vector.broadcast %389 : vector<1x128xf32> to vector<8x128xf32>
    %766 = arith.addf %764, %765 : vector<8x128xf32>
    %c0_207 = arith.constant 0 : index
    %c7_208 = arith.constant 7 : index
    %c0_209 = arith.constant 0 : index
    %767 = vector.load %arg9[%c0_207, %c7_208, %c0_209] : memref<8x8x128xf32, #tpu.memory_space<vmem>>, vector<8x1x128xf32>
    %768 = vector.shape_cast %767 : vector<8x1x128xf32> to vector<8x128xf32>
    %769 = vector.shape_cast %766 : vector<8x128xf32> to vector<8x1x128xf32>
    tpu.vector_store %arg9[%c0_207, %c7_208, %c0_209], %769 {strides = array<i32>} : memref<8x8x128xf32, #tpu.memory_space<vmem>>, vector<8x1x128xf32>,
    %cst_210 = arith.constant dense<0xFF800000> : vector<8xf32>
    %770 = vector.multi_reduction <maximumf>, %766, %cst_210 [1] : vector<8x128xf32> to vector<8xf32>
    %771 = vector.shape_cast %770 : vector<8xf32> to vector<8x1xf32>
    %772 = vector.broadcast %771 : vector<8x1xf32> to vector<8x128xf32>
    %773 = arith.cmpf oeq, %766, %772 : vector<8x128xf32>
    %c128_i32_211 = arith.constant 128 : i32
    %774 = vector.broadcast %c128_i32_211 : i32 to vector<8x128xi32>
    %775 = arith.select %773, %391, %774 : vector<8x128xi1>, vector<8x128xi32>
    %cst_212 = arith.constant dense<2147483647> : vector<8xi32>
    %776 = vector.multi_reduction <minsi>, %775, %cst_212 [1] : vector<8x128xi32> to vector<8xi32>
    %777 = arith.sitofp %776 : vector<8xi32> to vector<8xf32>
    %778 = vector.shape_cast %777 : vector<8xf32> to vector<8x1xf32>
    %c0_213 = arith.constant 0 : index
    %c7_214 = arith.constant 7 : index
    %779 = vector.load %arg10[%c0_213, %c7_214] : memref<8x8xf32, #tpu.memory_space<vmem>>, vector<8x1xf32>
    tpu.vector_store %arg10[%c0_213, %c7_214], %778 {strides = array<i32>} : memref<8x8xf32, #tpu.memory_space<vmem>>, vector<8x1xf32>,
    return
  }
}

</mosaic_0001>

<bundles_post_ra>
// kernel: auto_encoder_forward.1
= control target key start
LH: loop header
LB: loop body
LE: loop exit
PB: predicated region body
PF: predicated region fallthrough
CT: control target
= control target key end

     0   :  { %16 = vsyncpa [#allocation3], 0  ;;  %v4464_v1 = vmov 0.0   ;;  %vm4465_vm0 = vmmov 0   ;;  %v4466_v8 = vmov 0   ;;  %vm135_vm2 = vcmask 1041409   ;;  %s5683_s0 = inlined_call_operand.vmem [shape: f32[8,8,32], index: 0, kind: input, shape index: {}]   ;;  %s5684_s1 = inlined_call_operand.vmem [shape: f32[8,8], index: 1, kind: input, shape index: {}]   ;;  %s5685_s2 = inlined_call_operand.vmem [shape: bf16[128,32], index: 2, kind: input, shape index: {}]   ;;  %s5686_s3 = inlined_call_operand.vmem [shape: bf16[32,128], index: 3, kind: input, shape index: {}]   ;;  %s5687_s4 = inlined_call_operand.vmem [shape: bf16[32,128], index: 4, kind: input, shape index: {}]   ;;  %s5688_s5 = inlined_call_operand.vmem [shape: f32[1,128], index: 5, kind: input, shape index: {}]   ;;  %s5689_s6 = inlined_call_operand.vmem [shape: bf16[32,128], index: 6, kind: input, shape index: {}]   ;;  %s5690_s7 = inlined_call_operand.vmem [shape: f32[1,128], index: 7, kind: input, shape index: {}]   ;;  %s5691_s8 = inlined_call_operand.vmem [shape: bf16[8,32], index: 8, kind: input, shape index: {}]   ;;  %s5692_s9 = inlined_call_operand.hbm [shape: f32[8,8,128], index: 9, kind: output, shape index: {0}]   ;;  %s5693_s10 = inlined_call_operand.hbm [shape: f32[8,8], index: 10, kind: output, shape index: {1}]  }
   0x1   :  { %v4540_v0 = vld [vmem:[%s5687_s4] sm:$0xff]   ;;  %3818 = vmatprep.subr.bf16.mxu0 %v4464_v1  ;;  %1439 = vst [vmem:[#allocation2] sm:$0xff] %v4464_v1  ;;  %1440 = vst [vmem:[#allocation2 + $0x8] sm:$0xff] %v4464_v1  ;;  %3826 = vmatprep.subr.bf16.mxu1 %v4464_v1  ;;  %v4561_v3 = vld [vmem:[%s5687_s4 + $0x8] sm:$0xff]   ;;  %vm138_vm3 = vcmask 1042434   ;;  %vm141_vm4 = vcmask 1043459  }
   0x2   :  { %1441 = vst [vmem:[#allocation2 + $0x10] sm:$0xff] %v4464_v1  ;;  %1442 = vst [vmem:[#allocation2 + $0x18] sm:$0xff] %v4464_v1  ;;  %v4555_v2 = vld [vmem:[%s5686_s3] sm:$0xff]   ;;  %3819 = vmatpush3.bf16.msra.mxu0 %v4540_v0  ;;  %3822 = vmatprep.mubr.msk.bf16.mxu0 %vm4465_vm0, %v4464_v1  ;;  %v4574_v5 = vld [vmem:[%s5686_s3 + $0x8] sm:$0xff]   ;;  %vm144_vm5 = vcmask 1044484   ;;  %vm147_vm6 = vcmask 1045509  }
   0x3   :  { %1443 = vst [vmem:[#allocation2 + $0x20] sm:$0xff] %v4464_v1  ;;  %1444 = vst [vmem:[#allocation2 + $0x28] sm:$0xff] %v4464_v1  ;;  %3820 = vmatprep.subr.bf16.mxu0 %v4464_v1  ;;  %3827 = vmatpush3.bf16.msra.mxu1 %v4555_v2  ;;  %v242_v4 = vld [vmem:[%s5684_s1] sm:$0xff]  ;;  %v47_v7 = vld [vmem:[%s5683_s0 + $0x8] sm:$0x1]  ;;  %vm150_vm7 = vcmask 1046534  }
   0x4   :  { %1445 = vst [vmem:[#allocation2 + $0x30] sm:$0xff] %v4464_v1  ;;  %1446 = vst [vmem:[#allocation2 + $0x38] sm:$0xff] %v4464_v1  ;;  %3828 = vmatprep.subr.bf16.mxu1 %v4464_v1  ;;  %vm243_vm1 = vcmp.gt.f32.partialorder %v242_v4, 0.0  ;;  %3830 = vmatprep.mubr.msk.bf16.mxu1 %vm4465_vm0, %v4464_v1  ;;  %v46_v6 = vld [vmem:[%s5683_s0] sm:$0x1]  ;;  %v55_v13 = vpack.c.bf16 %v47_v7, %v47_v7  ;;  %vm153_vm8 = vcmask 1047559  }
   0x5   :  { %v4584_v9 = vsel %vm243_vm1, 1, %v4466_v8  ;;  %v48_v10 = vld [vmem:[%s5683_s0 + $0x10] sm:$0x1]  ;;  %v49_v11 = vld [vmem:[%s5683_s0 + $0x18] sm:$0x1]  ;;  %v54_v12 = vpack.c.bf16 %v46_v6, %v46_v6  ;;  %4252 = vset.pattern.permute.xlu1 %v4466_v8 }
   0x6   :  { %3821 = vmatpush3.bf16.msra.mxu0 %v4561_v3  ;;  %v50_v14 = vld [vmem:[%s5683_s0 + $0x20] sm:$0x1]  ;;  %v51_v15 = vld [vmem:[%s5683_s0 + $0x28] sm:$0x1]  ;;  %v52_v16 = vld [vmem:[%s5683_s0 + $0x30] sm:$0x1]  ;;  %v56_v17 = vpack.c.bf16 %v48_v10, %v48_v10  ;;  %v57_v18 = vpack.c.bf16 %v49_v11, %v49_v11  ;;  %246 = vperm.xlu1 %4252, %v4584_v9   ;;  %v127_v25 = vunpack.c.l.b16 %v55_v13 }
   0x7   :  { %3829 = vmatpush3.bf16.msra.mxu1 %v4574_v5  ;;  %v53_v19 = vld [vmem:[%s5683_s0 + $0x38] sm:$0x1]  ;;  %v58_v20 = vpack.c.bf16 %v50_v14, %v50_v14  ;;  %v59_v21 = vpack.c.bf16 %v51_v15, %v51_v15  ;;  %v60_v22 = vpack.c.bf16 %v52_v16, %v52_v16  ;;  %v126_v23 = vunpack.c.l.b16 %v54_v12  ;;  %3834 = vmatprep.subr.bf16.mxu0 %v4464_v1 }
   0x8   :  { %v61_v24 = vpack.c.bf16 %v53_v19, %v53_v19  ;;  %v128_v26 = vunpack.c.l.b16 %v56_v17  ;;  %v129_v27 = vunpack.c.l.b16 %v57_v18  ;;  %3842 = vmatprep.subr.bf16.mxu1 %v4464_v1  ;;  %v134_v32 = vrot.slane %v127_v25, 7 }
   0x9   :  { %3823 = vmatmul.mubr.bf16.vlgmr.msra.gmra.mrb[0].mxu0 %v4466_v8  ;;  %v130_v28 = vunpack.c.l.b16 %v58_v20  ;;  %v131_v29 = vunpack.c.l.b16 %v59_v21  ;;  %v132_v30 = vunpack.c.l.b16 %v60_v22 }
   0xa   :  { %v133_v31 = vunpack.c.l.b16 %v61_v24  ;;  %v137_v33 = vrot.slane %v128_v26, 6  ;;  %v140_v34 = vrot.slane %v129_v27, 5  ;;  %3835 = vmatpush3.bf16.msra.mxu0 %v4540_v0  ;;  %3838 = vmatprep.mubr.msk.bf16.mxu0 %vm4465_vm0, %v4464_v1  ;;  %v136_v37 = vsel %vm135_vm2, %v134_v32, %v126_v23 }
   0xb   :  { %v143_v35 = vrot.slane %v130_v28, 4  ;;  %v146_v36 = vrot.slane %v131_v29, 3  ;;  %3836 = vmatprep.subr.bf16.mxu0 %v4464_v1  ;;  %v149_v38 = vrot.slane %v132_v30, 2 }
   0xc   :  { %v139_v39 = vsel %vm138_vm3, %v137_v33, %v136_v37  ;;  %v152_v40 = vrot.slane %v133_v31, 1 }
   0xd   :  { %v142_v41 = vsel %vm141_vm4, %v140_v34, %v139_v39 }
   0xe   :  { %3837 = vmatpush3.bf16.msra.mxu0 %v4561_v3  ;;  %v145_v42 = vsel %vm144_vm5, %v143_v35, %v142_v41 }
   0xf   :  { %3850 = vmatprep.subr.bf16.mxu0 %v4464_v1  ;;  %v148_v43 = vsel %vm147_vm6, %v146_v36, %v145_v42 }
  0x10   :  { %17 = vsyncpa [#allocation5], 0  ;;  %v151_v44 = vsel %vm150_vm7, %v149_v38, %v148_v43  ;;  %vm74_vm9 = vcmask 261120   ;;  %v4632_v51 = vld [vmem:[%s5688_s5] ss:$0 sm:$0xff]  ;;  %s4467_s20 = smov 64  }
  0x11   :  { %v154_v45 = vsel %vm153_vm8, %v152_v40, %v151_v44  ;;  %s4468_s21 = smov 32   ;;  %v251_v10 = vld [vmem:[%s5683_s0 + $0x1] sm:$0x1]  ;;  %v252_v11 = vld [vmem:[%s5683_s0 + $0x9] sm:$0x1] }
  0x12   :  { %v155_v46 = vpack.c.b16 %v154_v45, %v154_v45  ;;  %v253_v12 = vld [vmem:[%s5683_s0 + $0x11] sm:$0x1]  ;;  %v254_v13 = vld [vmem:[%s5683_s0 + $0x19] sm:$0x1]  ;;  %v255_v14 = vld [vmem:[%s5683_s0 + $0x21] sm:$0x1]  ;;  %v259_v16 = vpack.c.bf16 %v251_v10, %v251_v10  ;;  %v260_v17 = vpack.c.bf16 %v252_v11, %v252_v11 }
  0x13   :  { %v256_v15 = vld [vmem:[%s5683_s0 + $0x29] sm:$0x1]  ;;  %v261_v18 = vpack.c.bf16 %v253_v12, %v253_v12  ;;  %v257_v19 = vld [vmem:[%s5683_s0 + $0x31] sm:$0x1]  ;;  %v258_v20 = vld [vmem:[%s5683_s0 + $0x39] sm:$0x1]  ;;  %v262_v21 = vpack.c.bf16 %v254_v13, %v254_v13  ;;  %v263_v22 = vpack.c.bf16 %v255_v14, %v255_v14 }
  0x14   :  { %3831 = vmatmul.mubr.msk.bf16.vlgmr.msra.gmra.mrb[0].mxu1 %vm74_vm9, %v155_v46  ;;  %v264_v23 = vpack.c.bf16 %v256_v15, %v256_v15  ;;  %v265_v24 = vpack.c.bf16 %v257_v19, %v257_v19  ;;  %v266_v25 = vpack.c.bf16 %v258_v20, %v258_v20  ;;  %v322_v26 = vunpack.c.l.b16 %v259_v16 }
  0x15   :  { %3843 = vmatpush3.bf16.msra.mxu1 %v4555_v2  ;;  %3846 = vmatprep.mubr.msk.bf16.mxu1 %vm4465_vm0, %v4464_v1  ;;  %v323_v27 = vunpack.c.l.b16 %v260_v17  ;;  %v324_v28 = vunpack.c.l.b16 %v261_v18  ;;  %v325_v29 = vunpack.c.l.b16 %v262_v21  ;;  %v326_v30 = vunpack.c.l.b16 %v263_v22  ;;  %v421_v22 = vld [vmem:[%s5683_s0 + $0x2] sm:$0x1] }
  0x16   :  { %3844 = vmatprep.subr.bf16.mxu1 %v4464_v1  ;;  %v327_v31 = vunpack.c.l.b16 %v264_v23  ;;  %v328_v32 = vunpack.c.l.b16 %v265_v24  ;;  %v329_v33 = vunpack.c.l.b16 %v266_v25  ;;  %v422_v23 = vld [vmem:[%s5683_s0 + $0xa] sm:$0x1]  ;;  %v424_v24 = vld [vmem:[%s5683_s0 + $0x1a] sm:$0x1]  ;;  %v425_v25 = vld [vmem:[%s5683_s0 + $0x22] sm:$0x1] }
  0x17   :  { %v330_v34 = vrot.slane %v323_v27, 7  ;;  %v332_v35 = vrot.slane %v324_v28, 6  ;;  %v334_v36 = vrot.slane %v325_v29, 5  ;;  %v336_v37 = vrot.slane %v326_v30, 4  ;;  %v427_v30 = vld [vmem:[%s5683_s0 + $0x32] sm:$0x1] }
  0x18   :  { %v338_v40 = vrot.slane %v327_v31, 3  ;;  %v340_v42 = vrot.slane %v328_v32, 2  ;;  %v342_v44 = vrot.slane %v329_v33, 1  ;;  %v429_v27 = vpack.c.bf16 %v421_v22, %v421_v22  ;;  %v428_v31 = vld [vmem:[%s5683_s0 + $0x3a] sm:$0x1] }
  0x19   :  { %3845 = vmatpush3.bf16.msra.mxu1 %v4574_v5  ;;  %v331_v39 = vsel %vm135_vm2, %v330_v34, %v322_v26  ;;  %v426_v26 = vld [vmem:[%s5683_s0 + $0x2a] sm:$0x1]  ;;  %v430_v28 = vpack.c.bf16 %v422_v23, %v422_v23  ;;  %v432_v32 = vpack.c.bf16 %v424_v24, %v424_v24  ;;  %v433_v33 = vpack.c.bf16 %v425_v25, %v425_v25 }
  0x1a   :  { %3858 = vmatprep.subr.bf16.mxu1 %v4464_v1  ;;  %v333_v41 = vsel %vm138_vm3, %v332_v35, %v331_v39  ;;  %v434_v34 = vpack.c.bf16 %v426_v26, %v426_v26  ;;  %v435_v35 = vpack.c.bf16 %v427_v30, %v427_v30 }
  0x1b   :  { %v335_v43 = vsel %vm141_vm4, %v334_v36, %v333_v41  ;;  %v436_v36 = vpack.c.bf16 %v428_v31, %v428_v31  ;;  %v496_v41 = vunpack.c.l.b16 %v433_v33 }
  0x1c   :  { %v337_v45 = vsel %vm144_vm5, %v336_v37, %v335_v43  ;;  %v492_v37 = vunpack.c.l.b16 %v429_v27  ;;  %v498_v43 = vunpack.c.l.b16 %v435_v35  ;;  %v591_v35 = vld [vmem:[%s5683_s0 + $0x3] sm:$0x1] }
  0x1d   :  { %v339_v46 = vsel %vm147_vm6, %v338_v40, %v337_v45  ;;  %v495_v40 = vunpack.c.l.b16 %v432_v32 }
  0xdc   :  { %v112_v47 = vpop.f32.mrb[0].mxu0 }
  0xdd   :  { %v3824_v48 = vpop.f32.mrb[1].mxu0 }
  0xde   :  { %v115_v49 = vpop.f32.mrb[2].mxu0 }
  0xdf   :  { %v3825_v50 = vpop.f32.mrb[3].mxu0 }
  0xe0   :  { %v247_v50 = vpop.permute.xlu1 %246 }
  0xe1   :  { %vm248_vm10 = vcmp.eq.s32.totalorder %v247_v50, 1 }
  0xe7   :  { %v205_v52 = vpop.f32.mrb[0].mxu1 }
  0xe8   :  { %v206_v53 = vadd.f32 %v205_v52, %v112_v47  ;;  %v3832_v54 = vpop.f32.mrb[1].mxu1  ;;  %v341_v47 = vsel %vm150_vm7, %v340_v42, %v339_v46  ;;  %v497_v42 = vunpack.c.l.b16 %v434_v34 }
  0xe9   :  { %v208_v55 = vpop.f32.mrb[2].mxu1  ;;  %v343_v48 = vsel %vm153_vm8, %v342_v44, %v341_v47  ;;  %v499_v44 = vunpack.c.l.b16 %v436_v36  ;;  %v504_v47 = vrot.slane %v495_v40, 5  ;;  %v592_v36 = vld [vmem:[%s5683_s0 + $0xb] sm:$0x1] }
  0xea   :  { %v217_v56 = vadd.f32 %v4632_v51, %v206_v53  ;;  %v3833_v57 = vpop.f32.mrb[3].mxu1  ;;  %v344_v49 = vpack.c.b16 %v343_v48, %v343_v48  ;;  %v506_v48 = vrot.slane %v496_v41, 4  ;;  %v600_v40 = vpack.c.bf16 %v592_v36, %v592_v36 }
  0xec   :  { %4274 = vtanh.f32 %v217_v56  ;;  %v3546_v59 = vmul.f32 -1.442695, %v217_v56  ;;  %3847 = vmatmul.mubr.msk.bf16.vlgmr.msra.gmra.mrb[4].mxu1 %vm74_vm9, %v344_v49 }
  0xed   :  { %3859 = vmatpush3.bf16.msra.mxu1 %v4555_v2  ;;  %3862 = vmatprep.mubr.msk.bf16.mxu1 %vm4465_vm0, %v4464_v1 }
  0xee   :  { %4276 = vpow2.f32 %v3546_v59  ;;  %3860 = vmatprep.subr.bf16.mxu1 %v4464_v1 }
  0xf1   :  { %3861 = vmatpush3.bf16.msra.mxu1 %v4574_v5 }
  0xf2   :  { %3874 = vmatprep.subr.bf16.mxu1 %v4464_v1 }
  0xf6   :  { %v4275_v58 = vpop.eup %4274 }
  0xf7   :  { %227 = vrot.lane.b32.xlu0 %v4275_v58, %s4467_s20 }
  0xf8   :  { %v4277_v60 = vpop.eup %4276 }
  0xf9   :  { %v221_v61 = vadd.f32 1.0, %v4277_v60 }
  0xfb   :  { %4278 = vrcp.f32 %v221_v61  ;;  %v4469_v61 = vmov 1  }
  0xfc   :  { %4253 = vset.pattern.permute.xlu1 %v4469_v61 }
 0x105   :  { %v4279_v62 = vpop.eup %4278 }
 0x106   :  { %v225_v6 = vmul.f32 0.0, %v4279_v62 }
 0x169   :  { %v228_v63 = vpop.permute.xlu0 %227 }
 0x16a   :  { %v230_v4 = vmul.f32 %v4279_v62, %v228_v63 }
 0x16c   :  { %232 = vrot.lane.b32.xlu0 %v230_v4, %s4468_s21 }
 0x1bf   :  { %v382_v56 = vpop.f32.mrb[4].mxu1 }
 0x1c0   :  { %v3848_v57 = vpop.f32.mrb[5].mxu1 }
 0x1c1   :  { %v385_v58 = vpop.f32.mrb[6].mxu1  ;;  %v512_v57 = vrot.slane %v499_v44, 1 }
 0x1c2   :  { %v3849_v59 = vpop.f32.mrb[7].mxu1 }
 0x1de   :  { %v233_v7 = vpop.permute.xlu0 %232 }
 0x1df   :  { %v4637_v8 = vadd.f32 %v233_v7, %v225_v6 }
 0x1e1   :  { %4280 = vtanh.f32 %v4637_v8  ;;  %v4698_v18 = vsel %vm248_vm10, %v4637_v8, 0.0  ;;  %v423_v8 = vld [vmem:[%s5683_s0 + $0x12] sm:$0x1] }
 0x1e2   :  { %v431_v29 = vpack.c.bf16 %v423_v8, %v423_v8 }
 0x1e4   :  { %v494_v39 = vunpack.c.l.b16 %v431_v29 }
 0x1e6   :  { %v502_v46 = vrot.slane %v494_v39, 6  ;;  %v599_v39 = vpack.c.bf16 %v591_v35, %v591_v35 }
 0x1eb   :  { %v4281_v38 = vpop.eup %4280 }
 0x1ec   :  { %238 = vrot.lane.b32.xlu1 %v4281_v38, %s4467_s20  ;;  %v493_v38 = vunpack.c.l.b16 %v430_v28 }
 0x1ee   :  { %v500_v45 = vrot.slane %v493_v38, 7  ;;  %v596_v38 = vld [vmem:[%s5683_s0 + $0x2b] sm:$0x1] }
 0x1f0   :  { %v501_v50 = vsel %vm135_vm2, %v500_v45, %v492_v37  ;;  %v595_v37 = vld [vmem:[%s5683_s0 + $0x23] sm:$0x1] }
 0x1f1   :  { %v603_v45 = vpack.c.bf16 %v595_v37, %v595_v37 }
 0x25e   :  { %v239_v52 = vpop.permute.xlu1 %238 }
 0x25f   :  { %v241_v53 = vmul.f32 %v4279_v62, %v239_v52  ;;  %v508_v52 = vrot.slane %v497_v42, 3  ;;  %v597_v42 = vld [vmem:[%s5683_s0 + $0x33] sm:$0x1] }
 0x261   :  { %v4680_v54 = vsel %vm248_vm10, %v241_v53, 0.0  ;;  %v503_v53 = vsel %vm138_vm3, %v502_v46, %v501_v50  ;;  %v604_v46 = vpack.c.bf16 %v596_v38, %v596_v38  ;;  %v663_v50 = vunpack.c.l.b16 %v600_v40 }
 0x262   :  { %v267_v55 = vpack.c.bf16 %v4680_v54, %v4680_v54 }
 0x264   :  { %269 = vrot.lane.b32.xlu0 %v267_v55, %s4468_s21  ;;  %v510_v55 = vrot.slane %v498_v43, 2  ;;  %v598_v43 = vld [vmem:[%s5683_s0 + $0x3b] sm:$0x1] }
 0x2d6   :  { %v270_v60 = vpop.permute.xlu0 %269 }
 0x2d7   :  { %3839 = vmatmul.mubr.msk.bf16.vlgmr.msra.gmra.mrb[4].mxu0 %vm74_vm9, %v270_v60 }
 0x2d8   :  { %3851 = vmatpush3.bf16.msra.mxu0 %v4540_v0  ;;  %3854 = vmatprep.mubr.msk.bf16.mxu0 %vm4465_vm0, %v4464_v1 }
 0x2d9   :  { %3852 = vmatprep.subr.bf16.mxu0 %v4464_v1 }
 0x2dc   :  { %3853 = vmatpush3.bf16.msra.mxu0 %v4561_v3 }
 0x2dd   :  { %3866 = vmatprep.subr.bf16.mxu0 %v4464_v1 }
 0x3aa   :  { %v308_v62 = vpop.f32.mrb[4].mxu0 }
 0x3ab   :  { %v383_v63 = vadd.f32 %v382_v56, %v308_v62  ;;  %v3840_v4 = vpop.f32.mrb[5].mxu0  ;;  %v505_v56 = vsel %vm141_vm4, %v504_v47, %v503_v53  ;;  %v605_v47 = vpack.c.bf16 %v597_v42, %v597_v42 }
 0x3ac   :  { %v311_v6 = vpop.f32.mrb[6].mxu0  ;;  %v507_v58 = vsel %vm144_vm5, %v506_v48, %v505_v56  ;;  %v606_v48 = vpack.c.bf16 %v598_v43, %v598_v43  ;;  %v667_v56 = vunpack.c.l.b16 %v604_v46 }
 0x3ad   :  { %v388_v7 = vadd.f32 %v4632_v51, %v383_v63  ;;  %v3841_v10 = vpop.f32.mrb[7].mxu0  ;;  %v509_v59 = vsel %vm147_vm6, %v508_v52, %v507_v58 }
 0x3ae   :  { %v511_v60 = vsel %vm150_vm7, %v510_v55, %v509_v59  ;;  %v666_v55 = vunpack.c.l.b16 %v603_v45  ;;  %v669_v58 = vunpack.c.l.b16 %v606_v48  ;;  %v670_v59 = vrot.slane %v663_v50, 7  ;;  %v761_v50 = vld [vmem:[%s5683_s0 + $0x4] sm:$0x1] }
 0x3af   :  { %4282 = vtanh.f32 %v388_v7  ;;  %v3549_v12 = vmul.f32 -1.442695, %v388_v7  ;;  %v513_v61 = vsel %vm153_vm8, %v512_v57, %v511_v60  ;;  %v668_v57 = vunpack.c.l.b16 %v605_v47 }
 0x3b0   :  { %v514_v62 = vpack.c.b16 %v513_v61, %v513_v61 }
 0x3b1   :  { %4284 = vpow2.f32 %v3549_v12 }
 0x3b2   :  { %3863 = vmatmul.mubr.msk.bf16.vlgmr.msra.gmra.mrb[8].mxu1 %vm74_vm9, %v514_v62  ;;  %v676_v62 = vrot.slane %v666_v55, 4  ;;  %v766_v55 = vld [vmem:[%s5683_s0 + $0x2c] sm:$0x1] }
 0x3b3   :  { %3875 = vmatpush3.bf16.msra.mxu1 %v4555_v2  ;;  %3878 = vmatprep.mubr.msk.bf16.mxu1 %vm4465_vm0, %v4464_v1 }
 0x3b4   :  { %3876 = vmatprep.subr.bf16.mxu1 %v4464_v1 }
 0x3b7   :  { %3877 = vmatpush3.bf16.msra.mxu1 %v4574_v5 }
 0x3b8   :  { %3890 = vmatprep.subr.bf16.mxu1 %v4464_v1 }
 0x3b9   :  { %v4283_v11 = vpop.eup %4282 }
 0x3ba   :  { %398 = vrot.lane.b32.xlu1 %v4283_v11, %s4467_s20 }
 0x3bb   :  { %v4285_v13 = vpop.eup %4284 }
 0x3bc   :  { %v392_v14 = vadd.f32 1.0, %v4285_v13 }
 0x3be   :  { %414 = vperm.xlu1 %4253, %v4584_v9   ;;  %4286 = vrcp.f32 %v392_v14 }
 0x3c8   :  { %v4287_v15 = vpop.eup %4286 }
 0x3c9   :  { %v396_v19 = vmul.f32 %v4287_v15, %v4698_v18 }
 0x42c   :  { %v399_v16 = vpop.permute.xlu1 %398 }
 0x42d   :  { %v401_v17 = vmul.f32 %v4287_v15, %v399_v16 }
 0x42f   :  { %403 = vrot.lane.b32.xlu0 %v401_v17, %s4468_s21 }
 0x43d   :  { %v4743_v63 = vpop.permute.xlu1 %414 }
 0x43e   :  { %vm416_vm11 = vcmp.eq.s32.totalorder %v4743_v63, 1 }
 0x485   :  { %v552_v11 = vpop.f32.mrb[8].mxu1 }
 0x486   :  { %v3864_v12 = vpop.f32.mrb[9].mxu1 }
 0x487   :  { %v555_v13 = vpop.f32.mrb[10].mxu1 }
 0x488   :  { %v3865_v14 = vpop.f32.mrb[11].mxu1  ;;  %v680_v13 = vrot.slane %v668_v57, 2 }
 0x4a1   :  { %v404_v20 = vpop.permute.xlu0 %403 }
 0x4a2   :  { %v4701_v21 = vadd.f32 %v404_v20, %v396_v19 }
 0x4a4   :  { %4288 = vtanh.f32 %v4701_v21  ;;  %v4772_v31 = vsel %vm416_vm11, %v4701_v21, %v4698_v18  ;;  %v593_v18 = vld [vmem:[%s5683_s0 + $0x13] sm:$0x1]  ;;  %v594_v21 = vld [vmem:[%s5683_s0 + $0x1b] sm:$0x1] }
 0x4a5   :  { %v601_v41 = vpack.c.bf16 %v593_v18, %v593_v18  ;;  %v602_v44 = vpack.c.bf16 %v594_v21, %v594_v21 }
 0x4a7   :  { %v664_v52 = vunpack.c.l.b16 %v601_v41  ;;  %v665_v53 = vunpack.c.l.b16 %v602_v44 }
 0x4a9   :  { %v672_v60 = vrot.slane %v664_v52, 6  ;;  %v674_v61 = vrot.slane %v665_v53, 5  ;;  %v762_v52 = vld [vmem:[%s5683_s0 + $0xc] sm:$0x1]  ;;  %v765_v53 = vld [vmem:[%s5683_s0 + $0x24] sm:$0x1] }
 0x4aa   :  { %v770_v57 = vpack.c.bf16 %v762_v52, %v762_v52 }
 0x4ae   :  { %v4289_v49 = vpop.eup %4288 }
 0x4af   :  { %409 = vrot.lane.b32.xlu0 %v4289_v49, %s4467_s20  ;;  %v662_v49 = vunpack.c.l.b16 %v599_v39 }
 0x521   :  { %v410_v4 = vpop.permute.xlu0 %409 }
 0x522   :  { %v4745_v6 = vmul.f32 %v4287_v15, %v410_v4  ;;  %v4470_v15 = vmov 2  }
 0x523   :  { %4254 = vset.pattern.permute.xlu0 %v4470_v15 }
 0x524   :  { %v4752_v7 = vsel %vm416_vm11, %v4745_v6, %v4680_v54 }
 0x525   :  { %v437_v10 = vpack.c.bf16 %v4752_v7, %v4752_v7 }
 0x527   :  { %439 = vrot.lane.b32.xlu1 %v437_v10, %s4468_s21  ;;  %v671_v10 = vsel %vm135_vm2, %v670_v59, %v662_v49  ;;  %v767_v59 = vld [vmem:[%s5683_s0 + $0x34] sm:$0x1] }
 0x528   :  { %v673_v12 = vsel %vm138_vm3, %v672_v60, %v671_v10  ;;  %v768_v60 = vld [vmem:[%s5683_s0 + $0x3c] sm:$0x1]  ;;  %v775_v10 = vpack.c.bf16 %v767_v59, %v767_v59 }
 0x529   :  { %v675_v14 = vsel %vm141_vm4, %v674_v61, %v673_v12 }
 0x52a   :  { %v677_v15 = vsel %vm144_vm5, %v676_v62, %v675_v14  ;;  %v773_v62 = vpack.c.bf16 %v765_v53, %v765_v53 }
 0x599   :  { %v440_v16 = vpop.permute.xlu1 %439 }
 0x59a   :  { %3855 = vmatmul.mubr.msk.bf16.vlgmr.msra.gmra.mrb[8].mxu0 %vm74_vm9, %v440_v16  ;;  %v682_v16 = vrot.slane %v669_v58, 1 }
 0x59b   :  { %3867 = vmatpush3.bf16.msra.mxu0 %v4540_v0  ;;  %3870 = vmatprep.mubr.msk.bf16.mxu0 %vm4465_vm0, %v4464_v1 }
 0x59c   :  { %3868 = vmatprep.subr.bf16.mxu0 %v4464_v1 }
 0x59f   :  { %3869 = vmatpush3.bf16.msra.mxu0 %v4561_v3 }
 0x5a0   :  { %3882 = vmatprep.subr.bf16.mxu0 %v4464_v1 }
 0x66d   :  { %v478_v17 = vpop.f32.mrb[8].mxu0 }
 0x66e   :  { %v553_v19 = vadd.f32 %v552_v11, %v478_v17  ;;  %v3856_v20 = vpop.f32.mrb[9].mxu0  ;;  %v678_v11 = vrot.slane %v667_v56, 3  ;;  %v769_v56 = vpack.c.bf16 %v761_v50, %v761_v50 }
 0x66f   :  { %v481_v22 = vpop.f32.mrb[10].mxu0 }
 0x670   :  { %v558_v23 = vadd.f32 %v4632_v51, %v553_v19  ;;  %v3857_v8 = vpop.f32.mrb[11].mxu0  ;;  %v679_v17 = vsel %vm147_vm6, %v678_v11, %v677_v15  ;;  %v776_v11 = vpack.c.bf16 %v768_v60, %v768_v60  ;;  %v832_v12 = vunpack.c.l.b16 %v769_v56 }
 0x671   :  { %v681_v19 = vsel %vm150_vm7, %v680_v13, %v679_v17  ;;  %v833_v13 = vunpack.c.l.b16 %v770_v57  ;;  %v836_v15 = vunpack.c.l.b16 %v773_v62  ;;  %v932_v62 = vld [vmem:[%s5683_s0 + $0xd] sm:$0x1] }
 0x672   :  { %4290 = vtanh.f32 %v558_v23  ;;  %v3552_v25 = vmul.f32 -1.442695, %v558_v23  ;;  %v683_v20 = vsel %vm153_vm8, %v682_v16, %v681_v19  ;;  %v419_v23 = vsel %vm416_vm11, %v4745_v6, 0.0 }
 0x673   :  { %v684_v22 = vpack.c.b16 %v683_v20, %v683_v20  ;;  %v838_v19 = vunpack.c.l.b16 %v775_v10  ;;  %v839_v20 = vunpack.c.l.b16 %v776_v11  ;;  %v936_v10 = vld [vmem:[%s5683_s0 + $0x2d] sm:$0x1] }
 0x674   :  { %4292 = vpow2.f32 %v3552_v25 }
 0x675   :  { %3879 = vmatmul.mubr.msk.bf16.vlgmr.msra.gmra.mrb[12].mxu1 %vm74_vm9, %v684_v22  ;;  %v840_v22 = vrot.slane %v833_v13, 7 }
 0x676   :  { %3891 = vmatpush3.bf16.msra.mxu1 %v4555_v2  ;;  %3894 = vmatprep.mubr.msk.bf16.mxu1 %vm4465_vm0, %v4464_v1 }
 0x677   :  { %3892 = vmatprep.subr.bf16.mxu1 %v4464_v1 }
 0x67a   :  { %3893 = vmatpush3.bf16.msra.mxu1 %v4574_v5 }
 0x67b   :  { %3906 = vmatprep.subr.bf16.mxu1 %v4464_v1 }
 0x67c   :  { %v4291_v24 = vpop.eup %4290 }
 0x67d   :  { %568 = vrot.lane.b32.xlu0 %v4291_v24, %s4467_s20 }
 0x67e   :  { %v4293_v26 = vpop.eup %4292 }
 0x67f   :  { %v562_v27 = vadd.f32 1.0, %v4293_v26  ;;  %v420_v26 = vmax.f32 %v4680_v54, %v419_v23  ;;  %v4471_v54 = vmov 3  }
 0x681   :  { %584 = vperm.xlu0 %4254, %v4584_v9   ;;  %4294 = vrcp.f32 %v562_v27 }
 0x685   :  { %4255 = vset.pattern.permute.xlu0 %v4471_v54 }
 0x68b   :  { %v4295_v28 = vpop.eup %4294 }
 0x68c   :  { %v566_v32 = vmul.f32 %v4295_v28, %v4772_v31 }
 0x6ef   :  { %v569_v29 = vpop.permute.xlu0 %568 }
 0x6f0   :  { %v571_v30 = vmul.f32 %v4295_v28, %v569_v29 }
 0x6f2   :  { %573 = vrot.lane.b32.xlu1 %v571_v30, %s4468_s21 }
 0x700   :  { %v585_v8 = vpop.permute.xlu0 %584 }
 0x701   :  { %vm586_vm12 = vcmp.eq.s32.totalorder %v585_v8, 1 }
 0x748   :  { %v722_v63 = vpop.f32.mrb[12].mxu1 }
 0x749   :  { %v3880_v6 = vpop.f32.mrb[13].mxu1 }
 0x764   :  { %v574_v33 = vpop.permute.xlu1 %573 }
 0x765   :  { %v4775_v34 = vadd.f32 %v574_v33, %v566_v32  ;;  %v725_v33 = vpop.f32.mrb[14].mxu1 }
 0x766   :  { %v852_v33 = vrot.slane %v839_v20, 1 }
 0x767   :  { %4296 = vtanh.f32 %v4775_v34  ;;  %v4845_v46 = vsel %vm586_vm12, %v4775_v34, %v4772_v31  ;;  %v763_v31 = vld [vmem:[%s5683_s0 + $0x14] sm:$0x1]  ;;  %v764_v34 = vld [vmem:[%s5683_s0 + $0x1c] sm:$0x1] }
 0x768   :  { %v771_v58 = vpack.c.bf16 %v763_v31, %v763_v31  ;;  %v772_v61 = vpack.c.bf16 %v764_v34, %v764_v34 }
 0x76a   :  { %v834_v14 = vunpack.c.l.b16 %v771_v58  ;;  %v835_v16 = vunpack.c.l.b16 %v772_v61  ;;  %v931_v61 = vld [vmem:[%s5683_s0 + $0x5] sm:$0x1] }
 0x76b   :  { %v939_v11 = vpack.c.bf16 %v931_v61, %v931_v61 }
 0x76c   :  { %v842_v23 = vrot.slane %v834_v14, 6  ;;  %v844_v8 = vrot.slane %v835_v16, 5  ;;  %v937_v14 = vld [vmem:[%s5683_s0 + $0x35] sm:$0x1]  ;;  %v938_v16 = vld [vmem:[%s5683_s0 + $0x3d] sm:$0x1] }
 0x76d   :  { %v945_v20 = vpack.c.bf16 %v937_v14, %v937_v14 }
 0x771   :  { %v4297_v4 = vpop.eup %4296 }
 0x772   :  { %579 = vrot.lane.b32.xlu1 %v4297_v4, %s4467_s20  ;;  %v774_v4 = vpack.c.bf16 %v766_v55, %v766_v55 }
 0x774   :  { %v837_v17 = vunpack.c.l.b16 %v774_v4  ;;  %v935_v4 = vld [vmem:[%s5683_s0 + $0x25] sm:$0x1] }
 0x7e4   :  { %v580_v24 = vpop.permute.xlu1 %579 }
 0x7e5   :  { %v582_v25 = vmul.f32 %v4295_v28, %v580_v24  ;;  %v3881_v28 = vpop.f32.mrb[15].mxu1  ;;  %v846_v24 = vrot.slane %v836_v15, 4 }
 0x7e7   :  { %v589_v27 = vsel %vm586_vm12, %v582_v25, 0.0  ;;  %v4824_v29 = vsel %vm586_vm12, %v582_v25, %v4752_v7  ;;  %vm2073_vm12 = vcmask 23568  }
 0x7e8   :  { %v4826_v30 = vmax.f32 %v420_v26, %v589_v27  ;;  %v607_v32 = vpack.c.bf16 %v4824_v29, %v4824_v29  ;;  %v841_v26 = vsel %vm135_vm2, %v840_v22, %v832_v12  ;;  %v848_v27 = vrot.slane %v837_v17, 3 }
 0x7e9   :  { %v940_v12 = vpack.c.bf16 %v932_v62, %v932_v62  ;;  %v943_v17 = vpack.c.bf16 %v935_v4, %v935_v4  ;;  %v946_v22 = vpack.c.bf16 %v938_v16, %v938_v16 }
 0x7ea   :  { %609 = vrot.lane.b32.xlu1 %v607_v32, %s4468_s21  ;;  %v843_v32 = vsel %vm138_vm3, %v842_v23, %v841_v26  ;;  %v1002_v23 = vunpack.c.l.b16 %v939_v11 }
 0x7eb   :  { %v845_v6 = vsel %vm141_vm4, %v844_v8, %v843_v32  ;;  %v1003_v8 = vunpack.c.l.b16 %v940_v12  ;;  %v1006_v26 = vunpack.c.l.b16 %v943_v17  ;;  %v1008_v32 = vunpack.c.l.b16 %v945_v20  ;;  %v1101_v20 = vld [vmem:[%s5683_s0 + $0x6] sm:$0x1] }
 0x7ec   :  { %v847_v28 = vsel %vm144_vm5, %v846_v24, %v845_v6 }
 0x7ed   :  { %v1010_v6 = vrot.slane %v1003_v8, 7  ;;  %v1106_v8 = vld [vmem:[%s5683_s0 + $0x2e] sm:$0x1] }
 0x85c   :  { %v610_v35 = vpop.permute.xlu1 %609 }
 0x85d   :  { %3871 = vmatmul.mubr.msk.bf16.vlgmr.msra.gmra.mrb[12].mxu0 %vm74_vm9, %v610_v35  ;;  %v849_v35 = vsel %vm147_vm6, %v848_v27, %v847_v28 }
 0x85e   :  { %3883 = vmatpush3.bf16.msra.mxu0 %v4540_v0  ;;  %3886 = vmatprep.mubr.msk.bf16.mxu0 %vm4465_vm0, %v4464_v1 }
 0x85f   :  { %3884 = vmatprep.subr.bf16.mxu0 %v4464_v1 }
 0x862   :  { %3885 = vmatpush3.bf16.msra.mxu0 %v4561_v3 }
 0x863   :  { %3898 = vmatprep.subr.bf16.mxu0 %v4464_v1 }
 0x930   :  { %v648_v7 = vpop.f32.mrb[12].mxu0 }
 0x931   :  { %v723_v36 = vadd.f32 %v722_v63, %v648_v7  ;;  %v3872_v18 = vpop.f32.mrb[13].mxu0  ;;  %v850_v63 = vrot.slane %v838_v19, 2  ;;  %v944_v19 = vpack.c.bf16 %v936_v10, %v936_v10 }
 0x932   :  { %v651_v21 = vpop.f32.mrb[14].mxu0 }
 0x933   :  { %v728_v37 = vadd.f32 %v4632_v51, %v723_v36  ;;  %v3873_v38 = vpop.f32.mrb[15].mxu0  ;;  %v851_v54 = vsel %vm150_vm7, %v850_v63, %v849_v35  ;;  %v1007_v27 = vunpack.c.l.b16 %v944_v19  ;;  %v1009_v63 = vunpack.c.l.b16 %v946_v22  ;;  %v1102_v22 = vld [vmem:[%s5683_s0 + $0xe] sm:$0x1] }
 0x934   :  { %v853_v7 = vsel %vm153_vm8, %v852_v33, %v851_v54  ;;  %v1016_v35 = vrot.slane %v1006_v26, 4 }
 0x935   :  { %4298 = vtanh.f32 %v728_v37  ;;  %v3555_v40 = vmul.f32 -1.442695, %v728_v37  ;;  %v854_v36 = vpack.c.b16 %v853_v7, %v853_v7  ;;  %v1011_v7 = vsel %vm135_vm2, %v1010_v6, %v1002_v23  ;;  %v1105_v23 = vld [vmem:[%s5683_s0 + $0x26] sm:$0x1] }
 0x936   :  { %v1113_v6 = vpack.c.bf16 %v1105_v23, %v1105_v23 }
 0x937   :  { %4300 = vpow2.f32 %v3555_v40  ;;  %3895 = vmatmul.mubr.msk.bf16.vlgmr.msra.gmra.mrb[16].mxu1 %vm74_vm9, %v854_v36  ;;  %v1018_v36 = vrot.slane %v1007_v27, 3  ;;  %v1107_v27 = vld [vmem:[%s5683_s0 + $0x36] sm:$0x1] }
 0x938   :  { %3907 = vmatpush3.bf16.msra.mxu1 %v4555_v2  ;;  %3910 = vmatprep.mubr.msk.bf16.mxu1 %vm4465_vm0, %v4464_v1 }
 0x939   :  { %3908 = vmatprep.subr.bf16.mxu1 %v4464_v1 }
 0x93c   :  { %3909 = vmatpush3.bf16.msra.mxu1 %v4574_v5 }
 0x93d   :  { %3922 = vmatprep.subr.bf16.mxu1 %v4464_v1 }
 0x93f   :  { %v4299_v39 = vpop.eup %4298 }
 0x940   :  { %738 = vrot.lane.b32.xlu0 %v4299_v39, %s4467_s20 }
 0x941   :  { %v4301_v41 = vpop.eup %4300 }
 0x942   :  { %v732_v42 = vadd.f32 1.0, %v4301_v41 }
 0x944   :  { %754 = vperm.xlu0 %4255, %v4584_v9   ;;  %4302 = vrcp.f32 %v732_v42 }
 0x94e   :  { %v4303_v43 = vpop.eup %4302 }
 0x94f   :  { %v736_v47 = vmul.f32 %v4303_v43, %v4845_v46 }
 0x9b2   :  { %v739_v44 = vpop.permute.xlu0 %738 }
 0x9b3   :  { %v741_v45 = vmul.f32 %v4303_v43, %v739_v44 }
 0x9b5   :  { %743 = vrot.lane.b32.xlu1 %v741_v45, %s4468_s21 }
 0x9c3   :  { %v755_v18 = vpop.permute.xlu0 %754 }
 0x9c4   :  { %vm756_vm13 = vcmp.eq.s32.totalorder %v755_v18, 1 }
 0xa0a   :  { %v892_v5 = vpop.f32.mrb[16].mxu1 }
 0xa0b   :  { %v3896_v41 = vpop.f32.mrb[17].mxu1 }
 0xa0c   :  { %v895_v42 = vpop.f32.mrb[18].mxu1 }
 0xa27   :  { %v744_v48 = vpop.permute.xlu1 %743 }
 0xa28   :  { %v4848_v49 = vadd.f32 %v744_v48, %v736_v47 }
 0xa2a   :  { %4304 = vtanh.f32 %v4848_v49  ;;  %v4916_v57 = vsel %vm756_vm13, %v4848_v49, %v4845_v46  ;;  %v933_v46 = vld [vmem:[%s5683_s0 + $0x15] sm:$0x1]  ;;  %v934_v49 = vld [vmem:[%s5683_s0 + $0x1d] sm:$0x1] }
 0xa2b   :  { %v941_v13 = vpack.c.bf16 %v933_v46, %v933_v46  ;;  %v942_v15 = vpack.c.bf16 %v934_v49, %v934_v49 }
 0xa2d   :  { %v1004_v24 = vunpack.c.l.b16 %v941_v13 }
 0xa2f   :  { %v1012_v33 = vrot.slane %v1004_v24, 6  ;;  %v1109_v24 = vpack.c.bf16 %v1101_v20, %v1101_v20 }
 0xa31   :  { %v1013_v18 = vsel %vm138_vm3, %v1012_v33, %v1011_v7  ;;  %v1114_v33 = vpack.c.bf16 %v1106_v8, %v1106_v8 }
 0xa34   :  { %v4305_v25 = vpop.eup %4304 }
 0xa35   :  { %749 = vrot.lane.b32.xlu1 %v4305_v25, %s4467_s20  ;;  %v1005_v25 = vunpack.c.l.b16 %v942_v15 }
 0xa37   :  { %v1014_v28 = vrot.slane %v1005_v25, 5  ;;  %v1110_v25 = vpack.c.bf16 %v1102_v22, %v1102_v22 }
 0xa39   :  { %v1173_v7 = vunpack.c.l.b16 %v1110_v25 }
 0xaa7   :  { %v750_v21 = vpop.permute.xlu1 %749 }
 0xaa8   :  { %v752_v37 = vmul.f32 %v4303_v43, %v750_v21  ;;  %v3897_v43 = vpop.f32.mrb[19].mxu1  ;;  %v1020_v21 = vrot.slane %v1008_v32, 2  ;;  %v1108_v32 = vld [vmem:[%s5683_s0 + $0x3e] sm:$0x1] }
 0xaaa   :  { %v4891_v38 = vsel %vm756_vm13, %v752_v37, 0.0  ;;  %v4895_v39 = vsel %vm756_vm13, %v752_v37, %v4824_v29  ;;  %v4472_v29 = vmov 4   ;;  %v1015_v37 = vsel %vm141_vm4, %v1014_v28, %v1013_v18 }
 0xaab   :  { %v760_v2 = vmax.f32 %v4826_v30, %v4891_v38  ;;  %v777_v40 = vpack.c.bf16 %v4895_v39, %v4895_v39  ;;  %4256 = vset.pattern.permute.xlu0 %v4472_v29  ;;  %v4958_v29 = vld [vmem:[%s5686_s3] sm:$0xff]   ;;  %v4999_v30 = vld [vmem:[%s5687_s4 + $0x8] sm:$0xff]   ;;  %v4473_v38 = vmov 5   ;;  %v1115_v28 = vpack.c.bf16 %v1107_v27, %v1107_v27 }
 0xaad   :  { %779 = vrot.lane.b32.xlu1 %v777_v40, %s4468_s21  ;;  %v1022_v40 = vrot.slane %v1009_v63, 1 }
 0xb1f   :  { %v780_v44 = vpop.permute.xlu1 %779 }
 0xb20   :  { %3887 = vmatmul.mubr.msk.bf16.vlgmr.msra.gmra.mrb[16].mxu0 %vm74_vm9, %v780_v44 }
 0xb21   :  { %3899 = vmatpush3.bf16.msra.mxu0 %v4540_v0  ;;  %3902 = vmatprep.mubr.msk.bf16.mxu0 %vm4465_vm0, %v4464_v1 }
 0xb22   :  { %3900 = vmatprep.subr.bf16.mxu0 %v4464_v1 }
 0xb25   :  { %3901 = vmatpush3.bf16.msra.mxu0 %v4561_v3 }
 0xb26   :  { %3914 = vmatprep.subr.bf16.mxu0 %v4464_v1 }
 0xbf3   :  { %v818_v45 = vpop.f32.mrb[16].mxu0 }
 0xbf4   :  { %v893_v47 = vadd.f32 %v892_v5, %v818_v45  ;;  %v3888_v48 = vpop.f32.mrb[17].mxu0  ;;  %v1017_v5 = vsel %vm144_vm5, %v1016_v35, %v1015_v37  ;;  %v4961_v45 = vld [vmem:[#allocation2] sm:$0xff]  ;;  %v1116_v35 = vpack.c.bf16 %v1108_v32, %v1108_v32  ;;  %v1177_v37 = vunpack.c.l.b16 %v1114_v33 }
 0xbf5   :  { %v821_v50 = vpop.f32.mrb[18].mxu0  ;;  %v1019_v41 = vsel %vm147_vm6, %v1018_v36, %v1017_v5 }
 0xbf6   :  { %v898_v52 = vadd.f32 %v4632_v51, %v893_v47  ;;  %v3889_v31 = vpop.f32.mrb[19].mxu0  ;;  %v1021_v42 = vsel %vm150_vm7, %v1020_v21, %v1019_v41  ;;  %v4969_v47 = vld [vmem:[%s5686_s3 + $0x8] sm:$0xff]   ;;  %v1176_v21 = vunpack.c.l.b16 %v1113_v6  ;;  %v1179_v5 = vunpack.c.l.b16 %v1116_v35 }
 0xbf7   :  { %v1023_v43 = vsel %vm153_vm8, %v1022_v40, %v1021_v42  ;;  %v1178_v40 = vunpack.c.l.b16 %v1115_v28  ;;  %v1180_v41 = vrot.slane %v1173_v7, 7  ;;  %v1272_v7 = vld [vmem:[%s5683_s0 + $0xf] sm:$0x1] }
 0xbf8   :  { %4306 = vtanh.f32 %v898_v52  ;;  %v3558_v34 = vmul.f32 -1.442695, %v898_v52  ;;  %v1024_v44 = vpack.c.b16 %v1023_v43, %v1023_v43 }
 0xbfa   :  { %4308 = vpow2.f32 %v3558_v34  ;;  %3911 = vmatmul.mubr.msk.bf16.vlgmr.msra.gmra.mrb[20].mxu1 %vm74_vm9, %v1024_v44  ;;  %v1186_v44 = vrot.slane %v1176_v21, 4 }
 0xbfb   :  { %3923 = vmatpush3.bf16.msra.mxu1 %v4958_v29  ;;  %3926 = vmatprep.mubr.msk.bf16.mxu1 %vm4465_vm0, %v4961_v45 }
 0xbfc   :  { %3924 = vmatprep.subr.bf16.mxu1 %v4961_v45 }
 0xbff   :  { %3925 = vmatpush3.bf16.msra.mxu1 %v4969_v47 }
 0xc00   :  { %3938 = vmatprep.subr.bf16.mxu1 %v4961_v45 }
 0xc02   :  { %v4307_v0 = vpop.eup %4306 }
 0xc03   :  { %908 = vrot.lane.b32.xlu0 %v4307_v0, %s4467_s20 }
 0xc04   :  { %v4309_v3 = vpop.eup %4308 }
 0xc05   :  { %v902_v53 = vadd.f32 1.0, %v4309_v3 }
 0xc07   :  { %924 = vperm.xlu0 %4256, %v4584_v9   ;;  %4310 = vrcp.f32 %v902_v53 }
 0xc0b   :  { %4257 = vset.pattern.permute.xlu0 %v4473_v38 }
 0xc11   :  { %v4311_v1 = vpop.eup %4310 }
 0xc12   :  { %v906_v58 = vmul.f32 %v4311_v1, %v4916_v57 }
 0xc75   :  { %v909_v55 = vpop.permute.xlu0 %908 }
 0xc76   :  { %v911_v56 = vmul.f32 %v4311_v1, %v909_v55 }
 0xc78   :  { %913 = vrot.lane.b32.xlu1 %v911_v56, %s4468_s21 }
 0xc86   :  { %v925_v48 = vpop.permute.xlu0 %924 }
 0xc87   :  { %vm926_vm14 = vcmp.eq.s32.totalorder %v925_v48, 1 }
 0xccd   :  { %v1062_v53 = vpop.f32.mrb[20].mxu1 }
 0xcce   :  { %v3912_v55 = vpop.f32.mrb[21].mxu1 }
 0xccf   :  { %v1192_v55 = vrot.slane %v1179_v5, 1  ;;  %v1277_v5 = vld [vmem:[%s5683_s0 + $0x37] sm:$0x1] }
 0xcea   :  { %v914_v59 = vpop.permute.xlu1 %913 }
 0xceb   :  { %v4919_v60 = vadd.f32 %v914_v59, %v906_v58 }
 0xced   :  { %4312 = vtanh.f32 %v4919_v60 }
 0xcf7   :  { %v4313_v54 = vpop.eup %4312 }
 0xcf8   :  { %919 = vrot.lane.b32.xlu1 %v4313_v54, %s4467_s20  ;;  %v1172_v54 = vunpack.c.l.b16 %v1109_v24 }
 0xd6a   :  { %v920_v50 = vpop.permute.xlu1 %919 }
 0xd6b   :  { %v922_v52 = vmul.f32 %v4311_v1, %v920_v50  ;;  %v1065_v1 = vpop.f32.mrb[22].mxu1  ;;  %v1181_v50 = vsel %vm135_vm2, %v1180_v41, %v1172_v54  ;;  %v1271_v54 = vld [vmem:[%s5683_s0 + $0x7] sm:$0x1]  ;;  %v1278_v41 = vld [vmem:[%s5683_s0 + $0x3f] sm:$0x1] }
 0xd6c   :  { %v3913_v56 = vpop.f32.mrb[23].mxu1  ;;  %v1279_v21 = vpack.c.bf16 %v1271_v54, %v1271_v54 }
 0xd6d   :  { %v929_v31 = vsel %vm926_vm14, %v922_v52, 0.0  ;;  %v4976_v0 = vsel %vm926_vm14, %v922_v52, %v4895_v39  ;;  %v4990_v39 = vld [vmem:[%s5687_s4] sm:$0xff]   ;;  %v1188_v52 = vrot.slane %v1177_v37, 3  ;;  %v1280_v37 = vpack.c.bf16 %v1272_v7, %v1272_v7 }
 0xd6e   :  { %v4981_v34 = vmax.f32 %v760_v2, %v929_v31  ;;  %v947_v3 = vpack.c.bf16 %v4976_v0, %v4976_v0 }
 0xd70   :  { %949 = vrot.lane.b32.xlu1 %v947_v3, %s4468_s21  ;;  %v1190_v3 = vrot.slane %v1178_v40, 2 }
 0xde2   :  { %v950_v58 = vpop.permute.xlu1 %949 }
 0xde3   :  { %3903 = vmatmul.mubr.msk.bf16.vlgmr.msra.gmra.mrb[20].mxu0 %vm74_vm9, %v950_v58 }
 0xde4   :  { %3915 = vmatpush3.bf16.msra.mxu0 %v4990_v39  ;;  %3918 = vmatprep.mubr.msk.bf16.mxu0 %vm4465_vm0, %v4961_v45 }
 0xde5   :  { %3916 = vmatprep.subr.bf16.mxu0 %v4961_v45 }
 0xde8   :  { %3917 = vmatpush3.bf16.msra.mxu0 %v4999_v30 }
 0xde9   :  { %3930 = vmatprep.subr.bf16.mxu0 %v4961_v45 }
 0xeb6   :  { %v988_v2 = vpop.f32.mrb[20].mxu0 }
 0xeb7   :  { %v1063_v59 = vadd.f32 %v1062_v53, %v988_v2  ;;  %v3904_v61 = vpop.f32.mrb[21].mxu0 }
 0xeb8   :  { %v991_v62 = vpop.f32.mrb[22].mxu0 }
 0xeb9   :  { %v1068_v46 = vadd.f32 %v4632_v51, %v1063_v59  ;;  %v3905_v49 = vpop.f32.mrb[23].mxu0  ;;  %v5010_v51 = vsel %vm926_vm14, %v4919_v60, %v4916_v57  ;;  %v1103_v57 = vld [vmem:[%s5683_s0 + $0x16] sm:$0x1]  ;;  %v1104_v60 = vld [vmem:[%s5683_s0 + $0x1e] sm:$0x1] }
 0xeba   :  { %v1111_v26 = vpack.c.bf16 %v1103_v57, %v1103_v57  ;;  %v1112_v63 = vpack.c.bf16 %v1104_v60, %v1104_v60  ;;  %v5077_v57 = vld [vmem:[%s5688_s5] ss:$0 sm:$0xff] }
 0xebb   :  { %4314 = vtanh.f32 %v1068_v46  ;;  %v3561_v10 = vmul.f32 -1.442695, %v1068_v46 }
 0xebc   :  { %v1174_v36 = vunpack.c.l.b16 %v1111_v26  ;;  %v1175_v18 = vunpack.c.l.b16 %v1112_v63 }
 0xebd   :  { %4316 = vpow2.f32 %v3561_v10 }
 0xebe   :  { %v1182_v42 = vrot.slane %v1174_v36, 6  ;;  %v1184_v43 = vrot.slane %v1175_v18, 5  ;;  %v1275_v36 = vld [vmem:[%s5683_s0 + $0x27] sm:$0x1]  ;;  %v1276_v18 = vld [vmem:[%s5683_s0 + $0x2f] sm:$0x1] }
 0xec0   :  { %v1183_v31 = vsel %vm138_vm3, %v1182_v42, %v1181_v50  ;;  %v1286_v50 = vpack.c.bf16 %v1278_v41, %v1278_v41 }
 0xec1   :  { %v1185_v53 = vsel %vm141_vm4, %v1184_v43, %v1183_v31  ;;  %v1283_v43 = vpack.c.bf16 %v1275_v36, %v1275_v36  ;;  %v1343_v31 = vunpack.c.l.b16 %v1280_v37  ;;  %v4475_v37 = vmov 7  }
 0xec2   :  { %v1187_v1 = vsel %vm144_vm5, %v1186_v44, %v1185_v53  ;;  %v1284_v44 = vpack.c.bf16 %v1276_v18, %v1276_v18 }
 0xec3   :  { %v1189_v56 = vsel %vm147_vm6, %v1188_v52, %v1187_v1  ;;  %v1342_v52 = vunpack.c.l.b16 %v1279_v21 }
 0xec4   :  { %v1191_v58 = vsel %vm150_vm7, %v1190_v3, %v1189_v56  ;;  %v1347_v1 = vunpack.c.l.b16 %v1284_v44 }
 0xec5   :  { %v4315_v4 = vpop.eup %4314  ;;  %v1193_v38 = vsel %vm153_vm8, %v1192_v55, %v1191_v58  ;;  %v1346_v55 = vunpack.c.l.b16 %v1283_v43  ;;  %v1349_v58 = vunpack.c.l.b16 %v1286_v50  ;;  %v1472_v50 = vld [vmem:[%s5691_s8] sm:$0xf] }
 0xec6   :  { %1078 = vrot.lane.b32.xlu0 %v4315_v4, %s4467_s20  ;;  %v1194_v2 = vpack.c.b16 %v1193_v38, %v1193_v38  ;;  %v1350_v38 = vrot.slane %v1343_v31, 7 }
 0xec7   :  { %v4317_v11 = vpop.eup %4316 }
 0xec8   :  { %v1072_v12 = vadd.f32 1.0, %v4317_v11  ;;  %3927 = vmatmul.mubr.msk.bf16.vlgmr.msra.gmra.mrb[24].mxu1 %vm74_vm9, %v1194_v2 }
 0xec9   :  { %3939 = vmatpush3.bf16.msra.mxu1 %v4958_v29  ;;  %3942 = vmatprep.mubr.msk.bf16.mxu1 %vm4465_vm0, %v4961_v45 }
 0xeca   :  { %1094 = vperm.xlu0 %4257, %v4584_v9   ;;  %4318 = vrcp.f32 %v1072_v12  ;;  %3940 = vmatprep.subr.bf16.mxu1 %v4961_v45 }
 0xecd   :  { %3941 = vmatpush3.bf16.msra.mxu1 %v4969_v47 }
 0xece   :  { %3954 = vmatprep.subr.bf16.mxu1 %v4961_v45 }
 0xed4   :  { %v4319_v13 = vpop.eup %4318 }
 0xed5   :  { %v1076_v15 = vmul.f32 %v4319_v13, %v5010_v51 }
 0xf38   :  { %v1079_v14 = vpop.permute.xlu0 %1078 }
 0xf39   :  { %v1081_v16 = vmul.f32 %v4319_v13, %v1079_v14 }
 0xf3b   :  { %1083 = vrot.lane.b32.xlu1 %v1081_v16, %s4468_s21 }
 0xf49   :  { %v1095_v59 = vpop.permute.xlu0 %1094 }
 0xf4a   :  { %vm1096_vm15 = vcmp.eq.s32.totalorder %v1095_v59, 1 }
 0xf9b   :  { %v1232_v11 = vpop.f32.mrb[24].mxu1 }
 0xf9c   :  { %v3928_v12 = vpop.f32.mrb[25].mxu1 }
 0xf9d   :  { %v1235_v14 = vpop.f32.mrb[26].mxu1 }
 0xfad   :  { %v1084_v17 = vpop.permute.xlu1 %1083 }
 0xfae   :  { %v5013_v19 = vadd.f32 %v1084_v17, %v1076_v15 }
 0xfb0   :  { %4320 = vtanh.f32 %v5013_v19  ;;  %v5086_v6 = vsel %vm1096_vm15, %v5013_v19, %v5010_v51  ;;  %v1273_v51 = vld [vmem:[%s5683_s0 + $0x17] sm:$0x1]  ;;  %v1274_v19 = vld [vmem:[%s5683_s0 + $0x1f] sm:$0x1] }
 0xfb1   :  { %v1281_v40 = vpack.c.bf16 %v1273_v51, %v1273_v51  ;;  %v1282_v42 = vpack.c.bf16 %v1274_v19, %v1274_v19 }
 0xfb3   :  { %v1344_v3 = vunpack.c.l.b16 %v1281_v40  ;;  %v1345_v53 = vunpack.c.l.b16 %v1282_v42 }
 0xfb5   :  { %v1352_v2 = vrot.slane %v1344_v3, 6  ;;  %v1354_v59 = vrot.slane %v1345_v53, 5 }
 0xfba   :  { %v4321_v48 = vpop.eup %4320 }
 0xfbb   :  { %1089 = vrot.lane.b32.xlu1 %v4321_v48, %s4467_s20  ;;  %v1285_v48 = vpack.c.bf16 %v1277_v5, %v1277_v5 }
 0xfbd   :  { %v1348_v56 = vunpack.c.l.b16 %v1285_v48 }
 0xfbf   :  { %v1360_v14 = vrot.slane %v1348_v56, 2 }
0x102d   :  { %v1090_v61 = vpop.permute.xlu1 %1089 }
0x102e   :  { %v1092_v62 = vmul.f32 %v4319_v13, %v1090_v61  ;;  %v3929_v13 = vpop.f32.mrb[27].mxu1  ;;  %v1356_v61 = vrot.slane %v1346_v55, 4 }
0x1030   :  { %v5056_v46 = vsel %vm1096_vm15, %v1092_v62, 0.0  ;;  %v5060_v49 = vsel %vm1096_vm15, %v1092_v62, %v4976_v0  ;;  %v4474_v0 = vmov 6  }
0x1031   :  { %v1100_v4 = vmax.f32 %v4981_v34, %v5056_v46  ;;  %v1117_v10 = vpack.c.bf16 %v5060_v49, %v5060_v49  ;;  %4258 = vset.pattern.permute.xlu0 %v4474_v0 }
0x1033   :  { %1119 = vrot.lane.b32.xlu1 %v1117_v10, %s4468_s21  ;;  %v1351_v10 = vsel %vm135_vm2, %v1350_v38, %v1342_v52 }
0x1034   :  { %v1353_v12 = vsel %vm138_vm3, %v1352_v2, %v1351_v10 }
0x1035   :  { %v1355_v13 = vsel %vm141_vm4, %v1354_v59, %v1353_v12  ;;  %vm1447_vm4 = vcmask 64512  }
0x1036   :  { %v1357_v0 = vsel %vm144_vm5, %v1356_v61, %v1355_v13  ;;  %1448 = vst.msk [vmem:[#allocation4] sm:$0xff] %vm1447_vm4, %v4961_v45 }
0x10a5   :  { %v1120_v16 = vpop.permute.xlu1 %1119 }
0x10a6   :  { %3919 = vmatmul.mubr.msk.bf16.vlgmr.msra.gmra.mrb[24].mxu0 %vm74_vm9, %v1120_v16  ;;  %v1362_v16 = vrot.slane %v1349_v58, 1 }
0x10a7   :  { %3931 = vmatpush3.bf16.msra.mxu0 %v4990_v39  ;;  %3934 = vmatprep.mubr.msk.bf16.mxu0 %vm4465_vm0, %v4961_v45 }
0x10a8   :  { %3932 = vmatprep.subr.bf16.mxu0 %v4961_v45 }
0x10ab   :  { %3933 = vmatpush3.bf16.msra.mxu0 %v4999_v30 }
0x10ac   :  { %3946 = vmatprep.subr.bf16.mxu0 %v4961_v45 }
0x1179   :  { %v1158_v15 = vpop.f32.mrb[24].mxu0 }
0x117a   :  { %v1233_v17 = vadd.f32 %v1232_v11, %v1158_v15  ;;  %v3920_v20 = vpop.f32.mrb[25].mxu0  ;;  %v1358_v11 = vrot.slane %v1347_v1, 3 }
0x117b   :  { %v1161_v22 = vpop.f32.mrb[26].mxu0 }
0x117c   :  { %v1238_v60 = vadd.f32 %v5077_v57, %v1233_v17  ;;  %v3921_v23 = vpop.f32.mrb[27].mxu0  ;;  %v1359_v15 = vsel %vm147_vm6, %v1358_v11, %v1357_v0  ;;  %vm1738_vm6 = vcmask 15368  }
0x117d   :  { %v1361_v17 = vsel %vm150_vm7, %v1360_v14, %v1359_v15 }
0x117e   :  { %4322 = vtanh.f32 %v1238_v60  ;;  %v3564_v24 = vmul.f32 -1.442695, %v1238_v60  ;;  %v1363_v20 = vsel %vm153_vm8, %v1362_v16, %v1361_v17 }
0x117f   :  { %v1364_v22 = vpack.c.b16 %v1363_v20, %v1363_v20 }
0x1180   :  { %4324 = vpow2.f32 %v3564_v24 }
0x1181   :  { %3943 = vmatmul.mubr.msk.bf16.vlgmr.msra.gmra.mrb[28].mxu1 %vm74_vm9, %v1364_v22 }
0x1182   :  { %3955 = vmatpush3.bf16.msra.mxu1 %v4958_v29  ;;  %3958 = vmatprep.mubr.msk.bf16.mxu1 %vm4465_vm0, %v4961_v45 }
0x1183   :  { %3956 = vmatprep.subr.bf16.mxu1 %v4961_v45 }
0x1186   :  { %3957 = vmatpush3.bf16.msra.mxu1 %v4969_v47 }
0x1187   :  { %3970 = vmatprep.subr.bf16.mxu1 %v4961_v45 }
0x1188   :  { %v4323_v8 = vpop.eup %4322 }
0x1189   :  { %1248 = vrot.lane.b32.xlu0 %v4323_v8, %s4467_s20  ;;  %3959 = vmatmul.mubr.msk.bf16.vlgmr.msra.gmra.mrb[32].mxu1 %vm74_vm9, %v1472_v50 }
0x118a   :  { %v4325_v25 = vpop.eup %4324  ;;  %3986 = vmatprep.mubr.msk.bf16.mxu1 %vm4465_vm0, %v4961_v45 }
0x118b   :  { %v1242_v26 = vadd.f32 1.0, %v4325_v25 }
0x118d   :  { %1264 = vperm.xlu0 %4258, %v4584_v9   ;;  %4326 = vrcp.f32 %v1242_v26 }
0x1191   :  { %4259 = vset.pattern.permute.xlu0 %v4475_v37 }
0x1197   :  { %v4327_v27 = vpop.eup %4326 }
0x1198   :  { %v1246_v33 = vmul.f32 %v4327_v27, %v5086_v6 }
0x11fb   :  { %v1249_v32 = vpop.permute.xlu0 %1248 }
0x11fc   :  { %v1251_v63 = vmul.f32 %v4327_v27, %v1249_v32 }
0x11fe   :  { %1253 = vrot.lane.b32.xlu1 %v1251_v63, %s4468_s21 }
0x120c   :  { %v1265_v60 = vpop.permute.xlu0 %1264 }
0x120d   :  { %vm1266_vm1 = vcmp.eq.s32.totalorder %v1265_v60, 1 }
0x1254   :  { %v1402_v63 = vpop.f32.mrb[28].mxu1 }
0x1270   :  { %v1254_v28 = vpop.permute.xlu1 %1253 }
0x1271   :  { %v5089_v35 = vadd.f32 %v1254_v28, %v1246_v33  ;;  %v3944_v33 = vpop.f32.mrb[29].mxu1 }
0x1272   :  { %v1405_v28 = vpop.f32.mrb[30].mxu1  ;;  %v1470_v33 = vlaneseq }
0x1273   :  { %4328 = vtanh.f32 %v5089_v35  ;;  %v3945_v54 = vpop.f32.mrb[31].mxu1  ;;  %v1268_v42 = vsel %vm1266_vm1, %v5089_v35, %v5086_v6  ;;  %v4476_v28 = vmov 1966171168  }
0x1274   :  { %v1557_v55 = vpop.f32.mrb[32].mxu1  ;;  %v1656_v54 = vunpack.c.l.s4 %v4476_v28 }
0x1275   :  { %v3960_v1 = vpop.f32.mrb[33].mxu1 }
0x1276   :  { %v1560_v56 = vpop.f32.mrb[34].mxu1 }
0x1277   :  { %v3961_v58 = vpop.f32.mrb[35].mxu1 }
0x127d   :  { %v4329_v62 = vpop.eup %4328 }
0x127e   :  { %1259 = vrot.lane.b32.xlu1 %v4329_v62, %s4467_s20 }
0x12f0   :  { %v1260_v23 = vpop.permute.xlu1 %1259 }
0x12f1   :  { %v1262_v8 = vmul.f32 %v4327_v27, %v1260_v23  ;;  %v5172_v23 = vld [vmem:[%s5689_s6] sm:$0xff]  }
0x12f3   :  { %v1269_v24 = vsel %vm1266_vm1, %v1262_v8, 0.0  ;;  %v1267_v25 = vsel %vm1266_vm1, %v1262_v8, %v5060_v49  ;;  %v5178_v8 = vld [vmem:[%s5689_s6 + $0x8] sm:$0xff]  }
0x12f4   :  { %v1270_v26 = vmax.f32 %v1100_v4, %v1269_v24  ;;  %v1287_v32 = vpack.c.bf16 %v1267_v25, %v1267_v25 }
0x12f6   :  { %1289 = vrot.lane.b32.xlu1 %v1287_v32, %s4468_s21 }
0x1368   :  { %v1290_v7 = vpop.permute.xlu1 %1289 }
0x1369   :  { %3935 = vmatmul.mubr.msk.bf16.vlgmr.msra.gmra.mrb[28].mxu0 %vm74_vm9, %v1290_v7  ;;  %v1657_v7 = vunpack.c.0.s8 %v1656_v54 }
0x136a   :  { %3947 = vmatpush3.bf16.msra.mxu0 %v4990_v39  ;;  %3950 = vmatprep.mubr.msk.bf16.mxu0 %vm4465_vm0, %v4961_v45 }
0x136b   :  { %3948 = vmatprep.subr.bf16.mxu0 %v4961_v45 }
0x136e   :  { %3949 = vmatpush3.bf16.msra.mxu0 %v4999_v30 }
0x136f   :  { %3962 = vmatprep.subr.bf16.mxu0 %v4961_v45 }
0x143c   :  { %v1328_v34 = vpop.f32.mrb[28].mxu0 }
0x143d   :  { %v1403_v46 = vadd.f32 %v1402_v63, %v1328_v34  ;;  %v3936_v49 = vpop.f32.mrb[29].mxu0  ;;  %v1659_v34 = vshrl.u32 %v1470_v33, 7 }
0x143e   :  { %v1331_v4 = vpop.f32.mrb[30].mxu0 }
0x143f   :  { %v1408_v27 = vadd.f32 %v5077_v57, %v1403_v46  ;;  %v3937_v51 = vpop.f32.mrb[31].mxu0  ;;  %v5202_v46 = vld [vmem:[%s5690_s7] ss:$0 sm:$0xff]  ;;  %v5204_v49 = vsub.s32 %v1657_v7, %v1659_v34 }
0x1441   :  { %4330 = vtanh.f32 %v1408_v27  ;;  %v3567_v36 = vmul.f32 -1.442695, %v1408_v27 }
0x1443   :  { %4332 = vpow2.f32 %v3567_v36 }
0x144b   :  { %v4331_v19 = vpop.eup %4330 }
0x144c   :  { %1418 = vrot.lane.b32.xlu0 %v4331_v19, %s4467_s20 }
0x144d   :  { %v4333_v18 = vpop.eup %4332 }
0x144e   :  { %v1412_v21 = vadd.f32 1.0, %v4333_v18 }
0x1450   :  { %4334 = vrcp.f32 %v1412_v21  ;;  %1434 = vperm.xlu0 %4259, %v4584_v9  }
0x145a   :  { %v4335_v40 = vpop.eup %4334 }
0x145b   :  { %v1416_v43 = vmul.f32 %v4335_v40, %v1268_v42 }
0x14be   :  { %v1419_v5 = vpop.permute.xlu0 %1418 }
0x14bf   :  { %v1421_v41 = vmul.f32 %v4335_v40, %v1419_v5 }
0x14c1   :  { %1423 = vrot.lane.b32.xlu1 %v1421_v41, %s4468_s21 }
0x14cf   :  { %v1435_v52 = vpop.permute.xlu0 %1434 }
0x14d0   :  { %vm1436_vm2 = vcmp.eq.s32.totalorder %v1435_v52, 1 }
0x1533   :  { %v1424_v44 = vpop.permute.xlu1 %1423 }
0x1534   :  { %v1426_v48 = vadd.f32 %v1424_v44, %v1416_v43 }
0x1536   :  { %4336 = vtanh.f32 %v1426_v48 }
0x1540   :  { %v4337_v9 = vpop.eup %4336 }
0x1541   :  { %1429 = vrot.lane.b32.xlu1 %v4337_v9, %s4467_s20 }
0x15b3   :  { %v1430_v31 = vpop.permute.xlu1 %1429 }
0x15b4   :  { %v1432_v6 = vmul.f32 %v4335_v40, %v1430_v31 }
0x15b6   :  { %v1437_v35 = vsel %vm1436_vm2, %v1432_v6, 0.0  ;;  %vm2360_vm2 = vcmask 31768  }
0x15b7   :  { %v1438_v3 = vmax.f32 %v1270_v26, %v1437_v35 }
0x15b9   :  { %v1473_v53 = vpack.c.bf16 %v1438_v3, %v1438_v3 }
0x15bb   :  { %1475 = vrot.lane.b32.xlu1 %v1473_v53, %s4468_s21  ;;  %v5215_v53 = vand.u32 127, %v1470_v33 }
0x162d   :  { %v1476_v38 = vpop.permute.xlu1 %1475 }
0x162e   :  { %3951 = vmatmul.mubr.msk.bf16.vlgmr.msra.gmra.mrb[32].mxu0 %vm74_vm9, %v1476_v38  ;;  %v5221_v38 = vld [vmem:[%s5685_s2] sm:$0xff]  }
0x162f   :  { %3966 = vmatprep.mubr.msk.bf16.mxu0 %vm4465_vm0, %v4961_v45  ;;  %3963 = vmatpush3.bf16.msra.mxu0 %v5172_v23 }
0x1630   :  { %3964 = vmatprep.subr.bf16.mxu0 %v4961_v45  ;;  %3971 = vmatpush3.bf16.msra.mxu1 %v5221_v38 }
0x1631   :  { %3972 = vmatprep.subr.bf16.mxu1 %v4961_v45 }
0x1633   :  { %3965 = vmatpush3.bf16.msra.mxu0 %v5178_v8 }
0x1634   :  { %3990 = vmatprep.subr.bf16.mxu0 %v4961_v45 }
0x1701   :  { %v1514_v2 = vpop.f32.mrb[32].mxu0 }
0x1702   :  { %v1558_v59 = vadd.f32 %v1557_v55, %v1514_v2  ;;  %v3952_v61 = vpop.f32.mrb[33].mxu0  ;;  %v5228_v2 = vld [vmem:[%s5685_s2 + $0x8] sm:$0xff]  }
0x1703   :  { %v1517_v62 = vpop.f32.mrb[34].mxu0  ;;  %3973 = vmatpush3.bf16.msra.mxu1 %v5228_v2  ;;  %v5242_v61 = vld [vmem:[%s5685_s2 + $0x18] sm:$0xff]  }
0x1704   :  { %v1563_v10 = vadd.f32 %v5077_v57, %v1558_v59  ;;  %v3953_v11 = vpop.f32.mrb[35].mxu0  ;;  %v5235_v59 = vld [vmem:[%s5685_s2 + $0x10] sm:$0xff]   ;;  %3974 = vmatprep.subr.bf16.mxu1 %v4961_v45  ;;  %v5249_v62 = vld [vmem:[%s5685_s2 + $0x20] sm:$0xff]  }
0x1705   :  { %v5263_v11 = vld [vmem:[%s5685_s2 + $0x30] sm:$0xff]  }
0x1706   :  { %4338 = vtanh.f32 %v1563_v10  ;;  %v3570_v14 = vmul.f32 -1.442695, %v1563_v10  ;;  %v5256_v10 = vld [vmem:[%s5685_s2 + $0x28] sm:$0xff]  }
0x1707   :  { %3975 = vmatpush3.bf16.msra.mxu1 %v5235_v59 }
0x1708   :  { %4340 = vpow2.f32 %v3570_v14  ;;  %3976 = vmatprep.subr.bf16.mxu1 %v4961_v45 }
0x170b   :  { %3977 = vmatpush3.bf16.msra.mxu1 %v5242_v61 }
0x170c   :  { %3978 = vmatprep.subr.bf16.mxu1 %v4961_v45 }
0x170f   :  { %3979 = vmatpush3.bf16.msra.mxu1 %v5249_v62 }
0x1710   :  { %v4339_v12 = vpop.eup %4338  ;;  %3980 = vmatprep.subr.bf16.mxu1 %v4961_v45 }
0x1711   :  { %1573 = vrot.lane.b32.xlu0 %v4339_v12, %s4467_s20 }
0x1712   :  { %v4341_v13 = vpop.eup %4340 }
0x1713   :  { %v1567_v16 = vadd.f32 1.0, %v4341_v13  ;;  %3981 = vmatpush3.bf16.msra.mxu1 %v5256_v10 }
0x1714   :  { %3982 = vmatprep.subr.bf16.mxu1 %v4961_v45 }
0x1715   :  { %4342 = vrcp.f32 %v1567_v16 }
0x1717   :  { %3983 = vmatpush3.bf16.msra.mxu1 %v5263_v11 }
0x1718   :  { %3984 = vmatprep.subr.bf16.mxu1 %v4961_v45 }
0x171f   :  { %v4343_v0 = vpop.eup %4342 }
0x1720   :  { %v1571_v20 = vmul.f32 0.0, %v4343_v0 }
0x1783   :  { %v1574_v15 = vpop.permute.xlu0 %1573 }
0x1784   :  { %v1576_v17 = vmul.f32 %v4343_v0, %v1574_v15 }
0x1786   :  { %1578 = vrot.lane.b32.xlu1 %v1576_v17, %s4468_s21 }
0x17f8   :  { %v1579_v22 = vpop.permute.xlu1 %1578 }
0x17f9   :  { %v5166_v60 = vadd.f32 %v1579_v22, %v1571_v20 }
0x17fb   :  { %4344 = vtanh.f32 %v5166_v60 }
0x1805   :  { %v4345_v24 = vpop.eup %4344 }
0x1806   :  { %1584 = vrot.lane.b32.xlu0 %v4345_v24, %s4467_s20 }
0x1878   :  { %v1585_v25 = vpop.permute.xlu0 %1584 }
0x1879   :  { %v1587_v26 = vmul.f32 %v4343_v0, %v1585_v25  ;;  %v5271_v0 = vld [vmem:[%s5685_s2 + $0x38] sm:$0xff]  }
0x187a   :  { %3985 = vmatpush3.bf16.msra.mxu1 %v5271_v0 }
0x187b   :  { %v1588_v32 = vpack.c.bf16 %v1587_v26, %v1587_v26  ;;  %4034 = vmatprep.subr.bf16.mxu1 %v4961_v45  ;;  %v4477_v26 = vmov 1.0|1.0  }
0x187d   :  { %1596 = vrot.lane.b32.xlu1 %v1588_v32, %s4468_s21 }
0x18ef   :  { %v1597_v63 = vpop.permute.xlu1 %1596 }
0x18f0   :  { %3967 = vmatmul.mubr.msk.bf16.vlgmr.msra.gmra.mrb[36].mxu0 %vm74_vm9, %v1597_v63 }
0x18f1   :  { %3991 = vmatpush3.bf16.msra.mxu0 %v4990_v39  ;;  %3994 = vmatprep.mubr.msk.bf16.mxu0 %vm4465_vm0, %v4961_v45 }
0x18f2   :  { %3992 = vmatprep.subr.bf16.mxu0 %v4961_v45 }
0x18f5   :  { %3993 = vmatpush3.bf16.msra.mxu0 %v4999_v30 }
0x18f6   :  { %3998 = vmatprep.subr.bf16.mxu0 %v4961_v45 }
0x18f8   :  { %3995 = vmatmul.mubr.msk.bf16.vlgmr.msra.gmra.mrb[40].mxu0 %vm74_vm9, %v1597_v63 }
0x18f9   :  { %3999 = vmatpush3.bf16.msra.mxu0 %v4958_v29  ;;  %4002 = vmatprep.mubr.msk.bf16.mxu0 %vm4465_vm0, %v4961_v45 }
0x18fa   :  { %4000 = vmatprep.subr.bf16.mxu0 %v4961_v45 }
0x18fd   :  { %4001 = vmatpush3.bf16.msra.mxu0 %v4969_v47 }
0x18fe   :  { %4006 = vmatprep.subr.bf16.mxu0 %v4961_v45 }
0x19c3   :  { %v1647_v4 = vpop.f32.mrb[36].mxu0 }
0x19c4   :  { %v1648_v27 = vadd.f32 %v5202_v46, %v1647_v4  ;;  %v3968_v51 = vpop.f32.mrb[37].mxu0 }
0x19c5   :  { %v1650_v19 = vpop.f32.mrb[38].mxu0 }
0x19c6   :  { %v1654_v36 = vcombine.high %v1648_v27, %v1648_v27  ;;  %v1661_v18 = vrot.slane %v1648_v27, %v5204_v49  ;;  %1719 = vmax.xlane.f32.xlu0 %v1648_v27  ;;  %v3969_v21 = vpop.f32.mrb[39].mxu0 }
0x19c8   :  { %v1668_v37 = vrot.slane %v1654_v36, %v5204_v49  ;;  %v1669_v40 = vcombine.high %v1661_v18, %v1661_v18  ;;  %v1677_v5 = vrot.slane %v1661_v18, %v5204_v49  ;;  %3575 = vst.sshfl [vmem:[#allocation2 + $0x1] sm:$0x1 pattern:$0x73625140] %v1661_v18 }
0x19ca   :  { %v1670_v41 = vcombine.high %v1668_v37, %v1668_v37  ;;  %v1684_v42 = vrot.slane %v1668_v37, %v5204_v49  ;;  %v1691_v43 = vrot.slane %v1669_v40, %v5204_v49  ;;  %v1699_v44 = vcombine.high %v1677_v5, %v1677_v5  ;;  %3576 = vst.sshfl [vmem:[#allocation2 + $0x9] sm:$0x1 pattern:$0x73625140] %v1669_v40 }
0x19cb   :  { %3577 = vst.sshfl [vmem:[#allocation2 + $0x21] sm:$0x1 pattern:$0x73625140] %v1668_v37  ;;  %v5212_v48 = vpop.f32.mrb[40].mxu0 }
0x19cc   :  { %v1698_v50 = vrot.slane %v1670_v41, %v5204_v49  ;;  %v1700_v9 = vcombine.high %v1684_v42, %v1684_v42  ;;  %v1701_v52 = vcombine.high %v1691_v43, %v1691_v43  ;;  %1713 = vst [vmem:[#allocation2 + $0x11] sm:$0x1] %v1699_v44  ;;  %3578 = vst.sshfl [vmem:[#allocation2 + $0x29] sm:$0x1 pattern:$0x73625140] %v1670_v41 }
0x19cd   :  { %v3996_v31 = vpop.f32.mrb[41].mxu0 }
0x19ce   :  { %v1870_v6 = vpop.f32.mrb[42].mxu0  ;;  %v1702_v35 = vcombine.high %v1698_v50, %v1698_v50  ;;  %1714 = vst [vmem:[#allocation2 + $0x19] sm:$0x1] %v1701_v52  ;;  %1717 = vst [vmem:[#allocation2 + $0x31] sm:$0x1] %v1700_v9 }
0x19cf   :  { %v3997_v3 = vpop.f32.mrb[43].mxu0 }
0x19d0   :  { %1718 = vst [vmem:[#allocation2 + $0x39] sm:$0x1] %v1702_v35 }
0x1a53   :  { %v1720_v55 = vpop.xlane.xlu0 %1719 }
0x1a54   :  { %vm1721_vm3 = vcmp.eq.f32.partialorder %v1648_v27, %v1720_v55 }
0x1a55   :  { %v1722_v1 = vsel %vm1721_vm3, %v5215_v53, 128 }
0x1a56   :  { %v1724_v56 = vshra.s32 %v1722_v1, 16  ;;  %v1723_v12 = vand.u32 65535, %v1722_v1 }
0x1a58   :  { %v1726_v58 = vcvt.s32.f32 %v1724_v56  ;;  %v1725_v13 = vcvt.s32.f32 %v1723_v12 }
0x1a5a   :  { %1727 = vmin.xlane.f32.xlu1 %v1726_v58 }
0x1ae7   :  { %v1728_v14 = vpop.xlane.xlu1 %1727 }
0x1ae8   :  { %vm1729_vm5 = vcmp.eq.f32.partialorder %v1726_v58, %v1728_v14  ;;  %v1734_v15 = vcvt.f32.s32 %v1728_v14 }
0x1ae9   :  { %v1730_v16 = vsel %vm1729_vm5, %v1725_v13, inf }
0x1aea   :  { %1731 = vmin.xlane.f32.xlu0 %v1730_v16  ;;  %v1735_v20 = vshll.u32 %v1734_v15, 16 }
0x1b77   :  { %v1732_v17 = vpop.xlane.xlu0 %1731 }
0x1b78   :  { %v1733_v22 = vcvt.f32.s32 %v1732_v17 }
0x1b7a   :  { %v1736_v24 = vadd.s32 %v1735_v20, %v1733_v22 }
0x1b7c   :  { %v1737_v25 = vcvt.s32.f32 %v1736_v24  ;;  %vm1740_vm7 = vcmp.eq.s32.totalorder %v5215_v53, %v1736_v24 }
0x1b7d   :  { %vm3588_vm8 = vmpackc.low %vm1740_vm7, %vm1740_vm7  ;;  %vm2647_vm7 = vcmask 39968  }
0x1b7e   :  { %1739 = vst.msk [vmem:[#allocation4] sm:$0xff] %vm1738_vm6, %v1737_v25  ;;  %3987 = vmatmul.mubr.msk.bf16.vlgmr.msra.gmra.mrb[36].mxu1 %vm3588_vm8, %v4477_v26 }
0x1b7f   :  { %4035 = vmatpush3.bf16.msra.mxu1 %v4990_v39  ;;  %4038 = vmatprep.mubr.msk.bf16.mxu1 %vm4465_vm0, %v4961_v45 }
0x1b80   :  { %4036 = vmatprep.subr.bf16.mxu1 %v4961_v45 }
0x1b83   :  { %4037 = vmatpush3.bf16.msra.mxu1 %v4999_v30 }
0x1b84   :  { %4042 = vmatprep.subr.bf16.mxu1 %v4961_v45 }
0x1c51   :  { %v1826_v32 = vpop.f32.mrb[36].mxu1 }
0x1c52   :  { %v1832_v63 = vpack.c.bf16 %v1826_v32, %v1826_v32  ;;  %v3988_v33 = vpop.f32.mrb[37].mxu1 }
0x1c53   :  { %v1829_v28 = vpop.f32.mrb[38].mxu1 }
0x1c54   :  { %v3989_v54 = vpop.f32.mrb[39].mxu1  ;;  %4003 = vmatmul.mubr.msk.bf16.vlgmr.msra.gmra.mrb[44].mxu0 %vm74_vm9, %v1832_v63 }
0x1c55   :  { %4007 = vmatpush3.bf16.msra.mxu0 %v5172_v23  ;;  %4010 = vmatprep.mubr.msk.bf16.mxu0 %vm4465_vm0, %v4961_v45 }
0x1c56   :  { %4008 = vmatprep.subr.bf16.mxu0 %v4961_v45 }
0x1c59   :  { %4009 = vmatpush3.bf16.msra.mxu0 %v5178_v8 }
0x1c5a   :  { %4014 = vmatprep.subr.bf16.mxu0 %v4961_v45 }
0x1d27   :  { %v1910_v7 = vpop.f32.mrb[44].mxu0 }
0x1d28   :  { %v1911_v34 = vadd.f32 %v1910_v7, %v5212_v48  ;;  %v4004_v4 = vpop.f32.mrb[45].mxu0 }
0x1d29   :  { %v1913_v27 = vpop.f32.mrb[46].mxu0 }
0x1d2a   :  { %v1916_v51 = vadd.f32 %v5077_v57, %v1911_v34  ;;  %v4005_v19 = vpop.f32.mrb[47].mxu0 }
0x1d2c   :  { %4346 = vtanh.f32 %v1916_v51  ;;  %v3592_v18 = vmul.f32 -1.442695, %v1916_v51 }
0x1d2e   :  { %4348 = vpow2.f32 %v3592_v18 }
0x1d36   :  { %v4347_v36 = vpop.eup %4346 }
0x1d37   :  { %1926 = vrot.lane.b32.xlu0 %v4347_v36, %s4467_s20 }
0x1d38   :  { %v4349_v21 = vpop.eup %4348 }
0x1d39   :  { %v1920_v37 = vadd.f32 1.0, %v4349_v21 }
0x1d3b   :  { %4350 = vrcp.f32 %v1920_v37 }
0x1d45   :  { %v4351_v40 = vpop.eup %4350 }
0x1d46   :  { %v1924_v42 = vmul.f32 %v4351_v40, %v5166_v60 }
0x1da9   :  { %v1927_v5 = vpop.permute.xlu0 %1926 }
0x1daa   :  { %v1929_v41 = vmul.f32 %v4351_v40, %v1927_v5 }
0x1dac   :  { %1931 = vrot.lane.b32.xlu1 %v1929_v41, %s4468_s21 }
0x1e1e   :  { %v1932_v43 = vpop.permute.xlu1 %1931 }
0x1e1f   :  { %v5295_v44 = vadd.f32 %v1932_v43, %v1924_v42 }
0x1e21   :  { %4352 = vtanh.f32 %v5295_v44 }
0x1e2b   :  { %v4353_v48 = vpop.eup %4352 }
0x1e2c   :  { %1937 = vrot.lane.b32.xlu1 %v4353_v48, %s4467_s20 }
0x1e9e   :  { %v1938_v50 = vpop.permute.xlu1 %1937 }
0x1e9f   :  { %v1940_v9 = vmul.f32 %v4351_v40, %v1938_v50 }
0x1ea1   :  { %v1941_v52 = vpack.c.bf16 %v1940_v9, %v1940_v9 }
0x1ea3   :  { %1943 = vrot.lane.b32.xlu0 %v1941_v52, %s4468_s21 }
0x1f15   :  { %v1944_v31 = vpop.permute.xlu0 %1943 }
0x1f16   :  { %4011 = vmatmul.mubr.msk.bf16.vlgmr.msra.gmra.mrb[48].mxu0 %vm74_vm9, %v1944_v31  ;;  %4039 = vmatmul.mubr.msk.bf16.vlgmr.msra.gmra.mrb[40].mxu1 %vm74_vm9, %v1944_v31 }
0x1f17   :  { %4015 = vmatpush3.bf16.msra.mxu0 %v5221_v38  ;;  %4030 = vmatprep.mubr.msk.bf16.mxu0 %vm4465_vm0, %v4961_v45 }
0x1f18   :  { %4016 = vmatprep.subr.bf16.mxu0 %v4961_v45  ;;  %4043 = vmatpush3.bf16.msra.mxu1 %v4958_v29 }
0x1f19   :  { %4044 = vmatprep.subr.bf16.mxu1 %v4961_v45  ;;  %4046 = vmatprep.mubr.msk.bf16.mxu1 %vm4465_vm0, %v4961_v45 }
0x1f1b   :  { %4017 = vmatpush3.bf16.msra.mxu0 %v5228_v2 }
0x1f1c   :  { %4018 = vmatprep.subr.bf16.mxu0 %v4961_v45  ;;  %4045 = vmatpush3.bf16.msra.mxu1 %v4969_v47 }
0x1f1d   :  { %4050 = vmatprep.subr.bf16.mxu1 %v4961_v45 }
0x1f1f   :  { %4019 = vmatpush3.bf16.msra.mxu0 %v5235_v59 }
0x1f20   :  { %4020 = vmatprep.subr.bf16.mxu0 %v4961_v45 }
0x1f23   :  { %4021 = vmatpush3.bf16.msra.mxu0 %v5242_v61 }
0x1f24   :  { %4022 = vmatprep.subr.bf16.mxu0 %v4961_v45 }
0x1f27   :  { %4023 = vmatpush3.bf16.msra.mxu0 %v5249_v62 }
0x1f28   :  { %4024 = vmatprep.subr.bf16.mxu0 %v4961_v45 }
0x1f2b   :  { %4025 = vmatpush3.bf16.msra.mxu0 %v5256_v10 }
0x1f2c   :  { %4026 = vmatprep.subr.bf16.mxu0 %v4961_v45 }
0x1f2f   :  { %4027 = vmatpush3.bf16.msra.mxu0 %v5263_v11 }
0x1f30   :  { %4028 = vmatprep.subr.bf16.mxu0 %v4961_v45 }
0x1f33   :  { %4029 = vmatpush3.bf16.msra.mxu0 %v5271_v0 }
0x1f34   :  { %4078 = vmatprep.subr.bf16.mxu0 %v4961_v45 }
0x1fe9   :  { %v1982_v29 = vpop.f32.mrb[48].mxu0  ;;  %v5326_v47 = vpop.f32.mrb[40].mxu1 }
0x1fea   :  { %v1983_v60 = vadd.f32 %v5202_v46, %v1982_v29  ;;  %v4012_v6 = vpop.f32.mrb[49].mxu0  ;;  %v4040_v35 = vpop.f32.mrb[41].mxu1 }
0x1feb   :  { %v1985_v3 = vpop.f32.mrb[50].mxu0  ;;  %v2157_v55 = vpop.f32.mrb[42].mxu1 }
0x1fec   :  { %v1989_v1 = vcombine.high %v1983_v60, %v1983_v60  ;;  %v1996_v56 = vrot.slane %v1983_v60, %v5204_v49  ;;  %2054 = vmax.xlane.f32.xlu1 %v1983_v60  ;;  %v4013_v58 = vpop.f32.mrb[51].mxu0  ;;  %v4041_v12 = vpop.f32.mrb[43].mxu1 }
0x1fee   :  { %v2003_v14 = vrot.slane %v1989_v1, %v5204_v49  ;;  %v2004_v13 = vcombine.high %v1996_v56, %v1996_v56  ;;  %v2012_v16 = vrot.slane %v1996_v56, %v5204_v49  ;;  %3594 = vst.sshfl [vmem:[#allocation2 + $0x2] sm:$0x1 pattern:$0x73625140] %v1996_v56 }
0x1ff0   :  { %v2005_v15 = vcombine.high %v2003_v14, %v2003_v14  ;;  %v2019_v17 = vrot.slane %v2003_v14, %v5204_v49  ;;  %v2026_v20 = vrot.slane %v2004_v13, %v5204_v49  ;;  %v2034_v22 = vcombine.high %v2012_v16, %v2012_v16  ;;  %3595 = vst.sshfl [vmem:[#allocation2 + $0xa] sm:$0x1 pattern:$0x73625140] %v2004_v13 }
0x1ff1   :  { %3596 = vst.sshfl [vmem:[#allocation2 + $0x22] sm:$0x1 pattern:$0x73625140] %v2003_v14 }
0x1ff2   :  { %v2033_v24 = vrot.slane %v2005_v15, %v5204_v49  ;;  %v2035_v25 = vcombine.high %v2019_v17, %v2019_v17  ;;  %v2036_v32 = vcombine.high %v2026_v20, %v2026_v20  ;;  %2048 = vst [vmem:[#allocation2 + $0x12] sm:$0x1] %v2034_v22  ;;  %3597 = vst.sshfl [vmem:[#allocation2 + $0x2a] sm:$0x1 pattern:$0x73625140] %v2005_v15 }
0x1ff3   :  { %v5381_v15 = vld [vmem:[%s5686_s3 + $0x8] sm:$0xff]  }
0x1ff4   :  { %v2037_v63 = vcombine.high %v2033_v24, %v2033_v24  ;;  %2049 = vst [vmem:[#allocation2 + $0x1a] sm:$0x1] %v2036_v32  ;;  %2052 = vst [vmem:[#allocation2 + $0x32] sm:$0x1] %v2035_v25 }
0x1ff6   :  { %2053 = vst [vmem:[#allocation2 + $0x3a] sm:$0x1] %v2037_v63 }
0x2079   :  { %v2055_v33 = vpop.xlane.xlu1 %2054 }
0x207a   :  { %vm2056_vm10 = vcmp.eq.f32.partialorder %v1983_v60, %v2055_v33 }
0x207b   :  { %v2057_v28 = vsel %vm2056_vm10, %v5215_v53, 128 }
0x207c   :  { %v2059_v54 = vshra.s32 %v2057_v28, 16  ;;  %v2058_v34 = vand.u32 65535, %v2057_v28 }
0x207e   :  { %v2061_v7 = vcvt.s32.f32 %v2059_v54  ;;  %v2060_v27 = vcvt.s32.f32 %v2058_v34 }
0x2080   :  { %2062 = vmin.xlane.f32.xlu0 %v2061_v7 }
0x210d   :  { %v2063_v4 = vpop.xlane.xlu0 %2062 }
0x210e   :  { %vm2064_vm11 = vcmp.eq.f32.partialorder %v2061_v7, %v2063_v4  ;;  %v2069_v19 = vcvt.f32.s32 %v2063_v4 }
0x210f   :  { %v2065_v51 = vsel %vm2064_vm11, %v2060_v27, inf }
0x2110   :  { %2066 = vmin.xlane.f32.xlu0 %v2065_v51  ;;  %v2070_v18 = vshll.u32 %v2069_v19, 16 }
0x219d   :  { %v2067_v36 = vpop.xlane.xlu0 %2066 }
0x219e   :  { %v2068_v21 = vcvt.f32.s32 %v2067_v36 }
0x21a0   :  { %v2071_v37 = vadd.s32 %v2070_v18, %v2068_v21 }
0x21a2   :  { %v2072_v40 = vcvt.s32.f32 %v2071_v37  ;;  %vm2075_vm13 = vcmp.eq.s32.totalorder %v5215_v53, %v2071_v37 }
0x21a3   :  { %vm3599_vm14 = vmpackc.low %vm2075_vm13, %vm2075_vm13  ;;  %vm2934_vm13 = vcmask 48168  }
0x21a4   :  { %2074 = vst.msk [vmem:[#allocation4] sm:$0xff] %vm2073_vm12, %v2072_v40  ;;  %4031 = vmatmul.mubr.msk.bf16.vlgmr.msra.gmra.mrb[52].mxu0 %vm3599_vm14, %v4477_v26 }
0x21a5   :  { %4079 = vmatpush3.bf16.msra.mxu0 %v4990_v39  ;;  %4082 = vmatprep.mubr.msk.bf16.mxu0 %vm4465_vm0, %v4961_v45 }
0x21a6   :  { %4080 = vmatprep.subr.bf16.mxu0 %v4961_v45 }
0x21a9   :  { %4081 = vmatpush3.bf16.msra.mxu0 %v4999_v30 }
0x21aa   :  { %4086 = vmatprep.subr.bf16.mxu0 %v4961_v45 }
0x2277   :  { %v2113_v5 = vpop.f32.mrb[52].mxu0 }
0x2278   :  { %v2119_v41 = vpack.c.bf16 %v2113_v5, %v2113_v5  ;;  %v4032_v42 = vpop.f32.mrb[53].mxu0 }
0x2279   :  { %v2116_v43 = vpop.f32.mrb[54].mxu0 }
0x227a   :  { %v4033_v48 = vpop.f32.mrb[55].mxu0  ;;  %4047 = vmatmul.mubr.msk.bf16.vlgmr.msra.gmra.mrb[44].mxu1 %vm74_vm9, %v2119_v41 }
0x227b   :  { %4051 = vmatpush3.bf16.msra.mxu1 %v5172_v23  ;;  %4054 = vmatprep.mubr.msk.bf16.mxu1 %vm4465_vm0, %v4961_v45 }
0x227c   :  { %4052 = vmatprep.subr.bf16.mxu1 %v4961_v45 }
0x227f   :  { %4053 = vmatpush3.bf16.msra.mxu1 %v5178_v8 }
0x2280   :  { %4058 = vmatprep.subr.bf16.mxu1 %v4961_v45 }
0x234d   :  { %v2197_v39 = vpop.f32.mrb[44].mxu1 }
0x234e   :  { %v2198_v30 = vadd.f32 %v2197_v39, %v5326_v47  ;;  %v4048_v50 = vpop.f32.mrb[45].mxu1 }
0x234f   :  { %v2200_v9 = vpop.f32.mrb[46].mxu1 }
0x2350   :  { %v2203_v52 = vadd.f32 %v5077_v57, %v2198_v30  ;;  %v4049_v31 = vpop.f32.mrb[47].mxu1 }
0x2352   :  { %4354 = vtanh.f32 %v2203_v52  ;;  %v3603_v60 = vmul.f32 -1.442695, %v2203_v52 }
0x2354   :  { %4356 = vpow2.f32 %v3603_v60 }
0x235c   :  { %v4355_v29 = vpop.eup %4354 }
0x235d   :  { %2213 = vrot.lane.b32.xlu1 %v4355_v29, %s4467_s20 }
0x235e   :  { %v4357_v6 = vpop.eup %4356 }
0x235f   :  { %v2207_v35 = vadd.f32 1.0, %v4357_v6 }
0x2361   :  { %4358 = vrcp.f32 %v2207_v35 }
0x236b   :  { %v4359_v3 = vpop.eup %4358 }
0x236c   :  { %v2211_v47 = vmul.f32 %v4359_v3, %v5295_v44  ;;  %v5370_v44 = vld [vmem:[%s5686_s3] sm:$0xff]  }
0x23cf   :  { %v2214_v55 = vpop.permute.xlu1 %2213 }
0x23d0   :  { %v2216_v1 = vmul.f32 %v4359_v3, %v2214_v55  ;;  %v5421_v55 = vld [vmem:[%s5687_s4 + $0x8] sm:$0xff]  }
0x23d2   :  { %2218 = vrot.lane.b32.xlu0 %v2216_v1, %s4468_s21 }
0x2444   :  { %v2219_v56 = vpop.permute.xlu0 %2218 }
0x2445   :  { %v5356_v58 = vadd.f32 %v2219_v56, %v2211_v47 }
0x2447   :  { %4360 = vtanh.f32 %v5356_v58 }
0x2451   :  { %v4361_v57 = vpop.eup %4360 }
0x2452   :  { %2224 = vrot.lane.b32.xlu1 %v4361_v57, %s4467_s20 }
0x24c4   :  { %v2225_v12 = vpop.permute.xlu1 %2224 }
0x24c5   :  { %v2227_v14 = vmul.f32 %v4359_v3, %v2225_v12  ;;  %v5412_v3 = vld [vmem:[%s5687_s4] sm:$0xff]  }
0x24c7   :  { %v2228_v13 = vpack.c.bf16 %v2227_v14, %v2227_v14 }
0x24c9   :  { %2230 = vrot.lane.b32.xlu1 %v2228_v13, %s4468_s21 }
0x253b   :  { %v2231_v16 = vpop.permute.xlu1 %2230 }
0x253c   :  { %4055 = vmatmul.mubr.msk.bf16.vlgmr.msra.gmra.mrb[48].mxu1 %vm74_vm9, %v2231_v16  ;;  %4083 = vmatmul.mubr.msk.bf16.vlgmr.msra.gmra.mrb[56].mxu0 %vm74_vm9, %v2231_v16 }
0x253d   :  { %4059 = vmatpush3.bf16.msra.mxu1 %v5221_v38  ;;  %4074 = vmatprep.mubr.msk.bf16.mxu1 %vm4465_vm0, %v4961_v45 }
0x253e   :  { %4060 = vmatprep.subr.bf16.mxu1 %v4961_v45  ;;  %4087 = vmatpush3.bf16.msra.mxu0 %v5370_v44 }
0x253f   :  { %4088 = vmatprep.subr.bf16.mxu0 %v4961_v45  ;;  %4090 = vmatprep.mubr.msk.bf16.mxu0 %vm4465_vm0, %v4961_v45 }
0x2541   :  { %4061 = vmatpush3.bf16.msra.mxu1 %v5228_v2 }
0x2542   :  { %4062 = vmatprep.subr.bf16.mxu1 %v4961_v45  ;;  %4089 = vmatpush3.bf16.msra.mxu0 %v5381_v15 }
0x2543   :  { %4094 = vmatprep.subr.bf16.mxu0 %v4961_v45 }
0x2545   :  { %4063 = vmatpush3.bf16.msra.mxu1 %v5235_v59 }
0x2546   :  { %4064 = vmatprep.subr.bf16.mxu1 %v4961_v45 }
0x2549   :  { %4065 = vmatpush3.bf16.msra.mxu1 %v5242_v61 }
0x254a   :  { %4066 = vmatprep.subr.bf16.mxu1 %v4961_v45 }
0x254d   :  { %4067 = vmatpush3.bf16.msra.mxu1 %v5249_v62 }
0x254e   :  { %4068 = vmatprep.subr.bf16.mxu1 %v4961_v45 }
0x2551   :  { %4069 = vmatpush3.bf16.msra.mxu1 %v5256_v10 }
0x2552   :  { %4070 = vmatprep.subr.bf16.mxu1 %v4961_v45 }
0x2555   :  { %4071 = vmatpush3.bf16.msra.mxu1 %v5263_v11 }
0x2556   :  { %4072 = vmatprep.subr.bf16.mxu1 %v4961_v45 }
0x2559   :  { %4073 = vmatpush3.bf16.msra.mxu1 %v5271_v0 }
0x255a   :  { %4122 = vmatprep.subr.bf16.mxu1 %v4961_v45 }
0x260f   :  { %v2269_v17 = vpop.f32.mrb[48].mxu1  ;;  %v5397_v20 = vpop.f32.mrb[56].mxu0 }
0x2610   :  { %v2270_v22 = vadd.f32 %v5202_v46, %v2269_v17  ;;  %v4056_v24 = vpop.f32.mrb[49].mxu1  ;;  %v4084_v25 = vpop.f32.mrb[57].mxu0 }
0x2611   :  { %v2272_v32 = vpop.f32.mrb[50].mxu1  ;;  %v2444_v63 = vpop.f32.mrb[58].mxu0 }
0x2612   :  { %v2276_v33 = vcombine.high %v2270_v22, %v2270_v22  ;;  %v2283_v28 = vrot.slane %v2270_v22, %v5204_v49  ;;  %v4085_v54 = vpop.f32.mrb[59].mxu0  ;;  %2341 = vmax.xlane.f32.xlu0 %v2270_v22  ;;  %v4057_v7 = vpop.f32.mrb[51].mxu1 }
0x2614   :  { %v2290_v34 = vrot.slane %v2276_v33, %v5204_v49  ;;  %v2291_v4 = vcombine.high %v2283_v28, %v2283_v28  ;;  %v2299_v27 = vrot.slane %v2283_v28, %v5204_v49  ;;  %3605 = vst.sshfl [vmem:[#allocation2 + $0x3] sm:$0x1 pattern:$0x73625140] %v2283_v28 }
0x2616   :  { %v2292_v51 = vcombine.high %v2290_v34, %v2290_v34  ;;  %v2306_v19 = vrot.slane %v2290_v34, %v5204_v49  ;;  %v2313_v36 = vrot.slane %v2291_v4, %v5204_v49  ;;  %v2321_v18 = vcombine.high %v2299_v27, %v2299_v27  ;;  %3606 = vst.sshfl [vmem:[#allocation2 + $0xb] sm:$0x1 pattern:$0x73625140] %v2291_v4 }
0x2617   :  { %3607 = vst.sshfl [vmem:[#allocation2 + $0x23] sm:$0x1 pattern:$0x73625140] %v2290_v34 }
0x2618   :  { %v2320_v21 = vrot.slane %v2292_v51, %v5204_v49  ;;  %v2322_v37 = vcombine.high %v2306_v19, %v2306_v19  ;;  %v2323_v40 = vcombine.high %v2313_v36, %v2313_v36  ;;  %2335 = vst [vmem:[#allocation2 + $0x13] sm:$0x1] %v2321_v18  ;;  %3608 = vst.sshfl [vmem:[#allocation2 + $0x2b] sm:$0x1 pattern:$0x73625140] %v2292_v51 }
0x261a   :  { %v2324_v5 = vcombine.high %v2320_v21, %v2320_v21  ;;  %2336 = vst [vmem:[#allocation2 + $0x1b] sm:$0x1] %v2323_v40  ;;  %2339 = vst [vmem:[#allocation2 + $0x33] sm:$0x1] %v2322_v37 }
0x261c   :  { %2340 = vst [vmem:[#allocation2 + $0x3b] sm:$0x1] %v2324_v5 }
0x269f   :  { %v2342_v41 = vpop.xlane.xlu0 %2341 }
0x26a0   :  { %vm2343_vm15 = vcmp.eq.f32.partialorder %v2270_v22, %v2342_v41  ;;  %v5436_v22 = vld [vmem:[%s5688_s5] ss:$0 sm:$0xff] }
0x26a1   :  { %v2344_v42 = vsel %vm2343_vm15, %v5215_v53, 128 }
0x26a2   :  { %v2346_v43 = vshra.s32 %v2344_v42, 16  ;;  %v2345_v39 = vand.u32 65535, %v2344_v42 }
0x26a4   :  { %v2348_v48 = vcvt.s32.f32 %v2346_v43  ;;  %v2347_v50 = vcvt.s32.f32 %v2345_v39 }
0x26a6   :  { %2349 = vmin.xlane.f32.xlu1 %v2348_v48 }
0x2733   :  { %v2350_v30 = vpop.xlane.xlu1 %2349 }
0x2734   :  { %vm2351_vm1 = vcmp.eq.f32.partialorder %v2348_v48, %v2350_v30  ;;  %v2356_v52 = vcvt.f32.s32 %v2350_v30 }
0x2735   :  { %v2352_v9 = vsel %vm2351_vm1, %v2347_v50, inf }
0x2736   :  { %2353 = vmin.xlane.f32.xlu0 %v2352_v9  ;;  %v2357_v29 = vshll.u32 %v2356_v52, 16 }
0x27c3   :  { %v2354_v31 = vpop.xlane.xlu0 %2353 }
0x27c4   :  { %v2355_v60 = vcvt.f32.s32 %v2354_v31 }
0x27c6   :  { %v2358_v6 = vadd.s32 %v2357_v29, %v2355_v60 }
0x27c8   :  { %v2359_v35 = vcvt.s32.f32 %v2358_v6  ;;  %vm2362_vm3 = vcmp.eq.s32.totalorder %v5215_v53, %v2358_v6 }
0x27c9   :  { %vm3610_vm4 = vmpackc.low %vm2362_vm3, %vm2362_vm3  ;;  %vm3221_vm3 = vcmask 56368  }
0x27ca   :  { %2361 = vst.msk [vmem:[#allocation4] sm:$0xff] %vm2360_vm2, %v2359_v35  ;;  %4075 = vmatmul.mubr.msk.bf16.vlgmr.msra.gmra.mrb[52].mxu1 %vm3610_vm4, %v4477_v26 }
0x27cb   :  { %4123 = vmatpush3.bf16.msra.mxu1 %v5412_v3  ;;  %4126 = vmatprep.mubr.msk.bf16.mxu1 %vm4465_vm0, %v4961_v45 }
0x27cc   :  { %4124 = vmatprep.subr.bf16.mxu1 %v4961_v45 }
0x27cf   :  { %4125 = vmatpush3.bf16.msra.mxu1 %v5421_v55 }
0x27d0   :  { %4130 = vmatprep.subr.bf16.mxu1 %v4961_v45 }
0x289d   :  { %v2400_v1 = vpop.f32.mrb[52].mxu1 }
0x289e   :  { %v2406_v47 = vpack.c.bf16 %v2400_v1, %v2400_v1  ;;  %v4076_v56 = vpop.f32.mrb[53].mxu1 }
0x289f   :  { %v2403_v57 = vpop.f32.mrb[54].mxu1 }
0x28a0   :  { %v4077_v12 = vpop.f32.mrb[55].mxu1  ;;  %4091 = vmatmul.mubr.msk.bf16.vlgmr.msra.gmra.mrb[60].mxu0 %vm74_vm9, %v2406_v47 }
0x28a1   :  { %4095 = vmatpush3.bf16.msra.mxu0 %v5172_v23  ;;  %4098 = vmatprep.mubr.msk.bf16.mxu0 %vm4465_vm0, %v4961_v45 }
0x28a2   :  { %4096 = vmatprep.subr.bf16.mxu0 %v4961_v45 }
0x28a5   :  { %4097 = vmatpush3.bf16.msra.mxu0 %v5178_v8 }
0x28a6   :  { %4102 = vmatprep.subr.bf16.mxu0 %v4961_v45 }
0x2973   :  { %v2484_v14 = vpop.f32.mrb[60].mxu0 }
0x2974   :  { %v2485_v13 = vadd.f32 %v2484_v14, %v5397_v20  ;;  %v4092_v16 = vpop.f32.mrb[61].mxu0 }
0x2975   :  { %v2487_v17 = vpop.f32.mrb[62].mxu0 }
0x2976   :  { %v2490_v24 = vadd.f32 %v5436_v22, %v2485_v13  ;;  %v4093_v25 = vpop.f32.mrb[63].mxu0 }
0x2978   :  { %4362 = vtanh.f32 %v2490_v24  ;;  %v3614_v63 = vmul.f32 -1.442695, %v2490_v24 }
0x297a   :  { %4364 = vpow2.f32 %v3614_v63 }
0x2982   :  { %v4363_v32 = vpop.eup %4362 }
0x2983   :  { %2500 = vrot.lane.b32.xlu0 %v4363_v32, %s4467_s20 }
0x2984   :  { %v4365_v33 = vpop.eup %4364 }
0x2985   :  { %v2494_v28 = vadd.f32 1.0, %v4365_v33 }
0x2987   :  { %4366 = vrcp.f32 %v2494_v28 }
0x2991   :  { %v4367_v20 = vpop.eup %4366 }
0x2992   :  { %v2498_v34 = vmul.f32 %v4367_v20, %v5356_v58 }
0x29f5   :  { %v2501_v54 = vpop.permute.xlu0 %2500 }
0x29f6   :  { %v2503_v7 = vmul.f32 %v4367_v20, %v2501_v54 }
0x29f8   :  { %2505 = vrot.lane.b32.xlu1 %v2503_v7, %s4468_s21 }
0x2a6a   :  { %v2506_v4 = vpop.permute.xlu1 %2505 }
0x2a6b   :  { %v5442_v27 = vadd.f32 %v2506_v4, %v2498_v34 }
0x2a6d   :  { %4368 = vtanh.f32 %v5442_v27 }
0x2a77   :  { %v4369_v51 = vpop.eup %4368 }
0x2a78   :  { %2511 = vrot.lane.b32.xlu1 %v4369_v51, %s4467_s20 }
0x2aea   :  { %v2512_v19 = vpop.permute.xlu1 %2511 }
0x2aeb   :  { %v2514_v36 = vmul.f32 %v4367_v20, %v2512_v19 }
0x2aed   :  { %v2515_v18 = vpack.c.bf16 %v2514_v36, %v2514_v36 }
0x2aef   :  { %2517 = vrot.lane.b32.xlu0 %v2515_v18, %s4468_s21 }
0x2b61   :  { %v2518_v21 = vpop.permute.xlu0 %2517 }
0x2b62   :  { %4099 = vmatmul.mubr.msk.bf16.vlgmr.msra.gmra.mrb[64].mxu0 %vm74_vm9, %v2518_v21  ;;  %4127 = vmatmul.mubr.msk.bf16.vlgmr.msra.gmra.mrb[56].mxu1 %vm74_vm9, %v2518_v21 }
0x2b63   :  { %4103 = vmatpush3.bf16.msra.mxu0 %v5221_v38  ;;  %4118 = vmatprep.mubr.msk.bf16.mxu0 %vm4465_vm0, %v4961_v45 }
0x2b64   :  { %4104 = vmatprep.subr.bf16.mxu0 %v4961_v45  ;;  %4131 = vmatpush3.bf16.msra.mxu1 %v5370_v44 }
0x2b65   :  { %4132 = vmatprep.subr.bf16.mxu1 %v4961_v45  ;;  %4134 = vmatprep.mubr.msk.bf16.mxu1 %vm4465_vm0, %v4961_v45 }
0x2b67   :  { %4105 = vmatpush3.bf16.msra.mxu0 %v5228_v2 }
0x2b68   :  { %4106 = vmatprep.subr.bf16.mxu0 %v4961_v45  ;;  %4133 = vmatpush3.bf16.msra.mxu1 %v5381_v15 }
0x2b69   :  { %4138 = vmatprep.subr.bf16.mxu1 %v4961_v45 }
0x2b6b   :  { %4107 = vmatpush3.bf16.msra.mxu0 %v5235_v59 }
0x2b6c   :  { %4108 = vmatprep.subr.bf16.mxu0 %v4961_v45 }
0x2b6f   :  { %4109 = vmatpush3.bf16.msra.mxu0 %v5242_v61 }
0x2b70   :  { %4110 = vmatprep.subr.bf16.mxu0 %v4961_v45 }
0x2b73   :  { %4111 = vmatpush3.bf16.msra.mxu0 %v5249_v62 }
0x2b74   :  { %4112 = vmatprep.subr.bf16.mxu0 %v4961_v45 }
0x2b77   :  { %4113 = vmatpush3.bf16.msra.mxu0 %v5256_v10 }
0x2b78   :  { %4114 = vmatprep.subr.bf16.mxu0 %v4961_v45 }
0x2b7b   :  { %4115 = vmatpush3.bf16.msra.mxu0 %v5263_v11 }
0x2b7c   :  { %4116 = vmatprep.subr.bf16.mxu0 %v4961_v45 }
0x2b7f   :  { %4117 = vmatpush3.bf16.msra.mxu0 %v5271_v0 }
0x2b80   :  { %4166 = vmatprep.subr.bf16.mxu0 %v4961_v45 }
0x2c35   :  { %v2556_v58 = vpop.f32.mrb[64].mxu0  ;;  %v5473_v37 = vpop.f32.mrb[56].mxu1 }
0x2c36   :  { %v2557_v40 = vadd.f32 %v5202_v46, %v2556_v58  ;;  %v4100_v5 = vpop.f32.mrb[65].mxu0  ;;  %v4128_v41 = vpop.f32.mrb[57].mxu1 }
0x2c37   :  { %v2559_v42 = vpop.f32.mrb[66].mxu0  ;;  %v2731_v43 = vpop.f32.mrb[58].mxu1 }
0x2c38   :  { %v2563_v48 = vcombine.high %v2557_v40, %v2557_v40  ;;  %v2570_v39 = vrot.slane %v2557_v40, %v5204_v49  ;;  %2628 = vmax.xlane.f32.xlu1 %v2557_v40  ;;  %v4101_v30 = vpop.f32.mrb[67].mxu0  ;;  %v4129_v50 = vpop.f32.mrb[59].mxu1 }
0x2c3a   :  { %v2577_v9 = vrot.slane %v2563_v48, %v5204_v49  ;;  %v2578_v52 = vcombine.high %v2570_v39, %v2570_v39  ;;  %v2586_v31 = vrot.slane %v2570_v39, %v5204_v49  ;;  %3616 = vst.sshfl [vmem:[#allocation2 + $0x4] sm:$0x1 pattern:$0x73625140] %v2570_v39 }
0x2c3c   :  { %v2579_v29 = vcombine.high %v2577_v9, %v2577_v9  ;;  %v2593_v60 = vrot.slane %v2577_v9, %v5204_v49  ;;  %v2600_v46 = vrot.slane %v2578_v52, %v5204_v49  ;;  %v2608_v6 = vcombine.high %v2586_v31, %v2586_v31  ;;  %3617 = vst.sshfl [vmem:[#allocation2 + $0xc] sm:$0x1 pattern:$0x73625140] %v2578_v52 }
0x2c3d   :  { %3618 = vst.sshfl [vmem:[#allocation2 + $0x24] sm:$0x1 pattern:$0x73625140] %v2577_v9 }
0x2c3e   :  { %v2607_v35 = vrot.slane %v2579_v29, %v5204_v49  ;;  %v2609_v1 = vcombine.high %v2593_v60, %v2593_v60  ;;  %v2610_v47 = vcombine.high %v2600_v46, %v2600_v46  ;;  %2622 = vst [vmem:[#allocation2 + $0x14] sm:$0x1] %v2608_v6  ;;  %3619 = vst.sshfl [vmem:[#allocation2 + $0x2c] sm:$0x1 pattern:$0x73625140] %v2579_v29 }
0x2c40   :  { %v2611_v56 = vcombine.high %v2607_v35, %v2607_v35  ;;  %2623 = vst [vmem:[#allocation2 + $0x1c] sm:$0x1] %v2610_v47  ;;  %2626 = vst [vmem:[#allocation2 + $0x34] sm:$0x1] %v2609_v1 }
0x2c42   :  { %2627 = vst [vmem:[#allocation2 + $0x3c] sm:$0x1] %v2611_v56 }
0x2cc5   :  { %v2629_v57 = vpop.xlane.xlu1 %2628 }
0x2cc6   :  { %vm2630_vm5 = vcmp.eq.f32.partialorder %v2557_v40, %v2629_v57 }
0x2cc7   :  { %v2631_v12 = vsel %vm2630_vm5, %v5215_v53, 128 }
0x2cc8   :  { %v2633_v14 = vshra.s32 %v2631_v12, 16  ;;  %v2632_v16 = vand.u32 65535, %v2631_v12 }
0x2cca   :  { %v2635_v13 = vcvt.s32.f32 %v2633_v14  ;;  %v2634_v24 = vcvt.s32.f32 %v2632_v16 }
0x2ccc   :  { %2636 = vmin.xlane.f32.xlu0 %v2635_v13 }
0x2d59   :  { %v2637_v17 = vpop.xlane.xlu0 %2636 }
0x2d5a   :  { %vm2638_vm6 = vcmp.eq.f32.partialorder %v2635_v13, %v2637_v17  ;;  %v2643_v32 = vcvt.f32.s32 %v2637_v17 }
0x2d5b   :  { %v2639_v25 = vsel %vm2638_vm6, %v2634_v24, inf }
0x2d5c   :  { %2640 = vmin.xlane.f32.xlu0 %v2639_v25  ;;  %v2644_v33 = vshll.u32 %v2643_v32, 16 }
0x2de9   :  { %v2641_v63 = vpop.xlane.xlu0 %2640 }
0x2dea   :  { %v2642_v28 = vcvt.f32.s32 %v2641_v63 }
0x2dec   :  { %v2645_v20 = vadd.s32 %v2644_v33, %v2642_v28 }
0x2dee   :  { %v2646_v54 = vcvt.s32.f32 %v2645_v20  ;;  %vm2649_vm8 = vcmp.eq.s32.totalorder %v5215_v53, %v2645_v20 }
0x2def   :  { %vm3621_vm10 = vmpackc.low %vm2649_vm8, %vm2649_vm8 }
0x2df0   :  { %4119 = vmatmul.mubr.msk.bf16.vlgmr.msra.gmra.mrb[68].mxu0 %vm3621_vm10, %v4477_v26  ;;  %2648 = vst.msk [vmem:[#allocation4] sm:$0xff] %vm2647_vm7, %v2646_v54 }
0x2df1   :  { %4167 = vmatpush3.bf16.msra.mxu0 %v5412_v3  ;;  %4170 = vmatprep.mubr.msk.bf16.mxu0 %vm4465_vm0, %v4961_v45 }
0x2df2   :  { %4168 = vmatprep.subr.bf16.mxu0 %v4961_v45 }
0x2df5   :  { %4169 = vmatpush3.bf16.msra.mxu0 %v5421_v55 }
0x2df6   :  { %4174 = vmatprep.subr.bf16.mxu0 %v4961_v45 }
0x2ec3   :  { %v2687_v7 = vpop.f32.mrb[68].mxu0 }
0x2ec4   :  { %v2693_v34 = vpack.c.bf16 %v2687_v7, %v2687_v7  ;;  %v4120_v4 = vpop.f32.mrb[69].mxu0 }
0x2ec5   :  { %v2690_v51 = vpop.f32.mrb[70].mxu0 }
0x2ec6   :  { %v4121_v19 = vpop.f32.mrb[71].mxu0  ;;  %4135 = vmatmul.mubr.msk.bf16.vlgmr.msra.gmra.mrb[60].mxu1 %vm74_vm9, %v2693_v34 }
0x2ec7   :  { %4139 = vmatpush3.bf16.msra.mxu1 %v5172_v23  ;;  %4142 = vmatprep.mubr.msk.bf16.mxu1 %vm4465_vm0, %v4961_v45 }
0x2ec8   :  { %4140 = vmatprep.subr.bf16.mxu1 %v4961_v45 }
0x2ecb   :  { %4141 = vmatpush3.bf16.msra.mxu1 %v5178_v8 }
0x2ecc   :  { %4146 = vmatprep.subr.bf16.mxu1 %v4961_v45 }
0x2f99   :  { %v2771_v36 = vpop.f32.mrb[60].mxu1 }
0x2f9a   :  { %v2772_v18 = vadd.f32 %v2771_v36, %v5473_v37  ;;  %v4136_v21 = vpop.f32.mrb[61].mxu1 }
0x2f9b   :  { %v2774_v58 = vpop.f32.mrb[62].mxu1 }
0x2f9c   :  { %v2777_v40 = vadd.f32 %v5436_v22, %v2772_v18  ;;  %v4137_v5 = vpop.f32.mrb[63].mxu1 }
0x2f9e   :  { %4370 = vtanh.f32 %v2777_v40  ;;  %v3625_v23 = vmul.f32 -1.442695, %v2777_v40 }
0x2fa0   :  { %4372 = vpow2.f32 %v3625_v23 }
0x2fa8   :  { %v4371_v41 = vpop.eup %4370 }
0x2fa9   :  { %2787 = vrot.lane.b32.xlu1 %v4371_v41, %s4467_s20 }
0x2faa   :  { %v4373_v42 = vpop.eup %4372 }
0x2fab   :  { %v2781_v43 = vadd.f32 1.0, %v4373_v42 }
0x2fad   :  { %4374 = vrcp.f32 %v2781_v43 }
0x2fb7   :  { %v4375_v8 = vpop.eup %4374 }
0x2fb8   :  { %v2785_v37 = vmul.f32 %v4375_v8, %v5442_v27 }
0x301b   :  { %v2788_v48 = vpop.permute.xlu1 %2787 }
0x301c   :  { %v2790_v39 = vmul.f32 %v4375_v8, %v2788_v48 }
0x301e   :  { %2792 = vrot.lane.b32.xlu0 %v2790_v39, %s4468_s21 }
0x3090   :  { %v2793_v30 = vpop.permute.xlu0 %2792 }
0x3091   :  { %v5503_v50 = vadd.f32 %v2793_v30, %v2785_v37 }
0x3093   :  { %4376 = vtanh.f32 %v5503_v50 }
0x309d   :  { %v4377_v9 = vpop.eup %4376 }
0x309e   :  { %2798 = vrot.lane.b32.xlu1 %v4377_v9, %s4467_s20 }
0x3110   :  { %v2799_v52 = vpop.permute.xlu1 %2798 }
0x3111   :  { %v2801_v31 = vmul.f32 %v4375_v8, %v2799_v52 }
0x3113   :  { %v2802_v29 = vpack.c.bf16 %v2801_v31, %v2801_v31 }
0x3115   :  { %2804 = vrot.lane.b32.xlu1 %v2802_v29, %s4468_s21 }
0x3187   :  { %v2805_v60 = vpop.permute.xlu1 %2804 }
0x3188   :  { %4143 = vmatmul.mubr.msk.bf16.vlgmr.msra.gmra.mrb[64].mxu1 %vm74_vm9, %v2805_v60  ;;  %4171 = vmatmul.mubr.msk.bf16.vlgmr.msra.gmra.mrb[72].mxu0 %vm74_vm9, %v2805_v60 }
0x3189   :  { %4147 = vmatpush3.bf16.msra.mxu1 %v5221_v38  ;;  %4162 = vmatprep.mubr.msk.bf16.mxu1 %vm4465_vm0, %v4961_v45 }
0x318a   :  { %4148 = vmatprep.subr.bf16.mxu1 %v4961_v45  ;;  %4175 = vmatpush3.bf16.msra.mxu0 %v5370_v44 }
0x318b   :  { %4176 = vmatprep.subr.bf16.mxu0 %v4961_v45  ;;  %4178 = vmatprep.mubr.msk.bf16.mxu0 %vm4465_vm0, %v4961_v45 }
0x318d   :  { %4149 = vmatpush3.bf16.msra.mxu1 %v5228_v2 }
0x318e   :  { %4150 = vmatprep.subr.bf16.mxu1 %v4961_v45  ;;  %4177 = vmatpush3.bf16.msra.mxu0 %v5381_v15 }
0x318f   :  { %4182 = vmatprep.subr.bf16.mxu0 %v4961_v45 }
0x3191   :  { %4151 = vmatpush3.bf16.msra.mxu1 %v5235_v59  ;;  %v5539_v59 = vld [vmem:[%s5690_s7] ss:$0 sm:$0xff] }
0x3192   :  { %4152 = vmatprep.subr.bf16.mxu1 %v4961_v45 }
0x3195   :  { %4153 = vmatpush3.bf16.msra.mxu1 %v5242_v61 }
0x3196   :  { %4154 = vmatprep.subr.bf16.mxu1 %v4961_v45 }
0x3199   :  { %4155 = vmatpush3.bf16.msra.mxu1 %v5249_v62 }
0x319a   :  { %4156 = vmatprep.subr.bf16.mxu1 %v4961_v45 }
0x319d   :  { %4157 = vmatpush3.bf16.msra.mxu1 %v5256_v10 }
0x319e   :  { %4158 = vmatprep.subr.bf16.mxu1 %v4961_v45 }
0x31a1   :  { %4159 = vmatpush3.bf16.msra.mxu1 %v5263_v11 }
0x31a2   :  { %4160 = vmatprep.subr.bf16.mxu1 %v4961_v45 }
0x31a5   :  { %4161 = vmatpush3.bf16.msra.mxu1 %v5271_v0 }
0x31a6   :  { %4210 = vmatprep.subr.bf16.mxu1 %v4961_v45 }
0x325b   :  { %v2843_v38 = vpop.f32.mrb[64].mxu1  ;;  %v5534_v2 = vpop.f32.mrb[72].mxu0 }
0x325c   :  { %v2844_v61 = vadd.f32 %v5539_v59, %v2843_v38  ;;  %v4144_v62 = vpop.f32.mrb[65].mxu1  ;;  %v4172_v10 = vpop.f32.mrb[73].mxu0 }
0x325d   :  { %v2846_v27 = vpop.f32.mrb[66].mxu1  ;;  %v3018_v11 = vpop.f32.mrb[74].mxu0 }
0x325e   :  { %v2850_v46 = vcombine.high %v2844_v61, %v2844_v61  ;;  %v2857_v6 = vrot.slane %v2844_v61, %v5204_v49  ;;  %v4173_v0 = vpop.f32.mrb[75].mxu0  ;;  %2915 = vmax.xlane.f32.xlu0 %v2844_v61  ;;  %v4145_v35 = vpop.f32.mrb[67].mxu1 }
0x325f   :  { %v4409_v0 = vld [vmem:[%s5685_s2 + $0x8] sm:$0xff]   ;;  %v4411_v35 = vld [vmem:[%s5685_s2 + $0x18] sm:$0xff]  }
0x3260   :  { %v2864_v1 = vrot.slane %v2850_v46, %v5204_v49  ;;  %v2865_v47 = vcombine.high %v2857_v6, %v2857_v6  ;;  %v2873_v56 = vrot.slane %v2857_v6, %v5204_v49  ;;  %3627 = vst.sshfl [vmem:[#allocation2 + $0x5] sm:$0x1 pattern:$0x73625140] %v2857_v6 }
0x3262   :  { %v2866_v57 = vcombine.high %v2864_v1, %v2864_v1  ;;  %v2880_v12 = vrot.slane %v2864_v1, %v5204_v49  ;;  %v2887_v14 = vrot.slane %v2865_v47, %v5204_v49  ;;  %v2895_v13 = vcombine.high %v2873_v56, %v2873_v56  ;;  %3628 = vst.sshfl [vmem:[#allocation2 + $0xd] sm:$0x1 pattern:$0x73625140] %v2865_v47  ;;  %v4414_v47 = vld [vmem:[%s5685_s2 + $0x30] sm:$0xff]   ;;  %v4415_v56 = vld [vmem:[%s5685_s2 + $0x38] sm:$0xff]  }
0x3263   :  { %3629 = vst.sshfl [vmem:[#allocation2 + $0x25] sm:$0x1 pattern:$0x73625140] %v2864_v1  ;;  %v4413_v1 = vld [vmem:[%s5685_s2 + $0x28] sm:$0xff]  }
0x3264   :  { %v2894_v16 = vrot.slane %v2866_v57, %v5204_v49  ;;  %v2896_v17 = vcombine.high %v2880_v12, %v2880_v12  ;;  %v2897_v24 = vcombine.high %v2887_v14, %v2887_v14  ;;  %2909 = vst [vmem:[#allocation2 + $0x15] sm:$0x1] %v2895_v13  ;;  %3630 = vst.sshfl [vmem:[#allocation2 + $0x2d] sm:$0x1 pattern:$0x73625140] %v2866_v57 }
0x3266   :  { %v2898_v25 = vcombine.high %v2894_v16, %v2894_v16  ;;  %2910 = vst [vmem:[#allocation2 + $0x1d] sm:$0x1] %v2897_v24  ;;  %2913 = vst [vmem:[#allocation2 + $0x35] sm:$0x1] %v2896_v17 }
0x3268   :  { %2914 = vst [vmem:[#allocation2 + $0x3d] sm:$0x1] %v2898_v25 }
0x32eb   :  { %v2916_v32 = vpop.xlane.xlu0 %2915 }
0x32ec   :  { %vm2917_vm11 = vcmp.eq.f32.partialorder %v2844_v61, %v2916_v32 }
0x32ed   :  { %v2918_v63 = vsel %vm2917_vm11, %v5215_v53, 128 }
0x32ee   :  { %v2920_v33 = vshra.s32 %v2918_v63, 16  ;;  %v2919_v20 = vand.u32 65535, %v2918_v63 }
0x32f0   :  { %v2922_v28 = vcvt.s32.f32 %v2920_v33  ;;  %v2921_v7 = vcvt.s32.f32 %v2919_v20 }
0x32f2   :  { %2923 = vmin.xlane.f32.xlu1 %v2922_v28 }
0x337f   :  { %v2924_v54 = vpop.xlane.xlu1 %2923 }
0x3380   :  { %vm2925_vm12 = vcmp.eq.f32.partialorder %v2922_v28, %v2924_v54  ;;  %v2930_v4 = vcvt.f32.s32 %v2924_v54 }
0x3381   :  { %v2926_v34 = vsel %vm2925_vm12, %v2921_v7, inf }
0x3382   :  { %2927 = vmin.xlane.f32.xlu0 %v2926_v34  ;;  %v2931_v19 = vshll.u32 %v2930_v4, 16 }
0x340f   :  { %v2928_v51 = vpop.xlane.xlu0 %2927 }
0x3410   :  { %v2929_v36 = vcvt.f32.s32 %v2928_v51 }
0x3412   :  { %v2932_v18 = vadd.s32 %v2931_v19, %v2929_v36 }
0x3414   :  { %v2933_v21 = vcvt.s32.f32 %v2932_v18  ;;  %vm2936_vm14 = vcmp.eq.s32.totalorder %v5215_v53, %v2932_v18 }
0x3415   :  { %vm3632_vm15 = vmpackc.low %vm2936_vm14, %vm2936_vm14 }
0x3416   :  { %4163 = vmatmul.mubr.msk.bf16.vlgmr.msra.gmra.mrb[68].mxu1 %vm3632_vm15, %v4477_v26  ;;  %2935 = vst.msk [vmem:[#allocation4] sm:$0xff] %vm2934_vm13, %v2933_v21 }
0x3417   :  { %4211 = vmatpush3.bf16.msra.mxu1 %v5412_v3  ;;  %4214 = vmatprep.mubr.msk.bf16.mxu1 %vm4465_vm0, %v4961_v45  ;;  %v5561_v3 = vld [vmem:[%s5689_s6] sm:$0xff]  }
0x3418   :  { %4212 = vmatprep.subr.bf16.mxu1 %v4961_v45 }
0x341b   :  { %4213 = vmatpush3.bf16.msra.mxu1 %v5421_v55  ;;  %v5570_v55 = vld [vmem:[%s5689_s6 + $0x8] sm:$0xff]  }
0x341c   :  { %4218 = vmatprep.subr.bf16.mxu1 %v4961_v45 }
0x34e9   :  { %v2974_v58 = vpop.f32.mrb[68].mxu1 }
0x34ea   :  { %v2980_v40 = vpack.c.bf16 %v2974_v58, %v2974_v58  ;;  %v4164_v5 = vpop.f32.mrb[69].mxu1 }
0x34eb   :  { %v2977_v41 = vpop.f32.mrb[70].mxu1 }
0x34ec   :  { %v4165_v23 = vpop.f32.mrb[71].mxu1  ;;  %4179 = vmatmul.mubr.msk.bf16.vlgmr.msra.gmra.mrb[76].mxu0 %vm74_vm9, %v2980_v40 }
0x34ed   :  { %4183 = vmatpush3.bf16.msra.mxu0 %v5561_v3  ;;  %4186 = vmatprep.mubr.msk.bf16.mxu0 %vm4465_vm0, %v4961_v45 }
0x34ee   :  { %4184 = vmatprep.subr.bf16.mxu0 %v4961_v45 }
0x34f1   :  { %4185 = vmatpush3.bf16.msra.mxu0 %v5570_v55 }
0x34f2   :  { %4190 = vmatprep.subr.bf16.mxu0 %v4961_v45 }
0x35bf   :  { %v3058_v42 = vpop.f32.mrb[76].mxu0 }
0x35c0   :  { %v3059_v43 = vadd.f32 %v3058_v42, %v5534_v2  ;;  %v4180_v8 = vpop.f32.mrb[77].mxu0 }
0x35c1   :  { %v3061_v48 = vpop.f32.mrb[78].mxu0 }
0x35c2   :  { %v3064_v39 = vadd.f32 %v5436_v22, %v3059_v43  ;;  %v4181_v37 = vpop.f32.mrb[79].mxu0 }
0x35c4   :  { %4378 = vtanh.f32 %v3064_v39  ;;  %v3636_v9 = vmul.f32 -1.442695, %v3064_v39 }
0x35c6   :  { %4380 = vpow2.f32 %v3636_v9 }
0x35ce   :  { %v4379_v30 = vpop.eup %4378 }
0x35cf   :  { %3074 = vrot.lane.b32.xlu0 %v4379_v30, %s4467_s20 }
0x35d0   :  { %v4381_v52 = vpop.eup %4380 }
0x35d1   :  { %v3068_v31 = vadd.f32 1.0, %v4381_v52 }
0x35d3   :  { %4382 = vrcp.f32 %v3068_v31 }
0x35dd   :  { %v4383_v29 = vpop.eup %4382 }
0x35de   :  { %v3072_v2 = vmul.f32 %v4383_v29, %v5503_v50  ;;  %v4408_v50 = vld [vmem:[%s5685_s2] sm:$0xff]  }
0x3641   :  { %v3075_v60 = vpop.permute.xlu0 %3074 }
0x3642   :  { %v3077_v38 = vmul.f32 %v4383_v29, %v3075_v60 }
0x3644   :  { %3079 = vrot.lane.b32.xlu1 %v3077_v38, %s4468_s21 }
0x36b6   :  { %v3080_v61 = vpop.permute.xlu1 %3079 }
0x36b7   :  { %v5579_v62 = vadd.f32 %v3080_v61, %v3072_v2 }
0x36b9   :  { %4384 = vtanh.f32 %v5579_v62 }
0x36c3   :  { %v4385_v10 = vpop.eup %4384 }
0x36c4   :  { %3085 = vrot.lane.b32.xlu1 %v4385_v10, %s4467_s20 }
0x3736   :  { %v3086_v27 = vpop.permute.xlu1 %3085 }
0x3737   :  { %v3088_v11 = vmul.f32 %v4383_v29, %v3086_v27 }
0x3739   :  { %v3089_v46 = vpack.c.bf16 %v3088_v11, %v3088_v11 }
0x373b   :  { %3091 = vrot.lane.b32.xlu0 %v3089_v46, %s4468_s21 }
0x37ad   :  { %v3092_v6 = vpop.permute.xlu0 %3091 }
0x37ae   :  { %4187 = vmatmul.mubr.msk.bf16.vlgmr.msra.gmra.mrb[80].mxu0 %vm74_vm9, %v3092_v6  ;;  %4215 = vmatmul.mubr.msk.bf16.vlgmr.msra.gmra.mrb[72].mxu1 %vm74_vm9, %v3092_v6 }
0x37af   :  { %4191 = vmatpush3.bf16.msra.mxu0 %v4408_v50  ;;  %4206 = vmatprep.mubr.msk.bf16.mxu0 %vm4465_vm0, %v4961_v45 }
0x37b0   :  { %4192 = vmatprep.subr.bf16.mxu0 %v4961_v45  ;;  %4219 = vmatpush3.bf16.msra.mxu1 %v5370_v44  ;;  %v4410_v44 = vld [vmem:[%s5685_s2 + $0x10] sm:$0xff]  }
0x37b1   :  { %4220 = vmatprep.subr.bf16.mxu1 %v4961_v45  ;;  %4222 = vmatprep.mubr.msk.bf16.mxu1 %vm4465_vm0, %v4961_v45 }
0x37b3   :  { %4193 = vmatpush3.bf16.msra.mxu0 %v4409_v0 }
0x37b4   :  { %4194 = vmatprep.subr.bf16.mxu0 %v4961_v45  ;;  %4221 = vmatpush3.bf16.msra.mxu1 %v5381_v15  ;;  %v4412_v15 = vld [vmem:[%s5685_s2 + $0x20] sm:$0xff]   ;;  %s4478_s2 = smov [#allocation2]  }
0x37b5   :  { %4226 = vmatprep.subr.bf16.mxu1 %v4961_v45 }
0x37b7   :  { %4195 = vmatpush3.bf16.msra.mxu0 %v4410_v44 }
0x37b8   :  { %4196 = vmatprep.subr.bf16.mxu0 %v4961_v45 }
0x37bb   :  { %4197 = vmatpush3.bf16.msra.mxu0 %v4411_v35 }
0x37bc   :  { %4198 = vmatprep.subr.bf16.mxu0 %v4961_v45 }
0x37bf   :  { %4199 = vmatpush3.bf16.msra.mxu0 %v4412_v15 }
0x37c0   :  { %4200 = vmatprep.subr.bf16.mxu0 %v4961_v45 }
0x37c3   :  { %4201 = vmatpush3.bf16.msra.mxu0 %v4413_v1 }
0x37c4   :  { %4202 = vmatprep.subr.bf16.mxu0 %v4961_v45 }
0x37c7   :  { %4203 = vmatpush3.bf16.msra.mxu0 %v4414_v47 }
0x37c8   :  { %4204 = vmatprep.subr.bf16.mxu0 %v4961_v45 }
0x37cb   :  { %4205 = vmatpush3.bf16.msra.mxu0 %v4415_v56 }
0x3881   :  { %v3130_v57 = vpop.f32.mrb[80].mxu0  ;;  %v5625_v12 = vpop.f32.mrb[72].mxu1 }
0x3882   :  { %v3131_v14 = vadd.f32 %v5539_v59, %v3130_v57  ;;  %v4188_v13 = vpop.f32.mrb[81].mxu0  ;;  %v4216_v16 = vpop.f32.mrb[73].mxu1 }
0x3883   :  { %v3133_v17 = vpop.f32.mrb[82].mxu0  ;;  %v3305_v24 = vpop.f32.mrb[74].mxu1 }
0x3884   :  { %v3137_v25 = vcombine.high %v3131_v14, %v3131_v14  ;;  %v3144_v32 = vrot.slane %v3131_v14, %v5204_v49  ;;  %3202 = vmax.xlane.f32.xlu1 %v3131_v14  ;;  %v4189_v63 = vpop.f32.mrb[83].mxu0  ;;  %v4217_v33 = vpop.f32.mrb[75].mxu1 }
0x3886   :  { %v3151_v28 = vrot.slane %v3137_v25, %v5204_v49  ;;  %v3152_v20 = vcombine.high %v3144_v32, %v3144_v32  ;;  %v3160_v54 = vrot.slane %v3144_v32, %v5204_v49  ;;  %3638 = vst.sshfl [vmem:[#allocation2 + $0x6] sm:$0x1 pattern:$0x73625140] %v3144_v32 }
0x3888   :  { %v3153_v7 = vcombine.high %v3151_v28, %v3151_v28  ;;  %v3167_v34 = vrot.slane %v3151_v28, %v5204_v49  ;;  %v3174_v4 = vrot.slane %v3152_v20, %v5204_v49  ;;  %v3182_v51 = vcombine.high %v3160_v54, %v3160_v54  ;;  %3639 = vst.sshfl [vmem:[#allocation2 + $0xe] sm:$0x1 pattern:$0x73625140] %v3152_v20 }
0x3889   :  { %3640 = vst.sshfl [vmem:[#allocation2 + $0x26] sm:$0x1 pattern:$0x73625140] %v3151_v28 }
0x388a   :  { %v3181_v19 = vrot.slane %v3153_v7, %v5204_v49  ;;  %v3183_v36 = vcombine.high %v3167_v34, %v3167_v34  ;;  %v3184_v18 = vcombine.high %v3174_v4, %v3174_v4  ;;  %3196 = vst [vmem:[#allocation2 + $0x16] sm:$0x1] %v3182_v51  ;;  %3641 = vst.sshfl [vmem:[#allocation2 + $0x2e] sm:$0x1 pattern:$0x73625140] %v3153_v7 }
0x388c   :  { %v3185_v21 = vcombine.high %v3181_v19, %v3181_v19  ;;  %3197 = vst [vmem:[#allocation2 + $0x1e] sm:$0x1] %v3184_v18  ;;  %3200 = vst [vmem:[#allocation2 + $0x36] sm:$0x1] %v3183_v36 }
0x388e   :  { %3201 = vst [vmem:[#allocation2 + $0x3e] sm:$0x1] %v3185_v21 }
0x3911   :  { %v3203_v58 = vpop.xlane.xlu1 %3202 }
0x3912   :  { %vm3204_vm1 = vcmp.eq.f32.partialorder %v3131_v14, %v3203_v58 }
0x3913   :  { %v3205_v40 = vsel %vm3204_vm1, %v5215_v53, 128 }
0x3914   :  { %v3207_v5 = vshra.s32 %v3205_v40, 16  ;;  %v3206_v23 = vand.u32 65535, %v3205_v40 }
0x3916   :  { %v3209_v41 = vcvt.s32.f32 %v3207_v5  ;;  %v3208_v43 = vcvt.s32.f32 %v3206_v23 }
0x3918   :  { %3210 = vmin.xlane.f32.xlu0 %v3209_v41 }
0x39a5   :  { %v3211_v42 = vpop.xlane.xlu0 %3210 }
0x39a6   :  { %vm3212_vm2 = vcmp.eq.f32.partialorder %v3209_v41, %v3211_v42  ;;  %v3217_v48 = vcvt.f32.s32 %v3211_v42 }
0x39a7   :  { %v3213_v8 = vsel %vm3212_vm2, %v3208_v43, inf }
0x39a8   :  { %3214 = vmin.xlane.f32.xlu0 %v3213_v8  ;;  %v3218_v37 = vshll.u32 %v3217_v48, 16 }
0x3a35   :  { %v3215_v39 = vpop.xlane.xlu0 %3214 }
0x3a36   :  { %v3216_v30 = vcvt.f32.s32 %v3215_v39 }
0x3a38   :  { %v3219_v9 = vadd.s32 %v3218_v37, %v3216_v30 }
0x3a3a   :  { %v3220_v52 = vcvt.s32.f32 %v3219_v9  ;;  %vm3223_vm4 = vcmp.eq.s32.totalorder %v5215_v53, %v3219_v9 }
0x3a3b   :  { %vm3643_vm5 = vmpackc.low %vm3223_vm4, %vm3223_vm4 }
0x3a3c   :  { %4207 = vmatmul.mubr.msk.bf16.vlgmr.msra.gmra.mrb[84].mxu0 %vm3643_vm5, %v4477_v26  ;;  %3222 = vst.msk [vmem:[#allocation4] sm:$0xff] %vm3221_vm3, %v3220_v52 }
0x3b0f   :  { %v3261_v31 = vpop.f32.mrb[84].mxu0 }
0x3b10   :  { %v3267_v29 = vpack.c.bf16 %v3261_v31, %v3261_v31  ;;  %v4208_v60 = vpop.f32.mrb[85].mxu0 }
0x3b11   :  { %v3264_v38 = vpop.f32.mrb[86].mxu0 }
0x3b12   :  { %v4209_v2 = vpop.f32.mrb[87].mxu0  ;;  %4223 = vmatmul.mubr.msk.bf16.vlgmr.msra.gmra.mrb[76].mxu1 %vm74_vm9, %v3267_v29 }
0x3b13   :  { %4227 = vmatpush3.bf16.msra.mxu1 %v5561_v3  ;;  %4230 = vmatprep.mubr.msk.bf16.mxu1 %vm4465_vm0, %v4961_v45 }
0x3b14   :  { %4228 = vmatprep.subr.bf16.mxu1 %v4961_v45 }
0x3b17   :  { %4229 = vmatpush3.bf16.msra.mxu1 %v5570_v55 }
0x3be5   :  { %v3345_v61 = vpop.f32.mrb[76].mxu1 }
0x3be6   :  { %v3346_v26 = vadd.f32 %v3345_v61, %v5625_v12  ;;  %v4224_v10 = vpop.f32.mrb[77].mxu1 }
0x3be7   :  { %v3348_v27 = vpop.f32.mrb[78].mxu1 }
0x3be8   :  { %v3351_v11 = vadd.f32 %v5436_v22, %v3346_v26  ;;  %v4225_v46 = vpop.f32.mrb[79].mxu1 }
0x3bea   :  { %4386 = vtanh.f32 %v3351_v11  ;;  %v3647_v3 = vmul.f32 -1.442695, %v3351_v11 }
0x3bec   :  { %4388 = vpow2.f32 %v3647_v3 }
0x3bf4   :  { %v4387_v6 = vpop.eup %4386 }
0x3bf5   :  { %3361 = vrot.lane.b32.xlu1 %v4387_v6, %s4467_s20 }
0x3bf6   :  { %v4389_v50 = vpop.eup %4388 }
0x3bf7   :  { %v3355_v0 = vadd.f32 1.0, %v4389_v50 }
0x3bf9   :  { %4390 = vrcp.f32 %v3355_v0 }
0x3c03   :  { %v4391_v45 = vpop.eup %4390 }
0x3c04   :  { %v3359_v35 = vmul.f32 %v4391_v45, %v5579_v62 }
0x3c67   :  { %v3362_v44 = vpop.permute.xlu1 %3361 }
0x3c68   :  { %v3364_v55 = vmul.f32 %v4391_v45, %v3362_v44 }
0x3c6a   :  { %3366 = vrot.lane.b32.xlu0 %v3364_v55, %s4468_s21 }
0x3cdc   :  { %v3367_v15 = vpop.permute.xlu0 %3366 }
0x3cdd   :  { %v3369_v1 = vadd.f32 %v3367_v15, %v3359_v35 }
0x3cdf   :  { %4392 = vtanh.f32 %v3369_v1 }
0x3ce9   :  { %v4393_v22 = vpop.eup %4392 }
0x3cea   :  { %3372 = vrot.lane.b32.xlu1 %v4393_v22, %s4467_s20  ;;  %s3515_s20 = sshll.u32 %s4478_s2, 4  ;;  %s3516_s20 = int_to_ptr.vmem [resolvable:$true] %s3515_s20 }
0x3ceb   :  { %p4421_p1 = scmp.lt.s32.totalorder %s3516_s20, %s3516_s20 }
0x3d5c   :  { %v3373_v47 = vpop.permute.xlu1 %3372 }
0x3d5d   :  { %v3375_v56 = vmul.f32 %v4391_v45, %v3373_v47 }
0x3d5f   :  { %v3376_v57 = vpack.c.bf16 %v3375_v56, %v3375_v56 }
0x3d61   :  { %3378 = vrot.lane.b32.xlu1 %v3376_v57, %s4468_s21  ;;  %s4416_s21 = scalar_lea.vmem %s3516_s20, 1024 }
0x3d62   :  { %p4417_p0 = scmp.ne.s32.totalorder %s3516_s20, %s4416_s21  ;;  %p4422_p2 = scmp.lt.s32.totalorder %s4416_s21, %s4416_s21 }
0x3d64   :  { %p4423_p3 = por %p4422_p2, %p4421_p1 }
0x3d66   :  { %p4424_p4 = pnand %p4423_p3, %p4417_p0 }
0x3dd3   :  { %v3379_v12 = vpop.permute.xlu1 %3378 }
0x3dd4   :  { %4231 = vmatmul.mubr.msk.bf16.vlgmr.msra.gmra.mrb[80].mxu1 %vm74_vm9, %v3379_v12 }
0x3ea7   :  { %v3417_v14 = vpop.f32.mrb[80].mxu1 }
0x3ea8   :  { %v3418_v13 = vadd.f32 %v5539_v59, %v3417_v14  ;;  %v4232_v16 = vpop.f32.mrb[81].mxu1 }
0x3ea9   :  { %v3420_v17 = vpop.f32.mrb[82].mxu1 }
0x3eaa   :  { %v3424_v62 = vcombine.high %v3418_v13, %v3418_v13  ;;  %v3431_v24 = vrot.slane %v3418_v13, %v5204_v49  ;;  %3489 = vmax.xlane.f32.xlu0 %v3418_v13  ;;  %v4233_v25 = vpop.f32.mrb[83].mxu1 }
0x3eac   :  { %v3438_v32 = vrot.slane %v3424_v62, %v5204_v49  ;;  %v3439_v63 = vcombine.high %v3431_v24, %v3431_v24  ;;  %v3447_v33 = vrot.slane %v3431_v24, %v5204_v49  ;;  %3649 = vst.sshfl [vmem:[#allocation2 + $0x7] sm:$0x1 pattern:$0x73625140] %v3431_v24 }
0x3eae   :  { %v3440_v28 = vcombine.high %v3438_v32, %v3438_v32  ;;  %v3454_v20 = vrot.slane %v3438_v32, %v5204_v49  ;;  %v3461_v54 = vrot.slane %v3439_v63, %v5204_v49  ;;  %v3469_v7 = vcombine.high %v3447_v33, %v3447_v33  ;;  %3650 = vst.sshfl [vmem:[#allocation2 + $0xf] sm:$0x1 pattern:$0x73625140] %v3439_v63 }
0x3eaf   :  { %3651 = vst.sshfl [vmem:[#allocation2 + $0x27] sm:$0x1 pattern:$0x73625140] %v3438_v32 }
0x3eb0   :  { %v3468_v59 = vrot.slane %v3440_v28, %v5204_v49  ;;  %v3470_v34 = vcombine.high %v3454_v20, %v3454_v20  ;;  %v3471_v4 = vcombine.high %v3461_v54, %v3461_v54  ;;  %3483 = vst [vmem:[#allocation2 + $0x17] sm:$0x1] %v3469_v7  ;;  %3652 = vst.sshfl [vmem:[#allocation2 + $0x2f] sm:$0x1 pattern:$0x73625140] %v3440_v28 }
0x3eb2   :  { %v3472_v51 = vcombine.high %v3468_v59, %v3468_v59  ;;  %3484 = vst [vmem:[#allocation2 + $0x1f] sm:$0x1] %v3471_v4  ;;  %3487 = vst [vmem:[#allocation2 + $0x37] sm:$0x1] %v3470_v34 }
0x3eb4   :  { %3488 = vst [vmem:[#allocation2 + $0x3f] sm:$0x1] %v3472_v51 }
0x3f37   :  { %v3490_v19 = vpop.xlane.xlu0 %3489 }
0x3f38   :  { %vm3491_vm0 = vcmp.eq.f32.partialorder %v3418_v13, %v3490_v19 }
0x3f39   :  { %v3492_v36 = vsel %vm3491_vm0, %v5215_v53, 128 }
0x3f3a   :  { %v3494_v18 = vshra.s32 %v3492_v36, 16  ;;  %v3493_v58 = vand.u32 65535, %v3492_v36 }
0x3f3c   :  { %v3496_v21 = vcvt.s32.f32 %v3494_v18  ;;  %v3495_v5 = vcvt.s32.f32 %v3493_v58 }
0x3f3e   :  { %3497 = vmin.xlane.f32.xlu1 %v3496_v21 }
0x3fcb   :  { %v3498_v40 = vpop.xlane.xlu1 %3497 }
0x3fcc   :  { %vm3499_vm9 = vcmp.eq.f32.partialorder %v3496_v21, %v3498_v40 }
0x3fcd   :  { %v3500_v49 = vsel %vm3499_vm9, %v3495_v5, inf }
0x3fce   :  { %3501 = vmin.xlane.f32.xlu0 %v3500_v49 }
0x3fcf   :  { %4427 = shalt.err (!%p4424_p4)
}
0x3fd0   :  { %s4428_s4 = scalar_lea.hbm %s5692_s9, 1024 }
0x3fd1   :  { %p4429_p5 = scmp.ne.s32.totalorder %s5692_s9, %s4428_s4  ;;  %p4432_p6 = scmp.lt.u32.totalorder %s4428_s4, %s5692_s9 }
0x3fd3   :  { %p4434_p7 = pnand %p4432_p6, %p4429_p5 }
0x3fd5   :  { %4437 = shalt.err (!%p4434_p7)
}
0x3fd6   :  { %s4479_s19 = smov 128   ;;  %s4480_s22 = smov 8   ;;  %v3504_v53 = vcvt.f32.s32 %v3498_v40  ;;  %vm3508_vm6 = vcmask 64568  }
0x3fd7   :  { %3521 = dma.vmem_to_hbm [thread:$0]  %s3516_s20, 1024, %s5692_s9, [#allocation3], %s4479_s19, %s4479_s19, %s4480_s22  }
0x3fd8   :  { %v3505_v23 = vshll.u32 %v3504_v53, 16  ;;  %s4481_s24 = smov [#allocation4]  }
0x3fd9   :  { %s3528_s25 = sshll.u32 %s4481_s24, 4  ;;  %s3529_s25 = int_to_ptr.vmem [resolvable:$true] %s3528_s25 }
0x3fda   :  { %s4438_s26 = scalar_lea.vmem %s3529_s25, 128  ;;  %p4443_p9 = scmp.lt.s32.totalorder %s3529_s25, %s3529_s25 }
0x3fdb   :  { %p4439_p8 = scmp.ne.s32.totalorder %s3529_s25, %s4438_s26  ;;  %p4444_p10 = scmp.lt.s32.totalorder %s4438_s26, %s4438_s26 }
0x3fdd   :  { %p4445_p11 = por %p4444_p10, %p4443_p9 }
0x3fdf   :  { %p4446_p12 = pnand %p4445_p11, %p4439_p8 }
0x405b   :  { %v3502_v41 = vpop.xlane.xlu0 %3501 }
0x405c   :  { %v3503_v42 = vcvt.f32.s32 %v3502_v41 }
0x405e   :  { %v3506_v43 = vadd.s32 %v3505_v23, %v3503_v42 }
0x4060   :  { %v3507_v8 = vcvt.s32.f32 %v3506_v43 }
0x4062   :  { %3509 = vst.msk [vmem:[#allocation4] sm:$0xff] %vm3508_vm6, %v3507_v8 }
0x4063   :  { %4449 = shalt.err (!%p4446_p12)
}
0x4064   :  { %s4450_s27 = scalar_lea.hbm %s5693_s10, 128 }
0x4065   :  { %p4451_p13 = scmp.ne.s32.totalorder %s5693_s10, %s4450_s27  ;;  %p4454_p0 = scmp.lt.u32.totalorder %s4450_s27, %s5693_s10 }
0x4067   :  { %p4456_p1 = pnand %p4454_p0, %p4451_p13 }
0x4069   :  { %4459 = shalt.err (!%p4456_p1)
}
0x406a   :  { %3531 = dma.vmem_to_hbm [thread:$0]  %s3529_s25, 128, %s5693_s10, [#allocation5]  }
0x406b   :  { %4460 = dma.done.wait [#allocation3], 1024  }
0x406c   :  { %4461 = vsyncadd [#allocation3], 4294966272 }
0x406d   :  { %4462 = dma.done.wait [#allocation5], 128  }
0x406e   :  { %4463 = vsyncadd [#allocation5], 4294967168 }
0x406f   :  { %3538 = vsyncpa [#allocation3], 1 }
0x4070   :  { %3539 = vsyncpa [#allocation5], 1 }

</bundles_post_ra>
